<compile_context>
chip_gen: v5e
topology: v5e:2x2
jax: 0.10.0
libtpu: 0.0.40
codegen_flags: <defaults>
</compile_context>

<pallas_src>
import functools

import jax
import jax.numpy as jnp
from jax.experimental import pallas as pl
from jax.experimental.pallas import tpu as pltpu


def _layernorm_torchstyle(x, gamma, beta, eps, dim):
    # Matches the module's hand-written LayerNorm exactly (NOT torch.nn.LayerNorm):
    # unbiased std (N-1) and eps added to std (not inside sqrt(var+eps)).
    mean = jnp.mean(x, axis=-1, keepdims=True)
    var = jnp.sum((x - mean) ** 2, axis=-1, keepdims=True) * (1.0 / (dim - 1))
    inv = pl.reciprocal(jnp.sqrt(var) + eps)        # exact reciprocal
    return gamma * (x - mean) * inv + beta


def encoder_layer_kernel(
    x_ref, wq_ref, wk_ref, wv_ref, wo_ref,
    w1_ref, b1_ref, w2_ref, b2_ref,
    g1_ref, be1_ref, g2_ref, be2_ref,
    o_ref,
    *, num_heads, dim_heads, dim_model, seq_len, batch_tile, dim_inner,
    ffn_chunk, eps,
):
    H, Dh, S, BB, D = num_heads, dim_heads, seq_len, batch_tile, dim_model
    rows = BB * S
    f32 = jnp.float32
    bf16 = jnp.bfloat16

    x = x_ref[...]                      # (rows, D) f32 (kept f32 for the residual)
    xb = x.astype(bf16)                 # bf16 MXU operand

    # Batch-fused projections (weights already bf16; wq pre-scaled by 1/sqrt(Dh)).
    q = jnp.dot(xb, wq_ref[...], preferred_element_type=f32)      # (rows, H*Dh)
    k = jnp.dot(xb, wk_ref[...], preferred_element_type=f32)
    v = jnp.dot(xb, wv_ref[...], preferred_element_type=f32)

    # (b s) (h d) -> (b h) s d via reshape + ONE transpose (no per-head slicing).
    def to_groups(t):
        return (t.reshape(BB, S, H, Dh)
                 .transpose(0, 2, 1, 3)
                 .reshape(BB * H, S, Dh))

    qg = to_groups(q.astype(bf16))
    kg = to_groups(k.astype(bf16))
    vg = to_groups(v.astype(bf16))

    # TODO(synk): attention mask (mask is not None), dropout>0 and use_softmax1
    # paths are not implemented (eval-mode, mask=None, standard softmax only).
    # TODO(synk): for long S on v7x (64 MiB VMEM), switch to flash-style KV
    # tiling with an online-softmax accumulator so no (G, S, S) slab is resident.
    s = jnp.einsum('gqd,gkd->gqk', qg, kg, preferred_element_type=f32)
    s = s - jnp.max(s, axis=-1, keepdims=True)
    e = jnp.exp(s)                                       # unnormalized, f32
    denom = jnp.sum(e, axis=-1, keepdims=True)           # (G, S, 1), >= 1
    og = jnp.einsum('gqk,gkd->gqd', e.astype(bf16), vg,
                    preferred_element_type=f32)
    # Deferred softmax normalization: one (G,S,Dh) multiply instead of a
    # (G,S,S) slab multiply; exact reciprocal on a tiny (G,S,1) tensor.
    og = og * pl.reciprocal(denom)

    # (b h) s d -> (b s) (h d) with one transpose, then ONE out-projection matmul.
    attn = (og.reshape(BB, H, S, Dh)
              .transpose(0, 2, 1, 3)
              .reshape(rows, H * Dh))

    x1 = jnp.dot(attn.astype(bf16), wo_ref[...], preferred_element_type=f32) + x
    y1 = _layernorm_torchstyle(x1, g1_ref[...], be1_ref[...], eps, D)
    y1b = y1.astype(bf16)

    # FFN, K-tiled over dim_inner so the (rows, dim_inner) hidden activation is
    # never fully resident in VMEM (only one (rows, ffn_chunk) chunk at a time).
    ff = jnp.zeros((rows, D), f32)
    for c in range(dim_inner // ffn_chunk):
        lo = c * ffn_chunk
        h1c = jnp.dot(y1b, w1_ref[:, lo:lo + ffn_chunk],
                      preferred_element_type=f32) + b1_ref[:, lo:lo + ffn_chunk]
        h1c = jnp.maximum(h1c, 0.0).astype(bf16)         # ReLU
        ff = ff + jnp.dot(h1c, w2_ref[lo:lo + ffn_chunk, :],
                          preferred_element_type=f32)
    ff = ff + b2_ref[...]

    x2 = ff + y1
    y2 = _layernorm_torchstyle(x2, g2_ref[...], be2_ref[...], eps, D)
    o_ref[...] = y2.astype(o_ref.dtype)


def _pick_batch_tile(B, S, target_rows=512, min_steps=4):
    """Largest divisor bb of B with bb*S <= target_rows rows per grid step,
    while keeping >= min(min_steps, B) grid iterations so v7x's 2 TensorCores
    both get work and the pipeline has steps to overlap DMA with."""
    max_bb = max(1, min(B, target_rows // max(S, 1)))
    max_bb = min(max_bb, max(1, B // min(min_steps, B)))
    bb = max_bb
    while B % bb:
        bb -= 1
    return max(bb, 1)


def encoder_layer(x, params, *, num_heads, dim_heads, eps=1e-5,
                  compute_dtype=jnp.bfloat16, target_rows=512):
    B, S, D = x.shape
    dia = num_heads * dim_heads
    wq, wk, wv, wo, w1, b1, w2, b2, g1, be1, g2, be2 = params
    dim_inner = w1.shape[1]

    bb = _pick_batch_tile(B, S, target_rows=target_rows)
    rows = bb * S
    x2d = x.reshape(B * S, D)   # lane-dense 2-D in/out slab (keep D a multiple of 128)

    # bf16 MXU operands: halves weight HBM/VMEM footprint, ~2x MXU throughput on
    # v5e/v6e/v7x.  The 1/sqrt(Dh) attention scale is folded into wq once here
    # (per-call weight-sized op) instead of a per-tile rows*dia multiply on q.
    scale = dim_heads ** (-0.5)
    wq_c = (wq * scale).astype(compute_dtype)
    wk_c = wk.astype(compute_dtype)
    wv_c = wv.astype(compute_dtype)
    wo_c = wo.astype(compute_dtype)
    w1_c = w1.astype(compute_dtype)
    w2_c = w2.astype(compute_dtype)

    # FFN dim_inner chunk size (largest divisor <= 512).
    ffn_chunk = dim_inner
    if dim_inner > 512:
        for cand in (512, 384, 256, 128, 64):
            if dim_inner % cand == 0:
                ffn_chunk = cand
                break

    # Explicit VMEM budget: weights + double-buffered io tiles + activation /
    # score temps, with headroom (default scoped limit is 16/32 MiB).
    bpe = jnp.dtype(compute_dtype).itemsize
    weight_bytes = (3 * D * dia + dia * D + D * dim_inner + dim_inner * D) * bpe
    small_bytes = (dim_inner + 5 * D) * 4
    io_bytes = 2 * 2 * rows * D * 4
    act_bytes = rows * (3 * dia + 4 * D + 2 * ffn_chunk) * 4
    score_bytes = 2 * bb * num_heads * S * S * 4
    est = weight_bytes + small_bytes + io_bytes + act_bytes + score_bytes
    vmem_limit = int(min(max(int(est * 1.5), 32 * 2 ** 20), 100 * 2 ** 20))
    try:
        cparams = pltpu.CompilerParams(dimension_semantics=("parallel",),
                                       vmem_limit_bytes=vmem_limit)
    except TypeError:   # older CompilerParams without vmem_limit_bytes
        cparams = pltpu.CompilerParams(dimension_semantics=("parallel",))

    kernel = functools.partial(
        encoder_layer_kernel,
        num_heads=num_heads, dim_heads=dim_heads, dim_model=D, seq_len=S,
        batch_tile=bb, dim_inner=dim_inner, ffn_chunk=ffn_chunk, eps=eps)

    def call(single_buffer_weights):
        def wspec(shape):
            idx = lambda i, _n=len(shape): (0,) * _n     # grid-invariant
            if single_buffer_weights:
                # No double-buffering for operands whose block never changes.
                return pl.BlockSpec(shape, idx, pipeline_mode=pl.Buffered(1))
            return pl.BlockSpec(shape, idx)

        return pl.pallas_call(
            kernel,
            out_shape=jax.ShapeDtypeStruct((B * S, D), x.dtype),
            grid=(B // bb,),
            in_specs=[
                pl.BlockSpec((rows, D), lambda i: (i, 0)),   # x row tile
                wspec((D, dia)), wspec((D, dia)), wspec((D, dia)),   # wq, wk, wv
                wspec((dia, D)),                                     # wo
                wspec((D, dim_inner)), wspec((1, dim_inner)),        # w1, b1
                wspec((dim_inner, D)), wspec((1, D)),                # w2, b2
                wspec((1, D)), wspec((1, D)),                        # gamma1, beta1
                wspec((1, D)), wspec((1, D)),                        # gamma2, beta2
            ],
            out_specs=pl.BlockSpec((rows, D), lambda i: (i, 0)),
            compiler_params=cparams,
        )(x2d, wq_c, wk_c, wv_c, wo_c, w1_c, b1, w2_c, b2, g1, be1, g2, be2)

    try:
        out2d = call(True)
    except Exception:
        # pl.Buffered(1) on pallas_call BlockSpecs is not supported everywhere;
        # fall back to default (double-buffered) weight specs.
        out2d = call(False)
    return out2d.reshape(B, S, D)


def transformer_forward(x, layers_params, *, num_heads, dim_heads, eps=1e-5):
    """Stack of encoder layers (the `Transformer` module forward)."""
    for p in layers_params:
        x = encoder_layer(x, p, num_heads=num_heads, dim_heads=dim_heads, eps=eps)
    return x


# ----------------------------- pure-JAX reference -----------------------------
def reference_encoder_layer(x, params, *, num_heads, dim_heads, eps=1e-5):
    wq, wk, wv, wo, w1, b1, w2, b2, g1, be1, g2, be2 = params
    B, S, D = x.shape
    scale = dim_heads ** (-0.5)

    def ln(z, gamma, beta):
        mean = jnp.mean(z, axis=-1, keepdims=True)
        std = jnp.sqrt(jnp.sum((z - mean) ** 2, axis=-1, keepdims=True) / (D - 1))
        return gamma * (z - mean) / (std + eps) + beta

    def split_heads(t):  # (B,S,H*Dh) -> (B,H,S,Dh)
        return t.reshape(B, S, num_heads, dim_heads).transpose(0, 2, 1, 3)

    with jax.default_matmul_precision("highest"):   # full-f32 reference on TPU
        q, k, v = split_heads(x @ wq), split_heads(x @ wk), split_heads(x @ wv)
        attn = jnp.einsum("bhqd,bhkd->bhqk", q, k) * scale
        w_attn = jax.nn.softmax(attn, axis=-1)
        out = jnp.einsum("bhqk,bhkd->bhqd", w_attn, v)
        out = out.transpose(0, 2, 1, 3).reshape(B, S, num_heads * dim_heads)
        x1 = out @ wo + x
        y1 = ln(x1, g1, be1)
        ff = jnp.maximum(y1 @ w1 + b1, 0.0) @ w2 + b2
        return ln(ff + y1, g2, be2)


def reference_transformer(x, layers_params, *, num_heads, dim_heads, eps=1e-5):
    for p in layers_params:
        x = reference_encoder_layer(x, p, num_heads=num_heads,
                                    dim_heads=dim_heads, eps=eps)
    return x


def make_params(key, dim_model, num_heads, dim_heads, dim_inner):
    dia = num_heads * dim_heads
    ks = jax.random.split(key, 6)
    f32 = jnp.float32
    # Linear init as in the PyTorch module: randn(in, out) / sqrt(out).
    wq = jax.random.normal(ks[0], (dim_model, dia), f32) / jnp.sqrt(dia)
    wk = jax.random.normal(ks[1], (dim_model, dia), f32) / jnp.sqrt(dia)
    wv = jax.random.normal(ks[2], (dim_model, dia), f32) / jnp.sqrt(dia)
    wo = jax.random.normal(ks[3], (dia, dim_model), f32) / jnp.sqrt(dim_model)
    w1 = jax.random.normal(ks[4], (dim_model, dim_inner), f32) / jnp.sqrt(dim_inner)
    b1 = jnp.zeros((1, dim_inner), f32)
    w2 = jax.random.normal(ks[5], (dim_inner, dim_model), f32) / jnp.sqrt(dim_model)
    b2 = jnp.zeros((1, dim_model), f32)
    g1 = jnp.ones((1, dim_model), f32)
    be1 = jnp.zeros((1, dim_model), f32)
    g2 = jnp.ones((1, dim_model), f32)
    be2 = jnp.zeros((1, dim_model), f32)
    return (wq, wk, wv, wo, w1, b1, w2, b2, g1, be1, g2, be2)


if __name__ == "__main__":
    # Small, lane-dense shapes: D = dia = 128 (multiple of 128) avoids masked
    # partial stores on the output slab.
    B, S, D = 2, 8, 128
    num_heads, dim_heads, dim_inner, num_layers = 4, 32, 256, 2

    key = jax.random.PRNGKey(0)
    kx, kp = jax.random.split(key)
    x = jax.random.normal(kx, (B, S, D), jnp.float32)
    layer_keys = jax.random.split(kp, num_layers)
    layers_params = [make_params(k, D, num_heads, dim_heads, dim_inner)
                     for k in layer_keys]

    out = transformer_forward(x, layers_params,
                              num_heads=num_heads, dim_heads=dim_heads)
    out = jax.block_until_ready(out)

    ref = reference_transformer(x, layers_params,
                                num_heads=num_heads, dim_heads=dim_heads)
    assert out.shape == (B, S, D)
    # bf16 MXU operands (per the performance review) vs. a full-f32 reference,
    # through `num_layers` stacked layers -> bf16-level tolerance.
    assert jnp.allclose(out, ref, atol=3e-2, rtol=3e-2), "mismatch vs reference"
    print("KERNEL_OK")
</pallas_src>

<mosaic_0001>
module attributes {stable_mosaic.version = 11 : i64} {
  func.func @encoder_layer_kernel(%arg0: i32, %arg1: memref<8x128xf32, #tpu.memory_space<vmem>>, %arg2: memref<128x128xbf16, #tpu.memory_space<vmem>>, %arg3: memref<128x128xbf16, #tpu.memory_space<vmem>>, %arg4: memref<128x128xbf16, #tpu.memory_space<vmem>>, %arg5: memref<128x128xbf16, #tpu.memory_space<vmem>>, %arg6: memref<128x256xbf16, #tpu.memory_space<vmem>>, %arg7: memref<1x256xf32, #tpu.memory_space<vmem>>, %arg8: memref<256x128xbf16, #tpu.memory_space<vmem>>, %arg9: memref<1x128xf32, #tpu.memory_space<vmem>>, %arg10: memref<1x128xf32, #tpu.memory_space<vmem>>, %arg11: memref<1x128xf32, #tpu.memory_space<vmem>>, %arg12: memref<1x128xf32, #tpu.memory_space<vmem>>, %arg13: memref<1x128xf32, #tpu.memory_space<vmem>>, %arg14: memref<8x128xf32, #tpu.memory_space<vmem>>) attributes {dimension_semantics = [#tpu.dimension_semantics<parallel>], iteration_bounds = array<i64: 2>, scalar_prefetch = 0 : i64, scratch_operands = 0 : i64, tpu.core_type = #tpu.core_type<tc>, window_params = [{transform_indices = @transform_0, window_bounds = array<i64: 8, 128>}, {pipeline_mode = #tpu.pipeline_mode<synchronous>, transform_indices = @transform_1, window_bounds = array<i64: 128, 128>}, {pipeline_mode = #tpu.pipeline_mode<synchronous>, transform_indices = @transform_2, window_bounds = array<i64: 128, 128>}, {pipeline_mode = #tpu.pipeline_mode<synchronous>, transform_indices = @transform_3, window_bounds = array<i64: 128, 128>}, {pipeline_mode = #tpu.pipeline_mode<synchronous>, transform_indices = @transform_4, window_bounds = array<i64: 128, 128>}, {pipeline_mode = #tpu.pipeline_mode<synchronous>, transform_indices = @transform_5, window_bounds = array<i64: 128, 256>}, {pipeline_mode = #tpu.pipeline_mode<synchronous>, transform_indices = @transform_6, window_bounds = array<i64: 1, 256>}, {pipeline_mode = #tpu.pipeline_mode<synchronous>, transform_indices = @transform_7, window_bounds = array<i64: 256, 128>}, {pipeline_mode = #tpu.pipeline_mode<synchronous>, transform_indices = @transform_8, window_bounds = array<i64: 1, 128>}, {pipeline_mode = #tpu.pipeline_mode<synchronous>, transform_indices = @transform_9, window_bounds = array<i64: 1, 128>}, {pipeline_mode = #tpu.pipeline_mode<synchronous>, transform_indices = @transform_10, window_bounds = array<i64: 1, 128>}, {pipeline_mode = #tpu.pipeline_mode<synchronous>, transform_indices = @transform_11, window_bounds = array<i64: 1, 128>}, {pipeline_mode = #tpu.pipeline_mode<synchronous>, transform_indices = @transform_12, window_bounds = array<i64: 1, 128>}, {transform_indices = @transform_13, window_bounds = array<i64: 8, 128>}]} {
    %c0 = arith.constant 0 : index
    %c0_0 = arith.constant 0 : index
    %0 = vector.load %arg1[%c0, %c0_0] : memref<8x128xf32, #tpu.memory_space<vmem>>, vector<8x128xf32>
    %1 = arith.truncf %0 : vector<8x128xf32> to vector<8x128xbf16>
    %c0_1 = arith.constant 0 : index
    %c0_2 = arith.constant 0 : index
    %2 = vector.load %arg2[%c0_1, %c0_2] : memref<128x128xbf16, #tpu.memory_space<vmem>>, vector<128x128xbf16>
    %cst = arith.constant dense<0.000000e+00> : vector<8x128xf32>
    %3 = tpu.matmul %1, %2, %cst {dimension_numbers = #tpu.dot_dimension_numbers<[1], [0], [0], [1], [0, 0, 1, 1], [], []>} : vector<8x128xbf16>, vector<128x128xbf16>, vector<8x128xf32> -> vector<8x128xf32>
    %c0_3 = arith.constant 0 : index
    %c0_4 = arith.constant 0 : index
    %4 = vector.load %arg3[%c0_3, %c0_4] : memref<128x128xbf16, #tpu.memory_space<vmem>>, vector<128x128xbf16>
    %cst_5 = arith.constant dense<0.000000e+00> : vector<8x128xf32>
    %5 = tpu.matmul %1, %4, %cst_5 {dimension_numbers = #tpu.dot_dimension_numbers<[1], [0], [0], [1], [0, 0, 1, 1], [], []>} : vector<8x128xbf16>, vector<128x128xbf16>, vector<8x128xf32> -> vector<8x128xf32>
    %c0_6 = arith.constant 0 : index
    %c0_7 = arith.constant 0 : index
    %6 = vector.load %arg4[%c0_6, %c0_7] : memref<128x128xbf16, #tpu.memory_space<vmem>>, vector<128x128xbf16>
    %cst_8 = arith.constant dense<0.000000e+00> : vector<8x128xf32>
    %7 = tpu.matmul %1, %6, %cst_8 {dimension_numbers = #tpu.dot_dimension_numbers<[1], [0], [0], [1], [0, 0, 1, 1], [], []>} : vector<8x128xbf16>, vector<128x128xbf16>, vector<8x128xf32> -> vector<8x128xf32>
    %8 = arith.truncf %3 : vector<8x128xf32> to vector<8x128xbf16>
    %9 = vector.shape_cast %8 : vector<8x128xbf16> to vector<1x8x4x32xbf16>
    %10 = tpu.transpose %9, [0, 2, 1, 3] : vector<1x8x4x32xbf16> -> vector<1x4x8x32xbf16>
    %11 = vector.shape_cast %10 : vector<1x4x8x32xbf16> to vector<4x8x32xbf16>
    %12 = arith.truncf %5 : vector<8x128xf32> to vector<8x128xbf16>
    %13 = vector.shape_cast %12 : vector<8x128xbf16> to vector<1x8x4x32xbf16>
    %14 = tpu.transpose %13, [0, 2, 1, 3] : vector<1x8x4x32xbf16> -> vector<1x4x8x32xbf16>
    %15 = vector.shape_cast %14 : vector<1x4x8x32xbf16> to vector<4x8x32xbf16>
    %16 = arith.truncf %7 : vector<8x128xf32> to vector<8x128xbf16>
    %17 = vector.shape_cast %16 : vector<8x128xbf16> to vector<1x8x4x32xbf16>
    %18 = tpu.transpose %17, [0, 2, 1, 3] : vector<1x8x4x32xbf16> -> vector<1x4x8x32xbf16>
    %19 = vector.shape_cast %18 : vector<1x4x8x32xbf16> to vector<4x8x32xbf16>
    "tpu.trace_start"() <{level = 10 : i32, message = "gqd,gkd->gqk"}> : () -> ()
    %cst_9 = arith.constant dense<0.000000e+00> : vector<4x8x8xf32>
    %20 = tpu.matmul %11, %15, %cst_9 {dimension_numbers = #tpu.dot_dimension_numbers<[2], [2], [1], [1], [0, 0, 0, 1, 1, 1], [0], [0]>} : vector<4x8x32xbf16>, vector<4x8x32xbf16>, vector<4x8x8xf32> -> vector<4x8x8xf32>
    "tpu.trace_stop"() : () -> ()
    %cst_10 = arith.constant dense<0xFF800000> : vector<4x8xf32>
    %21 = vector.multi_reduction <maximumf>, %20, %cst_10 [2] : vector<4x8x8xf32> to vector<4x8xf32>
    %22 = vector.shape_cast %21 : vector<4x8xf32> to vector<4x8x1xf32>
    %23 = vector.broadcast %22 : vector<4x8x1xf32> to vector<4x8x8xf32>
    %24 = arith.subf %20, %23 : vector<4x8x8xf32>
    %25 = math.exp %24 : vector<4x8x8xf32>
    %cst_11 = arith.constant dense<0.000000e+00> : vector<4x8xf32>
    %26 = vector.multi_reduction <add>, %25, %cst_11 [2] : vector<4x8x8xf32> to vector<4x8xf32>
    %27 = vector.shape_cast %26 : vector<4x8xf32> to vector<4x8x1xf32>
    %28 = arith.truncf %25 : vector<4x8x8xf32> to vector<4x8x8xbf16>
    "tpu.trace_start"() <{level = 10 : i32, message = "gqk,gkd->gqd"}> : () -> ()
    %cst_12 = arith.constant dense<0.000000e+00> : vector<4x8x32xf32>
    %29 = tpu.matmul %28, %19, %cst_12 {dimension_numbers = #tpu.dot_dimension_numbers<[2], [1], [1], [2], [0, 0, 0, 1, 1, 2], [0], [0]>} : vector<4x8x8xbf16>, vector<4x8x32xbf16>, vector<4x8x32xf32> -> vector<4x8x32xf32>
    "tpu.trace_stop"() : () -> ()
    %30 = tpu.reciprocal %27 : vector<4x8x1xf32> -> vector<4x8x1xf32>
    %31 = vector.broadcast %30 : vector<4x8x1xf32> to vector<4x8x32xf32>
    %32 = arith.mulf %29, %31 : vector<4x8x32xf32>
    %33 = vector.shape_cast %32 : vector<4x8x32xf32> to vector<1x4x8x32xf32>
    %34 = tpu.transpose %33, [0, 2, 1, 3] : vector<1x4x8x32xf32> -> vector<1x8x4x32xf32>
    %35 = vector.shape_cast %34 : vector<1x8x4x32xf32> to vector<8x128xf32>
    %36 = arith.truncf %35 : vector<8x128xf32> to vector<8x128xbf16>
    %c0_13 = arith.constant 0 : index
    %c0_14 = arith.constant 0 : index
    %37 = vector.load %arg5[%c0_13, %c0_14] : memref<128x128xbf16, #tpu.memory_space<vmem>>, vector<128x128xbf16>
    %cst_15 = arith.constant dense<0.000000e+00> : vector<8x128xf32>
    %38 = tpu.matmul %36, %37, %cst_15 {dimension_numbers = #tpu.dot_dimension_numbers<[1], [0], [0], [1], [0, 0, 1, 1], [], []>} : vector<8x128xbf16>, vector<128x128xbf16>, vector<8x128xf32> -> vector<8x128xf32>
    %39 = arith.addf %38, %0 : vector<8x128xf32>
    %c0_16 = arith.constant 0 : index
    %c0_17 = arith.constant 0 : index
    %40 = vector.load %arg10[%c0_16, %c0_17] : memref<1x128xf32, #tpu.memory_space<vmem>>, vector<1x128xf32>
    %c0_18 = arith.constant 0 : index
    %c0_19 = arith.constant 0 : index
    %41 = vector.load %arg11[%c0_18, %c0_19] : memref<1x128xf32, #tpu.memory_space<vmem>>, vector<1x128xf32>
    %cst_20 = arith.constant dense<0.000000e+00> : vector<8xf32>
    %42 = vector.multi_reduction <add>, %39, %cst_20 [1] : vector<8x128xf32> to vector<8xf32>
    %43 = vector.shape_cast %42 : vector<8xf32> to vector<8x1xf32>
    %cst_21 = arith.constant 1.280000e+02 : f32
    %44 = vector.broadcast %cst_21 : f32 to vector<8x1xf32>
    %45 = arith.divf %43, %44 : vector<8x1xf32>
    %46 = vector.broadcast %45 : vector<8x1xf32> to vector<8x128xf32>
    %47 = arith.subf %39, %46 : vector<8x128xf32>
    %48 = arith.mulf %47, %47 : vector<8x128xf32>
    %cst_22 = arith.constant dense<0.000000e+00> : vector<8xf32>
    %49 = vector.multi_reduction <add>, %48, %cst_22 [1] : vector<8x128xf32> to vector<8xf32>
    %50 = vector.shape_cast %49 : vector<8xf32> to vector<8x1xf32>
    %cst_23 = arith.constant 0.00787401571 : f32
    %51 = vector.broadcast %cst_23 : f32 to vector<8x1xf32>
    %52 = arith.mulf %50, %51 : vector<8x1xf32>
    %53 = math.sqrt %52 : vector<8x1xf32>
    %cst_24 = arith.constant 9.99999974E-6 : f32
    %54 = vector.broadcast %cst_24 : f32 to vector<8x1xf32>
    %55 = arith.addf %53, %54 : vector<8x1xf32>
    %56 = tpu.reciprocal %55 : vector<8x1xf32> -> vector<8x1xf32>
    %57 = vector.broadcast %45 : vector<8x1xf32> to vector<8x128xf32>
    %58 = arith.subf %39, %57 : vector<8x128xf32>
    %59 = vector.broadcast %40 : vector<1x128xf32> to vector<8x128xf32>
    %60 = arith.mulf %59, %58 : vector<8x128xf32>
    %61 = vector.broadcast %56 : vector<8x1xf32> to vector<8x128xf32>
    %62 = arith.mulf %60, %61 : vector<8x128xf32>
    %63 = vector.broadcast %41 : vector<1x128xf32> to vector<8x128xf32>
    %64 = arith.addf %62, %63 : vector<8x128xf32>
    %65 = arith.truncf %64 : vector<8x128xf32> to vector<8x128xbf16>
    %cst_25 = arith.constant 0.000000e+00 : f32
    %66 = vector.broadcast %cst_25 : f32 to vector<8x128xf32>
    %c0_26 = arith.constant 0 : index
    %c0_27 = arith.constant 0 : index
    %67 = vector.load %arg6[%c0_26, %c0_27] : memref<128x256xbf16, #tpu.memory_space<vmem>>, vector<128x256xbf16>
    %cst_28 = arith.constant dense<0.000000e+00> : vector<8x256xf32>
    %68 = tpu.matmul %65, %67, %cst_28 {dimension_numbers = #tpu.dot_dimension_numbers<[1], [0], [0], [1], [0, 0, 1, 1], [], []>} : vector<8x128xbf16>, vector<128x256xbf16>, vector<8x256xf32> -> vector<8x256xf32>
    %c0_29 = arith.constant 0 : index
    %c0_30 = arith.constant 0 : index
    %69 = vector.load %arg7[%c0_29, %c0_30] : memref<1x256xf32, #tpu.memory_space<vmem>>, vector<1x256xf32>
    %70 = vector.broadcast %69 : vector<1x256xf32> to vector<8x256xf32>
    %71 = arith.addf %68, %70 : vector<8x256xf32>
    %cst_31 = arith.constant 0.000000e+00 : f32
    %72 = vector.broadcast %cst_31 : f32 to vector<8x256xf32>
    %73 = arith.maximumf %71, %72 : vector<8x256xf32>
    %74 = arith.truncf %73 : vector<8x256xf32> to vector<8x256xbf16>
    %c0_32 = arith.constant 0 : index
    %c0_33 = arith.constant 0 : index
    %75 = vector.load %arg8[%c0_32, %c0_33] : memref<256x128xbf16, #tpu.memory_space<vmem>>, vector<256x128xbf16>
    %cst_34 = arith.constant dense<0.000000e+00> : vector<8x128xf32>
    %76 = tpu.matmul %74, %75, %cst_34 {dimension_numbers = #tpu.dot_dimension_numbers<[1], [0], [0], [1], [0, 0, 1, 1], [], []>} : vector<8x256xbf16>, vector<256x128xbf16>, vector<8x128xf32> -> vector<8x128xf32>
    %77 = arith.addf %66, %76 : vector<8x128xf32>
    %c0_35 = arith.constant 0 : index
    %c0_36 = arith.constant 0 : index
    %78 = vector.load %arg9[%c0_35, %c0_36] : memref<1x128xf32, #tpu.memory_space<vmem>>, vector<1x128xf32>
    %79 = vector.broadcast %78 : vector<1x128xf32> to vector<8x128xf32>
    %80 = arith.addf %77, %79 : vector<8x128xf32>
    %81 = arith.addf %80, %64 : vector<8x128xf32>
    %c0_37 = arith.constant 0 : index
    %c0_38 = arith.constant 0 : index
    %82 = vector.load %arg12[%c0_37, %c0_38] : memref<1x128xf32, #tpu.memory_space<vmem>>, vector<1x128xf32>
    %c0_39 = arith.constant 0 : index
    %c0_40 = arith.constant 0 : index
    %83 = vector.load %arg13[%c0_39, %c0_40] : memref<1x128xf32, #tpu.memory_space<vmem>>, vector<1x128xf32>
    %cst_41 = arith.constant dense<0.000000e+00> : vector<8xf32>
    %84 = vector.multi_reduction <add>, %81, %cst_41 [1] : vector<8x128xf32> to vector<8xf32>
    %85 = vector.shape_cast %84 : vector<8xf32> to vector<8x1xf32>
    %cst_42 = arith.constant 1.280000e+02 : f32
    %86 = vector.broadcast %cst_42 : f32 to vector<8x1xf32>
    %87 = arith.divf %85, %86 : vector<8x1xf32>
    %88 = vector.broadcast %87 : vector<8x1xf32> to vector<8x128xf32>
    %89 = arith.subf %81, %88 : vector<8x128xf32>
    %90 = arith.mulf %89, %89 : vector<8x128xf32>
    %cst_43 = arith.constant dense<0.000000e+00> : vector<8xf32>
    %91 = vector.multi_reduction <add>, %90, %cst_43 [1] : vector<8x128xf32> to vector<8xf32>
    %92 = vector.shape_cast %91 : vector<8xf32> to vector<8x1xf32>
    %cst_44 = arith.constant 0.00787401571 : f32
    %93 = vector.broadcast %cst_44 : f32 to vector<8x1xf32>
    %94 = arith.mulf %92, %93 : vector<8x1xf32>
    %95 = math.sqrt %94 : vector<8x1xf32>
    %cst_45 = arith.constant 9.99999974E-6 : f32
    %96 = vector.broadcast %cst_45 : f32 to vector<8x1xf32>
    %97 = arith.addf %95, %96 : vector<8x1xf32>
    %98 = tpu.reciprocal %97 : vector<8x1xf32> -> vector<8x1xf32>
    %99 = vector.broadcast %87 : vector<8x1xf32> to vector<8x128xf32>
    %100 = arith.subf %81, %99 : vector<8x128xf32>
    %101 = vector.broadcast %82 : vector<1x128xf32> to vector<8x128xf32>
    %102 = arith.mulf %101, %100 : vector<8x128xf32>
    %103 = vector.broadcast %98 : vector<8x1xf32> to vector<8x128xf32>
    %104 = arith.mulf %102, %103 : vector<8x128xf32>
    %105 = vector.broadcast %83 : vector<1x128xf32> to vector<8x128xf32>
    %106 = arith.addf %104, %105 : vector<8x128xf32>
    %c0_46 = arith.constant 0 : index
    %c0_47 = arith.constant 0 : index
    %107 = vector.load %arg14[%c0_46, %c0_47] : memref<8x128xf32, #tpu.memory_space<vmem>>, vector<8x128xf32>
    tpu.vector_store %arg14[%c0_46, %c0_47], %106 {strides = array<i32>} : memref<8x128xf32, #tpu.memory_space<vmem>>, vector<8x128xf32>,
    return
  }
  func.func @transform_0(%arg0: i32) -> (i32, i32) {
    %c0_i32 = arith.constant 0 : i32
    %c0_i32_0 = arith.constant 0 : i32
    return %arg0, %c0_i32 : i32, i32
  }
  func.func @transform_1(%arg0: i32) -> (i32, i32) {
    %c0_i32 = arith.constant 0 : i32
    %c0_i32_0 = arith.constant 0 : i32
    %c0_i32_1 = arith.constant 0 : i32
    return %c0_i32, %c0_i32_0 : i32, i32
  }
  func.func @transform_2(%arg0: i32) -> (i32, i32) {
    %c0_i32 = arith.constant 0 : i32
    %c0_i32_0 = arith.constant 0 : i32
    %c0_i32_1 = arith.constant 0 : i32
    return %c0_i32, %c0_i32_0 : i32, i32
  }
  func.func @transform_3(%arg0: i32) -> (i32, i32) {
    %c0_i32 = arith.constant 0 : i32
    %c0_i32_0 = arith.constant 0 : i32
    %c0_i32_1 = arith.constant 0 : i32
    return %c0_i32, %c0_i32_0 : i32, i32
  }
  func.func @transform_4(%arg0: i32) -> (i32, i32) {
    %c0_i32 = arith.constant 0 : i32
    %c0_i32_0 = arith.constant 0 : i32
    %c0_i32_1 = arith.constant 0 : i32
    return %c0_i32, %c0_i32_0 : i32, i32
  }
  func.func @transform_5(%arg0: i32) -> (i32, i32) {
    %c0_i32 = arith.constant 0 : i32
    %c0_i32_0 = arith.constant 0 : i32
    %c0_i32_1 = arith.constant 0 : i32
    return %c0_i32, %c0_i32_0 : i32, i32
  }
  func.func @transform_6(%arg0: i32) -> (i32, i32) {
    %c0_i32 = arith.constant 0 : i32
    %c0_i32_0 = arith.constant 0 : i32
    %c0_i32_1 = arith.constant 0 : i32
    return %c0_i32, %c0_i32_0 : i32, i32
  }
  func.func @transform_7(%arg0: i32) -> (i32, i32) {
    %c0_i32 = arith.constant 0 : i32
    %c0_i32_0 = arith.constant 0 : i32
    %c0_i32_1 = arith.constant 0 : i32
    return %c0_i32, %c0_i32_0 : i32, i32
  }
  func.func @transform_8(%arg0: i32) -> (i32, i32) {
    %c0_i32 = arith.constant 0 : i32
    %c0_i32_0 = arith.constant 0 : i32
    %c0_i32_1 = arith.constant 0 : i32
    return %c0_i32, %c0_i32_0 : i32, i32
  }
  func.func @transform_9(%arg0: i32) -> (i32, i32) {
    %c0_i32 = arith.constant 0 : i32
    %c0_i32_0 = arith.constant 0 : i32
    %c0_i32_1 = arith.constant 0 : i32
    return %c0_i32, %c0_i32_0 : i32, i32
  }
  func.func @transform_10(%arg0: i32) -> (i32, i32) {
    %c0_i32 = arith.constant 0 : i32
    %c0_i32_0 = arith.constant 0 : i32
    %c0_i32_1 = arith.constant 0 : i32
    return %c0_i32, %c0_i32_0 : i32, i32
  }
  func.func @transform_11(%arg0: i32) -> (i32, i32) {
    %c0_i32 = arith.constant 0 : i32
    %c0_i32_0 = arith.constant 0 : i32
    %c0_i32_1 = arith.constant 0 : i32
    return %c0_i32, %c0_i32_0 : i32, i32
  }
  func.func @transform_12(%arg0: i32) -> (i32, i32) {
    %c0_i32 = arith.constant 0 : i32
    %c0_i32_0 = arith.constant 0 : i32
    %c0_i32_1 = arith.constant 0 : i32
    return %c0_i32, %c0_i32_0 : i32, i32
  }
  func.func @transform_13(%arg0: i32) -> (i32, i32) {
    %c0_i32 = arith.constant 0 : i32
    %c0_i32_0 = arith.constant 0 : i32
    return %arg0, %c0_i32 : i32, i32
  }
}

module attributes {stable_mosaic.version = 11 : i64} {
  func.func @encoder_layer_kernel(%arg0: i32, %arg1: memref<8x128xf32, #tpu.memory_space<vmem>>, %arg2: memref<128x128xbf16, #tpu.memory_space<vmem>>, %arg3: memref<128x128xbf16, #tpu.memory_space<vmem>>, %arg4: memref<128x128xbf16, #tpu.memory_space<vmem>>, %arg5: memref<128x128xbf16, #tpu.memory_space<vmem>>, %arg6: memref<128x256xbf16, #tpu.memory_space<vmem>>, %arg7: memref<1x256xf32, #tpu.memory_space<vmem>>, %arg8: memref<256x128xbf16, #tpu.memory_space<vmem>>, %arg9: memref<1x128xf32, #tpu.memory_space<vmem>>, %arg10: memref<1x128xf32, #tpu.memory_space<vmem>>, %arg11: memref<1x128xf32, #tpu.memory_space<vmem>>, %arg12: memref<1x128xf32, #tpu.memory_space<vmem>>, %arg13: memref<1x128xf32, #tpu.memory_space<vmem>>, %arg14: memref<8x128xf32, #tpu.memory_space<vmem>>) attributes {dimension_semantics = [#tpu.dimension_semantics<parallel>], iteration_bounds = array<i64: 2>, scalar_prefetch = 0 : i64, scratch_operands = 0 : i64, tpu.core_type = #tpu.core_type<tc>, window_params = [{transform_indices = @transform_0, window_bounds = array<i64: 8, 128>}, {pipeline_mode = #tpu.pipeline_mode<synchronous>, transform_indices = @transform_1, window_bounds = array<i64: 128, 128>}, {pipeline_mode = #tpu.pipeline_mode<synchronous>, transform_indices = @transform_2, window_bounds = array<i64: 128, 128>}, {pipeline_mode = #tpu.pipeline_mode<synchronous>, transform_indices = @transform_3, window_bounds = array<i64: 128, 128>}, {pipeline_mode = #tpu.pipeline_mode<synchronous>, transform_indices = @transform_4, window_bounds = array<i64: 128, 128>}, {pipeline_mode = #tpu.pipeline_mode<synchronous>, transform_indices = @transform_5, window_bounds = array<i64: 128, 256>}, {pipeline_mode = #tpu.pipeline_mode<synchronous>, transform_indices = @transform_6, window_bounds = array<i64: 1, 256>}, {pipeline_mode = #tpu.pipeline_mode<synchronous>, transform_indices = @transform_7, window_bounds = array<i64: 256, 128>}, {pipeline_mode = #tpu.pipeline_mode<synchronous>, transform_indices = @transform_8, window_bounds = array<i64: 1, 128>}, {pipeline_mode = #tpu.pipeline_mode<synchronous>, transform_indices = @transform_9, window_bounds = array<i64: 1, 128>}, {pipeline_mode = #tpu.pipeline_mode<synchronous>, transform_indices = @transform_10, window_bounds = array<i64: 1, 128>}, {pipeline_mode = #tpu.pipeline_mode<synchronous>, transform_indices = @transform_11, window_bounds = array<i64: 1, 128>}, {pipeline_mode = #tpu.pipeline_mode<synchronous>, transform_indices = @transform_12, window_bounds = array<i64: 1, 128>}, {transform_indices = @transform_13, window_bounds = array<i64: 8, 128>}]} {
    %c0 = arith.constant 0 : index
    %c0_0 = arith.constant 0 : index
    %0 = vector.load %arg1[%c0, %c0_0] : memref<8x128xf32, #tpu.memory_space<vmem>>, vector<8x128xf32>
    %1 = arith.truncf %0 : vector<8x128xf32> to vector<8x128xbf16>
    %c0_1 = arith.constant 0 : index
    %c0_2 = arith.constant 0 : index
    %2 = vector.load %arg2[%c0_1, %c0_2] : memref<128x128xbf16, #tpu.memory_space<vmem>>, vector<128x128xbf16>
    %cst = arith.constant dense<0.000000e+00> : vector<8x128xf32>
    %3 = tpu.matmul %1, %2, %cst {dimension_numbers = #tpu.dot_dimension_numbers<[1], [0], [0], [1], [0, 0, 1, 1], [], []>} : vector<8x128xbf16>, vector<128x128xbf16>, vector<8x128xf32> -> vector<8x128xf32>
    %c0_3 = arith.constant 0 : index
    %c0_4 = arith.constant 0 : index
    %4 = vector.load %arg3[%c0_3, %c0_4] : memref<128x128xbf16, #tpu.memory_space<vmem>>, vector<128x128xbf16>
    %cst_5 = arith.constant dense<0.000000e+00> : vector<8x128xf32>
    %5 = tpu.matmul %1, %4, %cst_5 {dimension_numbers = #tpu.dot_dimension_numbers<[1], [0], [0], [1], [0, 0, 1, 1], [], []>} : vector<8x128xbf16>, vector<128x128xbf16>, vector<8x128xf32> -> vector<8x128xf32>
    %c0_6 = arith.constant 0 : index
    %c0_7 = arith.constant 0 : index
    %6 = vector.load %arg4[%c0_6, %c0_7] : memref<128x128xbf16, #tpu.memory_space<vmem>>, vector<128x128xbf16>
    %cst_8 = arith.constant dense<0.000000e+00> : vector<8x128xf32>
    %7 = tpu.matmul %1, %6, %cst_8 {dimension_numbers = #tpu.dot_dimension_numbers<[1], [0], [0], [1], [0, 0, 1, 1], [], []>} : vector<8x128xbf16>, vector<128x128xbf16>, vector<8x128xf32> -> vector<8x128xf32>
    %8 = arith.truncf %3 : vector<8x128xf32> to vector<8x128xbf16>
    %9 = vector.shape_cast %8 : vector<8x128xbf16> to vector<1x8x4x32xbf16>
    %10 = tpu.transpose %9, [0, 2, 1, 3] : vector<1x8x4x32xbf16> -> vector<1x4x8x32xbf16>
    %11 = vector.shape_cast %10 : vector<1x4x8x32xbf16> to vector<4x8x32xbf16>
    %12 = arith.truncf %5 : vector<8x128xf32> to vector<8x128xbf16>
    %13 = vector.shape_cast %12 : vector<8x128xbf16> to vector<1x8x4x32xbf16>
    %14 = tpu.transpose %13, [0, 2, 1, 3] : vector<1x8x4x32xbf16> -> vector<1x4x8x32xbf16>
    %15 = vector.shape_cast %14 : vector<1x4x8x32xbf16> to vector<4x8x32xbf16>
    %16 = arith.truncf %7 : vector<8x128xf32> to vector<8x128xbf16>
    %17 = vector.shape_cast %16 : vector<8x128xbf16> to vector<1x8x4x32xbf16>
    %18 = tpu.transpose %17, [0, 2, 1, 3] : vector<1x8x4x32xbf16> -> vector<1x4x8x32xbf16>
    %19 = vector.shape_cast %18 : vector<1x4x8x32xbf16> to vector<4x8x32xbf16>
    "tpu.trace_start"() <{level = 10 : i32, message = "gqd,gkd->gqk"}> : () -> ()
    %cst_9 = arith.constant dense<0.000000e+00> : vector<4x8x8xf32>
    %20 = tpu.matmul %11, %15, %cst_9 {dimension_numbers = #tpu.dot_dimension_numbers<[2], [2], [1], [1], [0, 0, 0, 1, 1, 1], [0], [0]>} : vector<4x8x32xbf16>, vector<4x8x32xbf16>, vector<4x8x8xf32> -> vector<4x8x8xf32>
    "tpu.trace_stop"() : () -> ()
    %cst_10 = arith.constant dense<0xFF800000> : vector<4x8xf32>
    %21 = vector.multi_reduction <maximumf>, %20, %cst_10 [2] : vector<4x8x8xf32> to vector<4x8xf32>
    %22 = vector.shape_cast %21 : vector<4x8xf32> to vector<4x8x1xf32>
    %23 = vector.broadcast %22 : vector<4x8x1xf32> to vector<4x8x8xf32>
    %24 = arith.subf %20, %23 : vector<4x8x8xf32>
    %25 = math.exp %24 : vector<4x8x8xf32>
    %cst_11 = arith.constant dense<0.000000e+00> : vector<4x8xf32>
    %26 = vector.multi_reduction <add>, %25, %cst_11 [2] : vector<4x8x8xf32> to vector<4x8xf32>
    %27 = vector.shape_cast %26 : vector<4x8xf32> to vector<4x8x1xf32>
    %28 = arith.truncf %25 : vector<4x8x8xf32> to vector<4x8x8xbf16>
    "tpu.trace_start"() <{level = 10 : i32, message = "gqk,gkd->gqd"}> : () -> ()
    %cst_12 = arith.constant dense<0.000000e+00> : vector<4x8x32xf32>
    %29 = tpu.matmul %28, %19, %cst_12 {dimension_numbers = #tpu.dot_dimension_numbers<[2], [1], [1], [2], [0, 0, 0, 1, 1, 2], [0], [0]>} : vector<4x8x8xbf16>, vector<4x8x32xbf16>, vector<4x8x32xf32> -> vector<4x8x32xf32>
    "tpu.trace_stop"() : () -> ()
    %30 = tpu.reciprocal %27 : vector<4x8x1xf32> -> vector<4x8x1xf32>
    %31 = vector.broadcast %30 : vector<4x8x1xf32> to vector<4x8x32xf32>
    %32 = arith.mulf %29, %31 : vector<4x8x32xf32>
    %33 = vector.shape_cast %32 : vector<4x8x32xf32> to vector<1x4x8x32xf32>
    %34 = tpu.transpose %33, [0, 2, 1, 3] : vector<1x4x8x32xf32> -> vector<1x8x4x32xf32>
    %35 = vector.shape_cast %34 : vector<1x8x4x32xf32> to vector<8x128xf32>
    %36 = arith.truncf %35 : vector<8x128xf32> to vector<8x128xbf16>
    %c0_13 = arith.constant 0 : index
    %c0_14 = arith.constant 0 : index
    %37 = vector.load %arg5[%c0_13, %c0_14] : memref<128x128xbf16, #tpu.memory_space<vmem>>, vector<128x128xbf16>
    %cst_15 = arith.constant dense<0.000000e+00> : vector<8x128xf32>
    %38 = tpu.matmul %36, %37, %cst_15 {dimension_numbers = #tpu.dot_dimension_numbers<[1], [0], [0], [1], [0, 0, 1, 1], [], []>} : vector<8x128xbf16>, vector<128x128xbf16>, vector<8x128xf32> -> vector<8x128xf32>
    %39 = arith.addf %38, %0 : vector<8x128xf32>
    %c0_16 = arith.constant 0 : index
    %c0_17 = arith.constant 0 : index
    %40 = vector.load %arg10[%c0_16, %c0_17] : memref<1x128xf32, #tpu.memory_space<vmem>>, vector<1x128xf32>
    %c0_18 = arith.constant 0 : index
    %c0_19 = arith.constant 0 : index
    %41 = vector.load %arg11[%c0_18, %c0_19] : memref<1x128xf32, #tpu.memory_space<vmem>>, vector<1x128xf32>
    %cst_20 = arith.constant dense<0.000000e+00> : vector<8xf32>
    %42 = vector.multi_reduction <add>, %39, %cst_20 [1] : vector<8x128xf32> to vector<8xf32>
    %43 = vector.shape_cast %42 : vector<8xf32> to vector<8x1xf32>
    %cst_21 = arith.constant 1.280000e+02 : f32
    %44 = vector.broadcast %cst_21 : f32 to vector<8x1xf32>
    %45 = arith.divf %43, %44 : vector<8x1xf32>
    %46 = vector.broadcast %45 : vector<8x1xf32> to vector<8x128xf32>
    %47 = arith.subf %39, %46 : vector<8x128xf32>
    %48 = arith.mulf %47, %47 : vector<8x128xf32>
    %cst_22 = arith.constant dense<0.000000e+00> : vector<8xf32>
    %49 = vector.multi_reduction <add>, %48, %cst_22 [1] : vector<8x128xf32> to vector<8xf32>
    %50 = vector.shape_cast %49 : vector<8xf32> to vector<8x1xf32>
    %cst_23 = arith.constant 0.00787401571 : f32
    %51 = vector.broadcast %cst_23 : f32 to vector<8x1xf32>
    %52 = arith.mulf %50, %51 : vector<8x1xf32>
    %53 = math.sqrt %52 : vector<8x1xf32>
    %cst_24 = arith.constant 9.99999974E-6 : f32
    %54 = vector.broadcast %cst_24 : f32 to vector<8x1xf32>
    %55 = arith.addf %53, %54 : vector<8x1xf32>
    %56 = tpu.reciprocal %55 : vector<8x1xf32> -> vector<8x1xf32>
    %57 = vector.broadcast %45 : vector<8x1xf32> to vector<8x128xf32>
    %58 = arith.subf %39, %57 : vector<8x128xf32>
    %59 = vector.broadcast %40 : vector<1x128xf32> to vector<8x128xf32>
    %60 = arith.mulf %59, %58 : vector<8x128xf32>
    %61 = vector.broadcast %56 : vector<8x1xf32> to vector<8x128xf32>
    %62 = arith.mulf %60, %61 : vector<8x128xf32>
    %63 = vector.broadcast %41 : vector<1x128xf32> to vector<8x128xf32>
    %64 = arith.addf %62, %63 : vector<8x128xf32>
    %65 = arith.truncf %64 : vector<8x128xf32> to vector<8x128xbf16>
    %cst_25 = arith.constant 0.000000e+00 : f32
    %66 = vector.broadcast %cst_25 : f32 to vector<8x128xf32>
    %c0_26 = arith.constant 0 : index
    %c0_27 = arith.constant 0 : index
    %67 = vector.load %arg6[%c0_26, %c0_27] : memref<128x256xbf16, #tpu.memory_space<vmem>>, vector<128x256xbf16>
    %cst_28 = arith.constant dense<0.000000e+00> : vector<8x256xf32>
    %68 = tpu.matmul %65, %67, %cst_28 {dimension_numbers = #tpu.dot_dimension_numbers<[1], [0], [0], [1], [0, 0, 1, 1], [], []>} : vector<8x128xbf16>, vector<128x256xbf16>, vector<8x256xf32> -> vector<8x256xf32>
    %c0_29 = arith.constant 0 : index
    %c0_30 = arith.constant 0 : index
    %69 = vector.load %arg7[%c0_29, %c0_30] : memref<1x256xf32, #tpu.memory_space<vmem>>, vector<1x256xf32>
    %70 = vector.broadcast %69 : vector<1x256xf32> to vector<8x256xf32>
    %71 = arith.addf %68, %70 : vector<8x256xf32>
    %cst_31 = arith.constant 0.000000e+00 : f32
    %72 = vector.broadcast %cst_31 : f32 to vector<8x256xf32>
    %73 = arith.maximumf %71, %72 : vector<8x256xf32>
    %74 = arith.truncf %73 : vector<8x256xf32> to vector<8x256xbf16>
    %c0_32 = arith.constant 0 : index
    %c0_33 = arith.constant 0 : index
    %75 = vector.load %arg8[%c0_32, %c0_33] : memref<256x128xbf16, #tpu.memory_space<vmem>>, vector<256x128xbf16>
    %cst_34 = arith.constant dense<0.000000e+00> : vector<8x128xf32>
    %76 = tpu.matmul %74, %75, %cst_34 {dimension_numbers = #tpu.dot_dimension_numbers<[1], [0], [0], [1], [0, 0, 1, 1], [], []>} : vector<8x256xbf16>, vector<256x128xbf16>, vector<8x128xf32> -> vector<8x128xf32>
    %77 = arith.addf %66, %76 : vector<8x128xf32>
    %c0_35 = arith.constant 0 : index
    %c0_36 = arith.constant 0 : index
    %78 = vector.load %arg9[%c0_35, %c0_36] : memref<1x128xf32, #tpu.memory_space<vmem>>, vector<1x128xf32>
    %79 = vector.broadcast %78 : vector<1x128xf32> to vector<8x128xf32>
    %80 = arith.addf %77, %79 : vector<8x128xf32>
    %81 = arith.addf %80, %64 : vector<8x128xf32>
    %c0_37 = arith.constant 0 : index
    %c0_38 = arith.constant 0 : index
    %82 = vector.load %arg12[%c0_37, %c0_38] : memref<1x128xf32, #tpu.memory_space<vmem>>, vector<1x128xf32>
    %c0_39 = arith.constant 0 : index
    %c0_40 = arith.constant 0 : index
    %83 = vector.load %arg13[%c0_39, %c0_40] : memref<1x128xf32, #tpu.memory_space<vmem>>, vector<1x128xf32>
    %cst_41 = arith.constant dense<0.000000e+00> : vector<8xf32>
    %84 = vector.multi_reduction <add>, %81, %cst_41 [1] : vector<8x128xf32> to vector<8xf32>
    %85 = vector.shape_cast %84 : vector<8xf32> to vector<8x1xf32>
    %cst_42 = arith.constant 1.280000e+02 : f32
    %86 = vector.broadcast %cst_42 : f32 to vector<8x1xf32>
    %87 = arith.divf %85, %86 : vector<8x1xf32>
    %88 = vector.broadcast %87 : vector<8x1xf32> to vector<8x128xf32>
    %89 = arith.subf %81, %88 : vector<8x128xf32>
    %90 = arith.mulf %89, %89 : vector<8x128xf32>
    %cst_43 = arith.constant dense<0.000000e+00> : vector<8xf32>
    %91 = vector.multi_reduction <add>, %90, %cst_43 [1] : vector<8x128xf32> to vector<8xf32>
    %92 = vector.shape_cast %91 : vector<8xf32> to vector<8x1xf32>
    %cst_44 = arith.constant 0.00787401571 : f32
    %93 = vector.broadcast %cst_44 : f32 to vector<8x1xf32>
    %94 = arith.mulf %92, %93 : vector<8x1xf32>
    %95 = math.sqrt %94 : vector<8x1xf32>
    %cst_45 = arith.constant 9.99999974E-6 : f32
    %96 = vector.broadcast %cst_45 : f32 to vector<8x1xf32>
    %97 = arith.addf %95, %96 : vector<8x1xf32>
    %98 = tpu.reciprocal %97 : vector<8x1xf32> -> vector<8x1xf32>
    %99 = vector.broadcast %87 : vector<8x1xf32> to vector<8x128xf32>
    %100 = arith.subf %81, %99 : vector<8x128xf32>
    %101 = vector.broadcast %82 : vector<1x128xf32> to vector<8x128xf32>
    %102 = arith.mulf %101, %100 : vector<8x128xf32>
    %103 = vector.broadcast %98 : vector<8x1xf32> to vector<8x128xf32>
    %104 = arith.mulf %102, %103 : vector<8x128xf32>
    %105 = vector.broadcast %83 : vector<1x128xf32> to vector<8x128xf32>
    %106 = arith.addf %104, %105 : vector<8x128xf32>
    %c0_46 = arith.constant 0 : index
    %c0_47 = arith.constant 0 : index
    %107 = vector.load %arg14[%c0_46, %c0_47] : memref<8x128xf32, #tpu.memory_space<vmem>>, vector<8x128xf32>
    tpu.vector_store %arg14[%c0_46, %c0_47], %106 {strides = array<i32>} : memref<8x128xf32, #tpu.memory_space<vmem>>, vector<8x128xf32>,
    return
  }
  func.func @transform_0(%arg0: i32) -> (i32, i32) {
    %c0_i32 = arith.constant 0 : i32
    %c0_i32_0 = arith.constant 0 : i32
    return %arg0, %c0_i32 : i32, i32
  }
  func.func @transform_1(%arg0: i32) -> (i32, i32) {
    %c0_i32 = arith.constant 0 : i32
    %c0_i32_0 = arith.constant 0 : i32
    %c0_i32_1 = arith.constant 0 : i32
    return %c0_i32, %c0_i32_0 : i32, i32
  }
  func.func @transform_2(%arg0: i32) -> (i32, i32) {
    %c0_i32 = arith.constant 0 : i32
    %c0_i32_0 = arith.constant 0 : i32
    %c0_i32_1 = arith.constant 0 : i32
    return %c0_i32, %c0_i32_0 : i32, i32
  }
  func.func @transform_3(%arg0: i32) -> (i32, i32) {
    %c0_i32 = arith.constant 0 : i32
    %c0_i32_0 = arith.constant 0 : i32
    %c0_i32_1 = arith.constant 0 : i32
    return %c0_i32, %c0_i32_0 : i32, i32
  }
  func.func @transform_4(%arg0: i32) -> (i32, i32) {
    %c0_i32 = arith.constant 0 : i32
    %c0_i32_0 = arith.constant 0 : i32
    %c0_i32_1 = arith.constant 0 : i32
    return %c0_i32, %c0_i32_0 : i32, i32
  }
  func.func @transform_5(%arg0: i32) -> (i32, i32) {
    %c0_i32 = arith.constant 0 : i32
    %c0_i32_0 = arith.constant 0 : i32
    %c0_i32_1 = arith.constant 0 : i32
    return %c0_i32, %c0_i32_0 : i32, i32
  }
  func.func @transform_6(%arg0: i32) -> (i32, i32) {
    %c0_i32 = arith.constant 0 : i32
    %c0_i32_0 = arith.constant 0 : i32
    %c0_i32_1 = arith.constant 0 : i32
    return %c0_i32, %c0_i32_0 : i32, i32
  }
  func.func @transform_7(%arg0: i32) -> (i32, i32) {
    %c0_i32 = arith.constant 0 : i32
    %c0_i32_0 = arith.constant 0 : i32
    %c0_i32_1 = arith.constant 0 : i32
    return %c0_i32, %c0_i32_0 : i32, i32
  }
  func.func @transform_8(%arg0: i32) -> (i32, i32) {
    %c0_i32 = arith.constant 0 : i32
    %c0_i32_0 = arith.constant 0 : i32
    %c0_i32_1 = arith.constant 0 : i32
    return %c0_i32, %c0_i32_0 : i32, i32
  }
  func.func @transform_9(%arg0: i32) -> (i32, i32) {
    %c0_i32 = arith.constant 0 : i32
    %c0_i32_0 = arith.constant 0 : i32
    %c0_i32_1 = arith.constant 0 : i32
    return %c0_i32, %c0_i32_0 : i32, i32
  }
  func.func @transform_10(%arg0: i32) -> (i32, i32) {
    %c0_i32 = arith.constant 0 : i32
    %c0_i32_0 = arith.constant 0 : i32
    %c0_i32_1 = arith.constant 0 : i32
    return %c0_i32, %c0_i32_0 : i32, i32
  }
  func.func @transform_11(%arg0: i32) -> (i32, i32) {
    %c0_i32 = arith.constant 0 : i32
    %c0_i32_0 = arith.constant 0 : i32
    %c0_i32_1 = arith.constant 0 : i32
    return %c0_i32, %c0_i32_0 : i32, i32
  }
  func.func @transform_12(%arg0: i32) -> (i32, i32) {
    %c0_i32 = arith.constant 0 : i32
    %c0_i32_0 = arith.constant 0 : i32
    %c0_i32_1 = arith.constant 0 : i32
    return %c0_i32, %c0_i32_0 : i32, i32
  }
  func.func @transform_13(%arg0: i32) -> (i32, i32) {
    %c0_i32 = arith.constant 0 : i32
    %c0_i32_0 = arith.constant 0 : i32
    return %arg0, %c0_i32 : i32, i32
  }
}

</mosaic_0001>

<bundles_post_ra>
// kernel: tpu_custom_call.1
= control target key start
LH: loop header
LB: loop body
LE: loop exit
PB: predicated region body
PF: predicated region fallthrough
CT: control target
= control target key end

     0   :  { %s3452_s0 = inlined_call_operand.hbm [shape: f32[16,128], index: 0, kind: input, shape index: {}]   ;;  %s3453_s1 = inlined_call_operand.hbm [shape: bf16[128,128], index: 1, kind: input, shape index: {}]   ;;  %s3454_s2 = inlined_call_operand.hbm [shape: bf16[128,128], index: 2, kind: input, shape index: {}]   ;;  %s3455_s3 = inlined_call_operand.hbm [shape: bf16[128,128], index: 3, kind: input, shape index: {}]   ;;  %s3456_s4 = inlined_call_operand.hbm [shape: bf16[128,128], index: 4, kind: input, shape index: {}]   ;;  %s3457_s5 = inlined_call_operand.hbm [shape: bf16[128,256], index: 5, kind: input, shape index: {}]   ;;  %s3458_s6 = inlined_call_operand.vmem [shape: f32[1,256], index: 6, kind: input, shape index: {}]   ;;  %s3459_s7 = inlined_call_operand.hbm [shape: bf16[256,128], index: 7, kind: input, shape index: {}]   ;;  %s3460_s8 = inlined_call_operand.vmem [shape: f32[1,128], index: 8, kind: input, shape index: {}]   ;;  %s3461_s9 = inlined_call_operand.vmem [shape: f32[1,128], index: 9, kind: input, shape index: {}]   ;;  %s3462_s10 = inlined_call_operand.vmem [shape: f32[1,128], index: 10, kind: input, shape index: {}]   ;;  %s3463_s11 = inlined_call_operand.vmem [shape: f32[1,128], index: 11, kind: input, shape index: {}]   ;;  %s3464_s12 = inlined_call_operand.vmem [shape: f32[1,128], index: 12, kind: input, shape index: {}]   ;;  %s3465_s13 = inlined_call_operand.hbm [shape: f32[16,128], index: 13, kind: output, shape index: {}]  }
   0x1   :  { %3467 = sst [smem:[#allocation20_spill]] %s3453_s1 }
   0x2   :  { %3468 = sst [smem:[#allocation21_spill]] %s3454_s2 }
   0x3   :  { %3469 = sst [smem:[#allocation22_spill]] %s3455_s3 }
   0x4   :  { %3470 = sst [smem:[#allocation23_spill]] %s3456_s4 }
   0x5   :  { %3471 = sst [smem:[#allocation24_spill]] %s3457_s5 }
   0x6   :  { %3472 = sst [smem:[#allocation25_spill]] %s3463_s11 }
   0x7   :  { %3473 = sst [smem:[#allocation26_spill]] %s3464_s12 }
   0x8   :  { %3474 = sst [smem:[#allocation27_spill]] %s3465_s13 }
   0x9   :  { %18 = vsyncpa [#allocation3], 0 }
   0xa   :  { %20 = vsyncpa [#allocation3 + $0x1], 0 }
   0xb   :  { %21 = vsyncpa [#allocation6], 0 }
   0xc   :  { %22 = vsyncpa [#allocation9], 0 }
   0xd   :  { %23 = vsyncpa [#allocation12], 0 }
   0xe   :  { %24 = vsyncpa [#allocation4], 0 }
   0xf   :  { %26 = vsyncpa [#allocation4 + $0x1], 0  ;;  %s3030_s25 = smov 0   ;;  %s3032_s26 = smov 0  }
  0x10   :  { %s3034_s27 = smov 0   ;;  %s3036_s28 = smov 0  }
  0x11 LB: > { %s3475_s1 = sld [smem:[#allocation20_spill]]  ;;  %s3054_s15 = sadd.s32 4294967295, %s2942_s28   ;;  %s2942_s28 = sphi %s3036_s28, %s3496_s28   ;;  %s2938_s27 = sphi %s3034_s27, %s3495_s27   ;;  %s2934_s26 = sphi %s3032_s26, %s3494_s26   ;;  %s2930_s25 = sphi %s3030_s25, %s3493_s25  }
  0x12   : > { %p2155_p0 = scmp.ge.s32.totalorder %s2942_s28, 1  ;;  %p53_p1 = scmp.eq.s32.totalorder %s3054_s15, 0 }
  0x13   : > { %p341_p2 = scmp.lt.s32.totalorder %s2942_s28, 3  ;;  %s2944_s17 = smov [#allocation5]  }
  0x14   : > { %s354_s18 = sshll.u32 %s2944_s17, 4  ;;  %s3477_s3 = sld [smem:[#allocation22_spill]]  ;;  %s355_s18 = int_to_ptr.vmem [resolvable:$true] %s354_s18 }
  0x15   : > { %p3059_p3 = pnand %p2155_p0, %p341_p2  ;;  %s3479_s5 = sld [smem:[#allocation24_spill]] }
  0x16   : > { %s2945_s30 = smov [#allocation8]   ;;  %s2947_s12 = smov 4  }
  0x17   : > { %s352_s14 = sshll.u32 %s3475_s1, 4  ;;  %p2534_p4 = pneg %p3059_p3  ;;  %s353_s14 = int_to_ptr.hbm [resolvable:$true] %s352_s14 }
  0x18   : > { %s382_s17 = sshll.u32 %s2945_s30, 4  ;;  %s2946_s1 = smov 64   ;;  %s383_s17 = int_to_ptr.vmem [resolvable:$true] %s382_s17 }
  0x19   : > { %p3071_p6 = pnand %p2534_p4, %p53_p1  ;;  %s2948_s19 = smov [#allocation11]  }
  0x1a   : > { %s380_s21 = sshll.u32 %s3477_s3, 4  ;;  %s410_s20 = sshll.u32 %s2948_s19, 4  ;;  %s381_s21 = int_to_ptr.hbm [resolvable:$true] %s380_s21  ;;  %s411_s20 = int_to_ptr.vmem [resolvable:$true] %s410_s20 }
  0x1b   : > { %s408_s29 = sshll.u32 %s3479_s5, 4  ;;  %s3480_s2 = sld [smem:[#allocation21_spill]]  ;;  %s409_s29 = int_to_ptr.hbm [resolvable:$true] %s408_s29 }
  0x1c   : > { %2537 = dma.hbm_to_vmem [thread:$0]  (!%p3071_p6), %s353_s14, 1024, %s355_s18, [#allocation6], %s2946_s1, %s2946_s1, %s2947_s12  }
  0x1d   : > { %2543 = dma.hbm_to_vmem [thread:$0]  (!%p3071_p6), %s381_s21, 1024, %s383_s17, [#allocation9], %s2946_s1, %s2946_s1, %s2947_s12  }
  0x1e   : > { %s2949_s3 = smov 128   ;;  %s2950_s5 = smov 8  }
  0x1f   : > { %2549 = dma.hbm_to_vmem [thread:$0]  (!%p3071_p6), %s409_s29, 2048, %s411_s20, [#allocation12], %s2949_s3, %s2949_s3, %s2950_s5  }
  0x20   : > { %s2951_s14 = smov [#allocation7]   ;;  %s3481_s4 = sld [smem:[#allocation23_spill]] }
  0x21   : > { %s366_s30 = sshll.u32 %s3480_s2, 4  ;;  %s368_s18 = sshll.u32 %s2951_s14, 4  ;;  %s367_s30 = int_to_ptr.hbm [resolvable:$true] %s366_s30  ;;  %s369_s18 = int_to_ptr.vmem [resolvable:$true] %s368_s18 }
  0x22   : > { %2540 = dma.hbm_to_vmem [thread:$0]  (!%p3071_p6), %s367_s30, 1024, %s369_s18, [#allocation6], %s2946_s1, %s2946_s1, %s2947_s12  }
  0x23   : > { %s425_s29 = sshll.u32 %s3459_s7, 4  ;;  %s2952_s17 = smov [#allocation10]   ;;  %s426_s29 = int_to_ptr.hbm [resolvable:$true] %s425_s29 }
  0x24   : > { %s396_s11 = sshll.u32 %s2952_s17, 4  ;;  %s2953_s13 = smov [#allocation13]   ;;  %s397_s11 = int_to_ptr.vmem [resolvable:$true] %s396_s11 }
  0x25   : > { %s427_s19 = sshll.u32 %s2953_s13, 4  ;;  %s2154_s20 = sadd.s32 4294967294, %s2942_s28   ;;  %s428_s19 = int_to_ptr.vmem [resolvable:$true] %s427_s19 }
  0x26   : > { %s394_s21 = sshll.u32 %s3481_s4, 4  ;;  %s3116_s23 = sadd.s32 1, %s2942_s28   ;;  %s395_s21 = int_to_ptr.hbm [resolvable:$true] %s394_s21 }
  0x27   : > { %2546 = dma.hbm_to_vmem [thread:$0]  (!%p3071_p6), %s395_s21, 1024, %s397_s11, [#allocation9], %s2946_s1, %s2946_s1, %s2947_s12  }
  0x28   : > { %2552 = dma.hbm_to_vmem [thread:$0]  (!%p3071_p6), %s426_s29, 2048, %s428_s19, [#allocation12], %s2946_s1, %s2946_s1, %s2947_s12  }
  0x29   : > { %s36_s24 = ssub.s32 %s2942_s28, %s3116_s23  ;;  %s39_s30 = sadd.s32 1, %s2938_s27 }
  0x2a   : > { %p37_p7 = scmp.eq.s32.totalorder %s36_s24, 0  ;;  %p46_p8 = scmp.ne.s32.totalorder %s2938_s27, %s2934_s26 }
  0x2b   : > { %p47_p9 = scmp.eq.s32.totalorder %s2942_s28, 0  ;;  %p52_p10 = scmp.ne.s32.totalorder %s2934_s26, %s2930_s25 }
  0x2c   : > { %s3127_s14 = scalar_select %p37_p7, %s2938_s27, %s39_s30  }
  0x2d   : > { %p3129_p11 = por %p47_p9, %p46_p8  ;;  %p3135_p12 = por %p53_p1, %p52_p10 }
  0x2e   : > { %p328_p13 = scmp.eq.s32.totalorder %s3054_s15, 1  ;;  %p334_p0 = scmp.eq.s32.totalorder %s2154_s20, 1 }
  0x2f   : > { %p2567_p2 = scmp.lt.s32.totalorder %s2942_s28, 2  ;;  %s456_s12 = sand.u32 1, %s2938_s27  }
  0x30   : > { %p3142_p4 = por %p328_p13, %p46_p8  ;;  %p3146_p6 = por %p334_p0, %p52_p10 }
  0x31   : > { %s2163_s3 = sshll.u32 %s456_s12, 3  ;;  %s2164_s5 = sshll.u32 %s2942_s28, 3 }
  0x32   : > { %s464_s11 = scalar_lea.hbm %s3452_s0, %s2164_s5  ;;  %s460_s13 = scalar_lea.vmem [#allocation2], %s2163_s3 }
  0x33   : > { %s468_s19 = sshll.u32 %s460_s13, 4  ;;  %s466_s24 = sshll.u32 %s464_s11, 4  ;;  %s469_s19 = int_to_ptr.vmem [resolvable:$true] %s468_s19  ;;  %s467_s24 = int_to_ptr.hbm [resolvable:$true] %s466_s24 }
  0x34   : > { %p3156_p7 = pnand %p2567_p2, %p3129_p11  ;;  %s457_s30 = scalar_lea.sflag [#allocation3], %s456_s12 }
  0x35   : > { %s2834_s2 = sshra.s32 %s467_s24, 4  ;;  %s2841_s29 = scalar_lea.hbm %s3452_s0, 16  ;;  %s2835_s2 = int_to_ptr.hbm [resolvable:$true] %s2834_s2 }
  0x36   : > { %s2836_s4 = scalar_lea.hbm %s2835_s2, 8  ;;  %p2838_p9 = pneg %p3156_p7 }
  0x37   : > { %p2837_p8 = scmp.ne.s32.totalorder %s2835_s2, %s2836_s4  ;;  %p2842_p11 = scmp.lt.s32.totalorder %s2835_s2, %s3452_s0 }
  0x38   : > { %p2843_p0 = scmp.lt.s32.totalorder %s2841_s29, %s2836_s4 }
  0x39   : > { %p2839_p10 = pnand %p2838_p9, %p2837_p8 }
  0x3a   : > { %p2844_p2 = por %p2843_p0, %p2842_p11 }
  0x3b   : > { %p2840_p13 = pneg %p2839_p10 }
  0x3d   : > { %p2845_p5 = pnand %p2844_p2, %p2840_p13 }
  0x3f   : > { %2848 = shalt.err (!%p2845_p5)
}
  0x40   : > { %2556 = dma.hbm_to_vmem [thread:$0]  (!%p3156_p7), %s467_s24, 128, %s469_s19, %s457_s30  }
  0x41   : > { %477 = sbr.rel (%p3059_p3) target bundleno = 1941 (0x795), region = 72  ;;  %s3173_s12 = sand.u32 (!%p3059_p3), 1, %s2934_s26  }
  0x42   : > { %s2166_s11 = sshll.u32 (!%p3059_p3), %s3173_s12, 3  ;;  %s480_s13 = scalar_lea.sflag (!%p3059_p3), [#allocation3], %s3173_s12 }
  0x43   : > { %s3179_s2 = scalar_lea.vmem (!%p3059_p3), [#allocation2], %s2166_s11 }
  0x46   : > { %2909 = dma.done.wait (%p3135_p12), %s480_s13, 128  }
  0x47   : > { %2911 = vsyncadd (%p3135_p12), %s480_s13, 4294967168 }
  0x48   : > { %2913 = dma.done.wait (%p53_p1), [#allocation6], 2048  }
  0x49   : > { %2915 = vsyncadd (%p53_p1), [#allocation6], 4294965248 }
  0x4a   : > { %2917 = dma.done.wait (%p53_p1), [#allocation9], 2048  }
  0x4b   : > { %2919 = vsyncadd (%p53_p1), [#allocation9], 4294965248 }
  0x4c   : > { %2921 = dma.done.wait (%p53_p1), [#allocation12], 4096  }
  0x4d   : > { %2923 = vsyncadd (%p53_p1), [#allocation12], 4294963200  ;;  %v2457_v0 = vld [vmem:[#allocation7 + $0x38] sm:$0xff]  ;;  %v2456_v2 = vld [vmem:[#allocation7 + $0x30] sm:$0xff]  ;;  %s2954_s4 = smov 32   ;;  %s2955_s16 = smov 96  }
  0x4e   : > { %v2449_v1 = vld [vmem:[#allocation5 + $0x38] sm:$0xff]  ;;  %701 = vmatpush.bf16.msra.mxu1 %v2457_v0  ;;  %v2448_v3 = vld [vmem:[#allocation5 + $0x30] sm:$0xff]  ;;  %v2455_v5 = vld [vmem:[#allocation7 + $0x28] sm:$0xff]  ;;  %s2956_s1 = smov 64   ;;  %v2957_v35 = vmov 1983009808  }
  0x4f   : > { %624 = vmatpush.bf16.msra.mxu0 %v2449_v1  ;;  %v2465_v4 = vld [vmem:[#allocation8 + $0x38] sm:$0xff]  ;;  %v2447_v6 = vld [vmem:[#allocation5 + $0x28] sm:$0xff]  ;;  %v2464_v7 = vld [vmem:[#allocation8 + $0x30] sm:$0xff]  ;;  %v813_v36 = vunpack.c.l.s4 %v2957_v35  ;;  %v2958_v52 = vmov 1934713408   ;;  %vm822_vm0 = vcmask 1047556  }
  0x50   : > { %778 = vmatpush.bf16.msra.mxu2 %v2465_v4  ;;  %v2454_v8 = vld [vmem:[#allocation7 + $0x20] sm:$0xff]  ;;  %v2463_v10 = vld [vmem:[#allocation8 + $0x28] sm:$0xff]  ;;  %v2453_v11 = vld [vmem:[#allocation7 + $0x18] sm:$0xff]  ;;  %v827_v53 = vunpack.c.l.s4 %v2958_v52  ;;  %vm1158_vm1 = vcmask 261120   ;;  %vm1279_vm2 = vcmask 1043456   ;;  %vm1235_vm3 = vcmask 64512  }
  0x51   : > { %v2446_v9 = vld [vmem:[#allocation5 + $0x20] sm:$0xff]  ;;  %v2445_v12 = vld [vmem:[#allocation5 + $0x18] sm:$0xff]  ;;  %v2452_v14 = vld [vmem:[#allocation7 + $0x10] sm:$0xff]  ;;  %v3216_v40 = vunpack.c.0.s8 %v813_v36  ;;  %s2439_s22 = sshll.u32 %s3054_s15, 3  ;;  %s3490_s19 = sld [smem:[#allocation27_spill]] }
  0x52   : > { %702 = vmatpush.bf16.msra.mxu1 %v2456_v2  ;;  %v2462_v13 = vld [vmem:[#allocation8 + $0x20] sm:$0xff]  ;;  %v2444_v15 = vld [vmem:[#allocation5 + $0x10] sm:$0xff]  ;;  %v2461_v16 = vld [vmem:[#allocation8 + $0x18] sm:$0xff]  ;;  %v3222_v2 = vunpack.c.0.s8 %v827_v53  ;;  %s3491_s30 = sld [smem:[#allocation26_spill]]  ;;  %s556_s3 = scalar_lea.vmem [#allocation14], %s2166_s11 }
  0x53   : > { %625 = vmatpush.bf16.msra.mxu0 %v2448_v3  ;;  %v2451_v17 = vld [vmem:[#allocation7 + $0x8] sm:$0xff]  ;;  %v2450_v19 = vld [vmem:[#allocation7] sm:$0xff]  ;;  %v3198_v20 = vld [vmem:[%s3179_s2] sm:$0xff]  ;;  %s2024_s5 = sshll.u32 %s556_s3, 4  ;;  %s2012_s17 = scalar_lea.sflag [#allocation4], %s3173_s12  ;;  %s2025_s5 = int_to_ptr.vmem [resolvable:$true] %s2024_s5 }
  0x54   : > { %779 = vmatpush.bf16.msra.mxu2 %v2464_v7  ;;  %v2443_v18 = vld [vmem:[#allocation5 + $0x8] sm:$0xff]  ;;  %v2442_v21 = vld [vmem:[#allocation5] sm:$0xff]  ;;  %v559_v22 = vpack.c.bf16 %v3198_v20, %v3198_v20  ;;  %v2460_v23 = vld [vmem:[#allocation8 + $0x10] sm:$0xff] }
  0x55   : > { %v2459_v24 = vld [vmem:[#allocation8 + $0x8] sm:$0xff]  ;;  %v2458_v25 = vld [vmem:[#allocation8] sm:$0xff] }
  0x56   : > { %703 = vmatpush.bf16.msra.mxu1 %v2455_v5 }
  0x57   : > { %626 = vmatpush.bf16.msra.mxu0 %v2447_v6  ;;  %s2022_s24 = scalar_lea.hbm %s3490_s19, %s2439_s22 }
  0x58   : > { %780 = vmatpush.bf16.msra.mxu2 %v2463_v10  ;;  %s2026_s29 = sshll.u32 %s2022_s24, 4  ;;  %s2027_s29 = int_to_ptr.hbm [resolvable:$true] %s2026_s29 }
  0x59   : > { %s2878_s22 = sshra.s32 %s2027_s29, 4  ;;  %s2879_s22 = int_to_ptr.hbm [resolvable:$true] %s2878_s22 }
  0x5a   : > { %704 = vmatpush.bf16.msra.mxu1 %v2454_v8  ;;  %s2880_s13 = scalar_lea.hbm %s2879_s22, 8  ;;  %p2885_p12 = scmp.lt.s32.totalorder %s2879_s22, %s3490_s19 }
  0x5b   : > { %627 = vmatpush.bf16.msra.mxu0 %v2446_v9  ;;  %p2881_p1 = scmp.ne.s32.totalorder %s2879_s22, %s2880_s13 }
  0x5c   : > { %781 = vmatpush.bf16.msra.mxu2 %v2462_v13 }
  0x5d   : > { %p2882_p3 = pnand %p2881_p1, %p3142_p4 }
  0x5e   : > { %705 = vmatpush.bf16.msra.mxu1 %v2453_v11 }
  0x5f   : > { %628 = vmatpush.bf16.msra.mxu0 %v2445_v12  ;;  %p2883_p5 = pneg %p2882_p3 }
  0x60   : > { %782 = vmatpush.bf16.msra.mxu2 %v2461_v16 }
  0x62   : > { %706 = vmatpush.bf16.msra.mxu1 %v2452_v14 }
  0x63   : > { %629 = vmatpush.bf16.msra.mxu0 %v2444_v15 }
  0x64   : > { %783 = vmatpush.bf16.msra.mxu2 %v2460_v23 }
  0x66   : > { %707 = vmatpush.bf16.msra.mxu1 %v2451_v17 }
  0x67   : > { %630 = vmatpush.bf16.msra.mxu0 %v2443_v18 }
  0x68   : > { %784 = vmatpush.bf16.msra.mxu2 %v2459_v24 }
  0x6a   : > { %708 = vmatpush.bf16.msra.mxu1 %v2450_v19 }
  0x6b   : > { %631 = vmatpush.bf16.msra.mxu0 %v2442_v21 }
  0x6c   : > { %785 = vmatpush.bf16.msra.mxu2 %v2458_v25 }
  0x6d   : > { %709 = vmatmul.bf16.vlgmr.msra.gmra.mxu1 %v559_v22 }
  0x6e   : > { %632 = vmatmul.bf16.vlgmr.msra.gmra.mxu0 %v559_v22 }
  0x6f   : > { %786 = vmatmul.bf16.vlgmr.msra.gmra.mxu2 %v559_v22 }
  0xea   : > { %v710_v26 = vpop.f32.mrf.mxu1 }
  0xeb   : > { %v633_v27 = vpop.f32.mrf.mxu0  ;;  %v914_v28 = vpack.c.bf16 %v710_v26, %v710_v26 }
  0xec   : > { %v791_v29 = vpack.c.bf16 %v633_v27, %v633_v27 }
  0xed   : > { %920 = vrot.lane.b32.xlu1 %v914_v28, %s2954_s4  ;;  %916 = vrot.lane.b32.xlu0 %v914_v28, %s2955_s16  ;;  %v925_v41 = vshrl.u32 %v914_v28, 16 }
  0xee   : > { %795 = vrot.lane.b32.xlu2 %v791_v29, %s2956_s1  ;;  %v802_v58 = vshrl.u32 %v791_v29, 16 }
  0xf2   : > { %v712_v30 = vpop.f32.mrf.mxu1  ;;  %v787_v33 = vpop.f32.mrf.mxu2 }
  0xf3   : > { %v635_v31 = vpop.f32.mrf.mxu0  ;;  %v3208_v34 = vpack.c.bf16 %v787_v33, %v787_v33 }
  0xf5   : > { %918 = vrot.lane.b32.xlu0 %v914_v28, %s2956_s1  ;;  %793 = vrot.lane.b32.xlu1 %v791_v29, %s2955_s16 }
  0xf6   : > { %797 = vrot.lane.b32.xlu2 %v791_v29, %s2954_s4 }
  0xfa   : > { %v789_v47 = vpop.f32.mrf.mxu2 }
  0xfd   : > { %1038 = vrot.lane.b32.xlu0 %v3208_v34, %s2955_s16  ;;  %1040 = vrot.lane.b32.xlu1 %v3208_v34, %s2956_s1 }
  0xfe   : > { %1042 = vrot.lane.b32.xlu2 %v3208_v34, %s2954_s4 }
 0x148   : > { %v796_v32 = vpop.permute.xlu2 %795 }
 0x149   : > { %v808_v43 = vshrl.u32 %v796_v32, 16 }
 0x150   : > { %v798_v37 = vpop.permute.xlu2 %797 }
 0x151   : > { %v807_v44 = vpack.i.b16 %v798_v37, %v796_v32  ;;  %v809_v45 = vshrl.u32 %v798_v37, 16 }
 0x153   : > { %v810_v49 = vpack.i.b16 %v809_v45, %v808_v43  ;;  %v820_v50 = vperm.slane %v807_v44, %v3216_v40 }
 0x155   : > { %v821_v63 = vrot.slane %v820_v50, 4  ;;  %v847_v0 = vperm.slane %v810_v49, %v3216_v40 }
 0x157   : > { %v848_v12 = vrot.slane %v847_v0, 4 }
 0x15f   : > { %v921_v38 = vpop.permute.xlu1 %920  ;;  %v917_v39 = vpop.permute.xlu0 %916 }
 0x160   : > { %v926_v42 = vshrl.u32 %v917_v39, 16  ;;  %v924_v46 = vpack.i.b16 %v917_v39, %v914_v28  ;;  %v932_v54 = vshrl.u32 %v921_v38, 16 }
 0x162   : > { %v927_v48 = vpack.i.b16 %v926_v42, %v925_v41  ;;  %v938_v51 = vperm.slane %v924_v46, %v3216_v40 }
 0x164   : > { %v964_v55 = vperm.slane %v927_v48, %v3216_v40  ;;  %v946_v1 = vrot.slane %v938_v51, 4 }
 0x166   : > { %v972_v7 = vrot.slane %v964_v55, 4 }
 0x167   : > { %v919_v56 = vpop.permute.xlu0 %918  ;;  %v794_v57 = vpop.permute.xlu1 %793 }
 0x168   : > { %v930_v59 = vpack.i.b16 %v921_v38, %v919_v56  ;;  %v931_v60 = vshrl.u32 %v919_v56, 16  ;;  %v801_v61 = vpack.i.b16 %v794_v57, %v791_v29  ;;  %v803_v62 = vshrl.u32 %v794_v57, 16 }
 0x16a   : > { %v933_v3 = vpack.i.b16 %v932_v54, %v931_v60  ;;  %v943_v4 = vperm.slane %v930_v59, %v3216_v40  ;;  %v804_v5 = vpack.i.b16 %v803_v62, %v802_v58  ;;  %v815_v6 = vperm.slane %v801_v61, %v3216_v40 }
 0x16c   : > { %v944_v8 = vrot.slane %v943_v4, 4  ;;  %v947_v9 = vsel %vm822_vm0, %v943_v4, %v946_v1  ;;  %v969_v10 = vperm.slane %v933_v3, %v3216_v40  ;;  %v823_v11 = vsel %vm822_vm0, %v821_v63, %v815_v6 }
 0x16d   : > { %v955_v13 = vperm.slane %v947_v9, %v3222_v2  ;;  %v824_v14 = vrot.slane %v815_v6, 4  ;;  %v842_v15 = vperm.slane %v804_v5, %v3216_v40  ;;  %v829_v19 = vperm.slane %v823_v11, %v3222_v2 }
 0x16e   : > { %v945_v16 = vsel %vm822_vm0, %v944_v8, %v938_v51  ;;  %v970_v17 = vrot.slane %v969_v10, 4  ;;  %v973_v18 = vsel %vm822_vm0, %v969_v10, %v972_v7 }
 0x16f   : > { %v951_v21 = vperm.slane %v945_v16, %v3222_v2  ;;  %v958_v22 = vrot.slane %v955_v13, 4  ;;  %v981_v23 = vperm.slane %v973_v18, %v3222_v2  ;;  %v825_v24 = vsel %vm822_vm0, %v820_v50, %v824_v14 }
 0x170   : > { %v971_v25 = vsel %vm822_vm0, %v970_v17, %v964_v55  ;;  %v833_v26 = vperm.slane %v825_v24, %v3222_v2  ;;  %v849_v27 = vsel %vm822_vm0, %v848_v12, %v842_v15  ;;  %v834_v33 = vrot.slane %v829_v19, 4 }
 0x171   : > { %v956_v28 = vrot.slane %v951_v21, 4  ;;  %v959_v29 = vsel %vm822_vm0, 0, %v958_v22  ;;  %v977_v30 = vperm.slane %v971_v25, %v3222_v2  ;;  %v984_v31 = vrot.slane %v981_v23, 4 }
 0x172   : > { %v991_v32 = vrot.slane %v959_v29, 4  ;;  %v836_v35 = vrot.slane %v833_v26, 4  ;;  %v850_v36 = vrot.slane %v842_v15, 4  ;;  %v855_v41 = vperm.slane %v849_v27, %v3222_v2 }
 0x173   : > { %v957_v37 = vsel %vm822_vm0, 0, %v956_v28  ;;  %v982_v38 = vrot.slane %v977_v30, 4  ;;  %v985_v39 = vsel %vm822_vm0, 0, %v984_v31  ;;  %v835_v48 = vsel %vm822_vm0, 0, %v834_v33 }
 0x174   : > { %v1010_v42 = vrot.slane %v985_v39, 4  ;;  %v837_v43 = vsel %vm822_vm0, 0, %v836_v35  ;;  %v851_v44 = vsel %vm822_vm0, %v847_v0, %v850_v36  ;;  %v986_v49 = vsel %vm822_vm0, %v958_v22, %v951_v21 }
 0x175   : > { %v859_v45 = vperm.slane %v851_v44, %v3222_v2  ;;  %v869_v46 = vrot.slane %v837_v43, 4  ;;  %v983_v47 = vsel %vm822_vm0, 0, %v982_v38  ;;  %v992_v50 = vsel %vm822_vm0, %v991_v32, %v957_v37 }
 0x176   : > { %v1011_v51 = vsel %vm822_vm0, %v1010_v42, %v983_v47  ;;  %v860_v52 = vrot.slane %v855_v41, 4  ;;  %v996_v54 = vperm.slane %v992_v50, %v3216_v40  ;;  %v1005_v55 = vsel %vm822_vm0, %v984_v31, %v977_v30  ;;  %v1043_v50 = vpop.permute.xlu2 %1042 }
 0x177   : > { %v862_v53 = vrot.slane %v859_v45, 4  ;;  %v864_v56 = vsel %vm822_vm0, %v836_v35, %v829_v19  ;;  %v1015_v57 = vperm.slane %v1011_v51, %v3216_v40  ;;  %v870_v58 = vsel %vm822_vm0, %v869_v46, %v835_v48 }
 0x178   : > { %v990_v60 = vperm.slane %v986_v49, %v3216_v40  ;;  %v997_v61 = vrot.slane %v996_v54, 4  ;;  %v874_v62 = vperm.slane %v870_v58, %v3216_v40  ;;  %v1009_v0 = vperm.slane %v1005_v55, %v3216_v40  ;;  %v1041_v54 = vpop.permute.xlu1 %1040 }
 0x179   : > { %v863_v59 = vsel %vm822_vm0, 0, %v862_v53  ;;  %v1016_v1 = vrot.slane %v1015_v57, 4  ;;  %v861_v3 = vsel %vm822_vm0, 0, %v860_v52  ;;  %v868_v5 = vperm.slane %v864_v56, %v3216_v40 }
 0x17a   : > { %v888_v63 = vrot.slane %v863_v59, 4  ;;  %v998_v4 = vsel %vm822_vm0, %v997_v61, %v990_v60  ;;  %v875_v6 = vrot.slane %v874_v62, 4  ;;  %v883_v12 = vsel %vm822_vm0, %v862_v53, %v855_v41  ;;  %v1039_v53 = vpop.permute.xlu0 %1038 }
 0x17b   : > { %v1002_v7 = vperm.slane %v998_v4, %v3222_v2  ;;  %v1017_v8 = vsel %vm822_vm0, %v1016_v1, %v1009_v0  ;;  %v887_v23 = vperm.slane %v883_v12, %v3216_v40  ;;  %v1047_v51 = vshrl.u32 %v3208_v34, 16 }
 0x17c   : > { %v889_v9 = vsel %vm822_vm0, %v888_v63, %v861_v3  ;;  %v1021_v10 = vperm.slane %v1017_v8, %v3222_v2  ;;  %v876_v11 = vsel %vm822_vm0, %v875_v6, %v868_v5  ;;  %v1054_v52 = vshrl.u32 %v1043_v50, 16 }
 0x17d   : > { %v893_v13 = vperm.slane %v889_v9, %v3216_v40  ;;  %v1027_v14 = vshrl.u32 %v1002_v7, 16  ;;  %v1003_v15 = vrot.slane %v1002_v7, 4  ;;  %v880_v16 = vperm.slane %v876_v11, %v3222_v2 }
 0x17e   : > { %v1026_v17 = vpack.i.b16 %v1021_v10, %v1002_v7  ;;  %v1028_v18 = vshrl.u32 %v1021_v10, 16  ;;  %v1022_v19 = vrot.slane %v1021_v10, 4  ;;  %v1046_v55 = vpack.i.b16 %v1039_v53, %v3208_v34 }
 0x17f   : > { %v894_v21 = vrot.slane %v893_v13, 4  ;;  %v1004_v22 = vsel %vm822_vm0, 0, %v1003_v15  ;;  %v881_v32 = vrot.slane %v880_v16, 4  ;;  %v905_v47 = vshrl.u32 %v880_v16, 16 }
 0x180   : > { %v1163_v24 = vsel %vm1158_vm1, %v1026_v17, 0  ;;  %v1029_v25 = vpack.i.b16 %v1028_v18, %v1027_v14  ;;  %v1023_v26 = vsel %vm822_vm0, 0, %v1022_v19  ;;  %v1033_v27 = vshrl.u32 %v1004_v22, 16 }
 0x181   : > { %1172 = vmatpush.bf16.xpose.msra.mxu3 %v1163_v24  ;;  %v1034_v28 = vshrl.u32 %v1023_v26, 16  ;;  %v895_v29 = vsel %vm822_vm0, %v894_v21, %v887_v23  ;;  %v1032_v35 = vpack.i.b16 %v1023_v26, %v1004_v22  ;;  %v882_v39 = vsel %vm822_vm0, 0, %v881_v32 }
 0x182   : > { %v1182_v30 = vsel %vm1158_vm1, %v1029_v25, 0  ;;  %v899_v31 = vperm.slane %v895_v29, %v3222_v2  ;;  %v911_v44 = vshrl.u32 %v882_v39, 16  ;;  %v1048_v56 = vshrl.u32 %v1039_v53, 16 }
 0x183   : > { %v1035_v33 = vpack.i.b16 %v1034_v28, %v1033_v27  ;;  %v1201_v43 = vsel %vm1158_vm1, %v1032_v35, 0  ;;  %v1052_v57 = vpack.i.b16 %v1043_v50, %v1041_v54  ;;  %v1053_v58 = vshrl.u32 %v1041_v54, 16 }
 0x184   : > { %v900_v36 = vrot.slane %v899_v31, 4  ;;  %v904_v38 = vpack.i.b16 %v899_v31, %v880_v16  ;;  %v906_v46 = vshrl.u32 %v899_v31, 16  ;;  %v1049_v59 = vpack.i.b16 %v1048_v56, %v1047_v51 }
 0x185   : > { %v1220_v37 = vsel %vm1158_vm1, %v1035_v33, 0  ;;  %v1060_v60 = vperm.slane %v1046_v55, %v3216_v40  ;;  %v1055_v61 = vpack.i.b16 %v1054_v52, %v1053_v58  ;;  %v1065_v62 = vperm.slane %v1052_v57, %v3216_v40 }
 0x186   : > { %1229 = vmatpush.bf16.xpose.msrb.mxu0 %v1220_v37  ;;  %v901_v41 = vsel %vm822_vm0, 0, %v900_v36  ;;  %v907_v48 = vpack.i.b16 %v906_v46, %v905_v47  ;;  %v1086_v0 = vperm.slane %v1049_v59, %v3216_v40 }
 0x187   : > { %v912_v42 = vshrl.u32 %v901_v41, 16  ;;  %v910_v49 = vpack.i.b16 %v901_v41, %v882_v39  ;;  %v1068_v63 = vrot.slane %v1060_v60, 4  ;;  %v1066_v1 = vrot.slane %v1065_v62, 4 }
 0x188   : > { %2270 = vmatmul.msk.bf16.vlgmr.msra.gmra.mxu3 %vm1158_vm1, %v904_v38  ;;  %v1091_v3 = vperm.slane %v1055_v61, %v3216_v40  ;;  %v1094_v4 = vrot.slane %v1086_v0, 4 }
 0x189   : > { %1191 = vmatpush.bf16.xpose.msrb.mxu3 %v1182_v30  ;;  %v913_v45 = vpack.i.b16 %v912_v42, %v911_v44  ;;  %v1069_v5 = vsel %vm822_vm0, %v1065_v62, %v1068_v63  ;;  %v1067_v34 = vsel %vm822_vm0, %v1066_v1, %v1060_v60 }
 0x18a   : > { %v1092_v6 = vrot.slane %v1091_v3, 4  ;;  %v1077_v7 = vperm.slane %v1069_v5, %v3222_v2  ;;  %v1095_v8 = vsel %vm822_vm0, %v1091_v3, %v1094_v4  ;;  %v1073_v11 = vperm.slane %v1067_v34, %v3222_v2 }
 0x18b   : > { %v1103_v10 = vperm.slane %v1095_v8, %v3222_v2 }
 0x18c   : > { %v1093_v9 = vsel %vm822_vm0, %v1092_v6, %v1086_v0  ;;  %v1080_v12 = vrot.slane %v1077_v7, 4  ;;  %v1078_v15 = vrot.slane %v1073_v11, 4 }
 0x18d   : > { %2273 = vmatmul.msk.bf16.vlgmr.msrb.gmra.mxu0 %vm1158_vm1, %v913_v45  ;;  %v1106_v13 = vrot.slane %v1103_v10, 4  ;;  %v1099_v14 = vperm.slane %v1093_v9, %v3222_v2 }
 0x18e   : > { %v1081_v16 = vsel %vm822_vm0, 0, %v1080_v12  ;;  %v1079_v22 = vsel %vm822_vm0, 0, %v1078_v15  ;;  %v1108_v28 = vsel %vm822_vm0, %v1080_v12, %v1073_v11 }
 0x18f   : > { %v1107_v17 = vsel %vm822_vm0, 0, %v1106_v13  ;;  %v1104_v18 = vrot.slane %v1099_v14, 4  ;;  %v1113_v19 = vrot.slane %v1081_v16, 4  ;;  %v1127_v29 = vsel %vm822_vm0, %v1106_v13, %v1099_v14 }
 0x190   : > { %v1132_v21 = vrot.slane %v1107_v17, 4  ;;  %v1112_v30 = vperm.slane %v1108_v28, %v3216_v40  ;;  %v1131_v32 = vperm.slane %v1127_v29, %v3216_v40 }
 0x191   : > { %1210 = vmatpush.bf16.xpose.msra.mxu3 %v1201_v43  ;;  %v1105_v23 = vsel %vm822_vm0, 0, %v1104_v18  ;;  %v1114_v24 = vsel %vm822_vm0, %v1113_v19, %v1079_v22 }
 0x192   : > { %v1133_v25 = vsel %vm822_vm0, %v1132_v21, %v1105_v23  ;;  %v1118_v26 = vperm.slane %v1114_v24, %v3216_v40 }
 0x193   : > { %v1137_v27 = vperm.slane %v1133_v25, %v3216_v40 }
 0x194   : > { %v1119_v31 = vrot.slane %v1118_v26, 4 }
 0x195   : > { %v1138_v33 = vrot.slane %v1137_v27, 4 }
 0x196   : > { %v1120_v35 = vsel %vm822_vm0, %v1119_v31, %v1112_v30 }
 0x197   : > { %v1139_v36 = vsel %vm822_vm0, %v1138_v33, %v1131_v32  ;;  %v1124_v37 = vperm.slane %v1120_v35, %v3222_v2 }
 0x198   : > { %2271 = vmatmul.msk.bf16.vlgmr.msrb.gmra.mxu3 %vm1158_vm1, %v907_v48  ;;  %v1143_v38 = vperm.slane %v1139_v36, %v3222_v2 }
 0x199   : > { %v1149_v41 = vshrl.u32 %v1124_v37, 16  ;;  %v1125_v43 = vrot.slane %v1124_v37, 4 }
 0x19a   : > { %v1148_v39 = vpack.i.b16 %v1143_v38, %v1124_v37  ;;  %v1150_v42 = vshrl.u32 %v1143_v38, 16  ;;  %v1144_v44 = vrot.slane %v1143_v38, 4 }
 0x19b   : > { %v1126_v47 = vsel %vm822_vm0, 0, %v1125_v43 }
 0x19c   : > { %v1281_v45 = vsel %vm1279_vm2, %v1148_v39, 0  ;;  %v1151_v46 = vpack.i.b16 %v1150_v42, %v1149_v41  ;;  %v1145_v48 = vsel %vm822_vm0, 0, %v1144_v44 }
 0x19d   : > { %1290 = vmatpush.bf16.msrb.mxu2 %v1281_v45  ;;  %v1154_v51 = vpack.i.b16 %v1145_v48, %v1126_v47  ;;  %v1156_v52 = vshrl.u32 %v1145_v48, 16 }
 0x19e   : > { %v1300_v50 = vsel %vm1279_vm2, %v1151_v46, 0 }
 0x19f   : > { %v1319_v53 = vsel %vm1279_vm2, %v1154_v51, 0 }
 0x1a0   : > { %1328 = vmatpush.bf16.msrb.mxu3 %v1319_v53 }
 0x1a1   : > { %1309 = vmatpush.bf16.msra.mxu2 %v1300_v50 }
 0x1a8   : > { %2272 = vmatmul.msk.bf16.vlgmr.msra.gmra.mxu3 %vm1158_vm1, %v910_v49  ;;  %v1155_v49 = vshrl.u32 %v1126_v47, 16 }
 0x1aa   : > { %v1157_v54 = vpack.i.b16 %v1156_v52, %v1155_v49 }
 0x1ac   : > { %v1338_v55 = vsel %vm1279_vm2, %v1157_v54, 0 }
 0x1ad   : > { %1347 = vmatpush.bf16.msra.mxu0 %v1338_v55 }
 0x20a   : > { %v1231_v56 = vpop.f32.mrf.mxu0 }
 0x20b   : > { %v1174_v57 = vpop.f32.mrf.mxu3  ;;  %v1245_v0 = vsel %vm1235_vm3, %v1231_v56, -inf }
 0x20c   : > { %v1236_v58 = vsel %vm1235_vm3, %v1174_v57, -inf }
 0x20d   : > { %1237 = vmax.xlane.f32.xlu0 %v1236_v58 }
 0x212   : > { %v1233_v59 = vpop.f32.mrf.mxu0 }
 0x213   : > { %v1176_v60 = vpop.f32.mrf.mxu3 }
 0x21b   : > { %v1193_v61 = vpop.f32.mrf.mxu3 }
 0x21c   : > { %v1239_v62 = vsel %vm1235_vm3, %v1193_v61, -inf }
 0x21d   : > { %1240 = vmax.xlane.f32.xlu2 %v1239_v62 }
 0x223   : > { %v1195_v63 = vpop.f32.mrf.mxu3 }
 0x225   : > { %1246 = vmax.xlane.f32.xlu2 %v1245_v0 }
 0x22b   : > { %v1212_v1 = vpop.f32.mrf.mxu3 }
 0x22c   : > { %v1242_v3 = vsel %vm1235_vm3, %v1212_v1, -inf }
 0x22d   : > { %1243 = vmax.xlane.f32.xlu1 %v1242_v3 }
 0x233   : > { %v1214_v4 = vpop.f32.mrf.mxu3 }
 0x280   : > { %v1238_v5 = vpop.xlane.xlu0 %1237 }
 0x281   : > { %v1248_v6 = vsub.f32 %v1174_v57, %v1238_v5 }
 0x283   : > { %v1252_v34 = vmul.f32 1.442695, %v1248_v6 }
 0x285   : > { %2628 = vpow2.f32 %v1252_v34 }
 0x28b   : > { %v2629_v7 = vpop.eup %2628 }
 0x28c   : > { %v1260_v8 = vsel %vm1235_vm3, %v2629_v7, 0.0  ;;  %v1272_v9 = vpack.c.bf16 %v2629_v7, %v2629_v7 }
 0x28d   : > { %1261 = vadd.xlane.f32.xlu1 %v1260_v8 }
 0x28e   : > { %2274 = vmatmul.msk.bf16.vlgmr.msrb.gmra.mxu2 %vm1235_vm3, %v1272_v9 }
 0x290   : > { %v1241_v10 = vpop.xlane.xlu2 %1240 }
 0x291   : > { %v1249_v11 = vsub.f32 %v1193_v61, %v1241_v10 }
 0x293   : > { %v1254_v12 = vmul.f32 1.442695, %v1249_v11 }
 0x295   : > { %2630 = vpow2.f32 %v1254_v12 }
 0x298   : > { %v1247_v13 = vpop.xlane.xlu2 %1246 }
 0x299   : > { %v1251_v14 = vsub.f32 %v1231_v56, %v1247_v13  ;;  %v2473_v13 = vld [vmem:[#allocation10 + $0x38] sm:$0xff] }
 0x29a   : > { %1606 = vmatpush.bf16.msrb.mxu1 %v2473_v13 }
 0x29b   : > { %v2631_v15 = vpop.eup %2630  ;;  %v1258_v16 = vmul.f32 1.442695, %v1251_v14 }
 0x29c   : > { %v1273_v17 = vpack.c.bf16 %v2631_v15, %v2631_v15  ;;  %v1263_v28 = vsel %vm1235_vm3, %v2631_v15, 0.0 }
 0x29d   : > { %2632 = vpow2.f32 %v1258_v16 }
 0x29e   : > { %2275 = vmatmul.msk.bf16.vlgmr.msra.gmra.mxu2 %vm1235_vm3, %v1273_v17 }
 0x2a0   : > { %v1244_v18 = vpop.xlane.xlu1 %1243 }
 0x2a1   : > { %v1250_v19 = vsub.f32 %v1212_v1, %v1244_v18 }
 0x2a3   : > { %v2633_v21 = vpop.eup %2632  ;;  %v1256_v22 = vmul.f32 1.442695, %v1250_v19 }
 0x2a4   : > { %v1275_v23 = vpack.c.bf16 %v2633_v21, %v2633_v21  ;;  %v1269_v24 = vsel %vm1235_vm3, %v2633_v21, 0.0 }
 0x2a5   : > { %2634 = vpow2.f32 %v1256_v22  ;;  %1270 = vadd.xlane.f32.xlu2 %v1269_v24 }
 0x2a6   : > { %2277 = vmatmul.msk.bf16.vlgmr.msra.gmra.mxu0 %vm1235_vm3, %v1275_v23 }
 0x2ab   : > { %v2635_v25 = vpop.eup %2634 }
 0x2ac   : > { %v1274_v26 = vpack.c.bf16 %v2635_v25, %v2635_v25  ;;  %v1266_v27 = vsel %vm1235_vm3, %v2635_v25, 0.0 }
 0x2ad   : > { %1267 = vadd.xlane.f32.xlu0 %v1266_v27 }
 0x2ae   : > { %2276 = vmatmul.msk.bf16.vlgmr.msrb.gmra.mxu3 %vm1235_vm3, %v1274_v26 }
 0x2b5   : > { %1264 = vadd.xlane.f32.xlu0 %v1263_v28 }
 0x300   : > { %v1262_v29 = vpop.xlane.xlu1 %1261 }
 0x301   : > { %2636 = vrcp.f32 %v1262_v29  ;;  %v1364_v47 = vand.u32 2147483648, %v1262_v29  ;;  %vm1358_vm5 = vweird.f32 %v1262_v29  ;;  %v1362_v51 = vand.u32 2147483647, %v1262_v29 }
 0x303   : > { %v1365_v55 = vor.u32 1.1754944e-38, %v1364_v47  ;;  %vm1363_vm9 = vcmp.eq.f32.partialorder %v1362_v51, 8.507059e+37 }
 0x307   : > { %v2637_v31 = vpop.eup %2636 }
 0x308   : > { %v1354_v35 = vmul.f32 %v2637_v31, %v1262_v29  ;;  %vm1359_vm4 = vweird.f32 %v2637_v31 }
 0x309   : > { %vm1360_vm6 = vmor %vm1358_vm5, %vm1359_vm4 }
 0x30a   : > { %v1355_v37 = vsub.f32 1.0, %v1354_v35 }
 0x30c   : > { %v1356_v42 = vmul.f32 %v2637_v31, %v1355_v37 }
 0x30e   : > { %v1357_v46 = vadd.f32 %v2637_v31, %v1356_v42 }
 0x310   : > { %v1361_v54 = vsel %vm1360_vm6, %v2637_v31, %v1357_v46  ;;  %vm1537_vm6 = vcmask 523264  }
 0x311   : > { %v1292_v30 = vpop.f32.mrf.mxu2  ;;  %v1366_v62 = vsel %vm1363_vm9, %v1365_v55, %v1361_v54 }
 0x312   : > { %v1409_v7 = vmul.f32 %v1366_v62, %v1292_v30 }
 0x314   : > { %v1416_v19 = vrot.slane %v1409_v7, 4 }
 0x318   : > { %v1271_v32 = vpop.xlane.xlu2 %1270 }
 0x319   : > { %2638 = vrcp.f32 %v1271_v32  ;;  %v1294_v33 = vpop.f32.mrf.mxu2  ;;  %vm1400_vm10 = vweird.f32 %v1271_v32  ;;  %v1406_v61 = vand.u32 2147483648, %v1271_v32  ;;  %v1404_v0 = vand.u32 2147483647, %v1271_v32 }
 0x31b   : > { %v1407_v8 = vor.u32 1.1754944e-38, %v1406_v61  ;;  %vm1405_vm15 = vcmp.eq.f32.partialorder %v1404_v0, 8.507059e+37 }
 0x31f   : > { %v2639_v36 = vpop.eup %2638 }
 0x320   : > { %v1396_v38 = vmul.f32 %v2639_v36, %v1271_v32  ;;  %v1268_v39 = vpop.xlane.xlu0 %1267  ;;  %vm1401_vm7 = vweird.f32 %v2639_v36 }
 0x321   : > { %2640 = vrcp.f32 %v1268_v39  ;;  %v3336_v41 = vpop.f32.mrf.mxu2  ;;  %v1392_v57 = vand.u32 2147483648, %v1268_v39  ;;  %v1390_v60 = vand.u32 2147483647, %v1268_v39  ;;  %vm3338_vm11 = vmor %vm1400_vm10, %vm1401_vm7  ;;  %vm1386_vm12 = vweird.f32 %v1268_v39 }
 0x322   : > { %v1397_v44 = vsub.f32 1.0, %v1396_v38  ;;  %vm1539_vm7 = vcmask 785408  }
 0x323   : > { %v1349_v43 = vpop.f32.mrf.mxu0  ;;  %v1393_v4 = vor.u32 1.1754944e-38, %v1392_v57  ;;  %vm1391_vm14 = vcmp.eq.f32.partialorder %v1390_v60, 8.507059e+37 }
 0x324   : > { %v1398_v49 = vmul.f32 %v2639_v36, %v1397_v44 }
 0x326   : > { %v1399_v58 = vadd.f32 %v2639_v36, %v1398_v49 }
 0x327   : > { %v2641_v45 = vpop.eup %2640 }
 0x328   : > { %v1382_v48 = vmul.f32 %v2641_v45, %v1268_v39  ;;  %v1265_v50 = vpop.xlane.xlu0 %1264  ;;  %vm1387_vm8 = vweird.f32 %v2641_v45  ;;  %v1403_v5 = vsel %vm3338_vm11, %v2639_v36, %v1399_v58 }
 0x329   : > { %2642 = vrcp.f32 %v1265_v50  ;;  %v1313_v52 = vpop.f32.mrf.mxu2  ;;  %vm1388_vm13 = vmor %vm1386_vm12, %vm1387_vm8  ;;  %v1408_v14 = vsel %vm1405_vm15, %v1407_v8, %v1403_v5  ;;  %v1378_v15 = vand.u32 2147483648, %v1265_v50  ;;  %v1376_v17 = vand.u32 2147483647, %v1265_v50 }
 0x32a   : > { %v1383_v53 = vsub.f32 1.0, %v1382_v48  ;;  %v1412_v21 = vmul.f32 %v1408_v14, %v1349_v43  ;;  %vm1372_vm3 = vweird.f32 %v1265_v50 }
 0x32b   : > { %v1351_v56 = vpop.f32.mrf.mxu0  ;;  %v1379_v24 = vor.u32 1.1754944e-38, %v1378_v15  ;;  %vm1377_vm5 = vcmp.eq.f32.partialorder %v1376_v17, 8.507059e+37 }
 0x32c   : > { %v1384_v59 = vmul.f32 %v2641_v45, %v1383_v53  ;;  %v1426_v30 = vrot.slane %v1412_v21, 4 }
 0x32e   : > { %v1385_v1 = vadd.f32 %v2641_v45, %v1384_v59 }
 0x32f   : > { %v2643_v3 = vpop.eup %2642 }
 0x330   : > { %v1368_v6 = vmul.f32 %v2643_v3, %v1265_v50  ;;  %v1389_v34 = vsel %vm1388_vm13, %v2641_v45, %v1385_v1  ;;  %vm1373_vm2 = vweird.f32 %v2643_v3 }
 0x331   : > { %v1330_v9 = vpop.f32.mrf.mxu3  ;;  %v1394_v10 = vsel %vm1391_vm14, %v1393_v4, %v1389_v34  ;;  %vm1374_vm4 = vmor %vm1372_vm3, %vm1373_vm2 }
 0x332   : > { %v1369_v11 = vsub.f32 1.0, %v1368_v6  ;;  %v1411_v12 = vmul.f32 %v1394_v10, %v1330_v9 }
 0x334   : > { %v1370_v16 = vmul.f32 %v2643_v3, %v1369_v11  ;;  %v1413_v18 = vrot.slane %v1411_v12, 4  ;;  %v1417_v26 = vsel %vm822_vm0, %v1411_v12, %v1416_v19 }
 0x335   : > { %v1425_v32 = vperm.slane %v1417_v26, %v3216_v40  ;;  %v2472_v26 = vld [vmem:[#allocation10 + $0x30] sm:$0xff] }
 0x336   : > { %v1371_v22 = vadd.f32 %v2643_v3, %v1370_v16  ;;  %v1415_v23 = vsel %vm822_vm0, %v1413_v18, %v1409_v7  ;;  %1607 = vmatpush.bf16.msrb.mxu1 %v2472_v26 }
 0x337   : > { %v1421_v28 = vperm.slane %v1415_v23, %v3216_v40  ;;  %v1452_v44 = vrot.slane %v1425_v32, 4 }
 0x338   : > { %v1375_v25 = vsel %vm1374_vm4, %v2643_v3, %v1371_v22 }
 0x339   : > { %v1380_v27 = vsel %vm1377_vm5, %v1379_v24, %v1375_v25  ;;  %v1332_v29 = vpop.f32.mrf.mxu3  ;;  %v1440_v37 = vrot.slane %v1421_v28, 4 }
 0x33a   : > { %v1410_v31 = vmul.f32 %v1380_v27, %v3336_v41  ;;  %v2471_v27 = vld [vmem:[#allocation10 + $0x28] sm:$0xff]  ;;  %v2468_v29 = vld [vmem:[#allocation10 + $0x10] sm:$0xff] }
 0x33b   : > { %1608 = vmatpush.bf16.msrb.mxu1 %v2471_v27 }
 0x33c   : > { %v1427_v33 = vsel %vm822_vm0, %v1426_v30, %v1410_v31  ;;  %v1428_v35 = vrot.slane %v1410_v31, 4  ;;  %v2467_v30 = vld [vmem:[#allocation10 + $0x8] sm:$0xff]  ;;  %v2466_v31 = vld [vmem:[#allocation10] sm:$0xff] }
 0x33d   : > { %v1433_v36 = vperm.slane %v1427_v33, %v3216_v40 }
 0x33e   : > { %v1429_v38 = vsel %vm822_vm0, %v1412_v21, %v1428_v35 }
 0x33f   : > { %v1437_v39 = vperm.slane %v1429_v38, %v3216_v40  ;;  %v1438_v42 = vrot.slane %v1433_v36, 4  ;;  %v1441_v43 = vsel %vm822_vm0, %v1433_v36, %v1440_v37 }
 0x340   : > { %v1449_v45 = vperm.slane %v1441_v43, %v3222_v2 }
 0x341   : > { %v1439_v41 = vsel %vm822_vm0, %v1438_v42, %v1421_v28  ;;  %v1450_v46 = vrot.slane %v1437_v39, 4  ;;  %v1453_v47 = vsel %vm822_vm0, %v1437_v39, %v1452_v44  ;;  %v2470_v28 = vld [vmem:[#allocation10 + $0x20] sm:$0xff] }
 0x342   : > { %v1445_v48 = vperm.slane %v1439_v41, %v3222_v2  ;;  %v1461_v49 = vperm.slane %v1453_v47, %v3222_v2  ;;  %v1464_v50 = vrot.slane %v1449_v45, 4  ;;  %1609 = vmatpush.bf16.msrb.mxu1 %v2470_v28  ;;  %v2959_v45 = vmov 128.0   ;;  %v2320_v28 = vld [vmem:[#allocation11 + $0x10] sm:$0xf] }
 0x343   : > { %v1451_v51 = vsel %vm822_vm0, %v1450_v46, %v1425_v32  ;;  %2644 = vrcp.f32 %v2959_v45 }
 0x344   : > { %v1457_v52 = vperm.slane %v1451_v51, %v3222_v2  ;;  %v1462_v53 = vrot.slane %v1445_v48, 4  ;;  %v1465_v54 = vsel %vm822_vm0, 0.0, %v1464_v50  ;;  %v1468_v55 = vrot.slane %v1461_v49, 4 }
 0x345   : > { %v1475_v56 = vrot.slane %v1465_v54, 4  ;;  %v1470_v57 = vsel %vm822_vm0, %v1464_v50, %v1445_v48  ;;  %v2368_v54 = vld [vmem:[#allocation11 + $0x70] sm:$0xf] }
 0x346   : > { %v1466_v58 = vrot.slane %v1457_v52, 4  ;;  %v1469_v59 = vsel %vm822_vm0, 0.0, %v1468_v55  ;;  %v1463_v60 = vsel %vm822_vm0, 0.0, %v1462_v53  ;;  %v1474_v61 = vperm.slane %v1470_v57, %v3216_v40 }
 0x347   : > { %v1486_v62 = vrot.slane %v1469_v59, 4  ;;  %v1476_v63 = vsel %vm822_vm0, %v1475_v56, %v1463_v60  ;;  %v1481_v0 = vsel %vm822_vm0, %v1468_v55, %v1457_v52  ;;  %v2489_v55 = vld [vmem:[#allocation11 + $0x74] sm:$0xf0]  ;;  %v2488_v56 = vld [vmem:[#allocation11 + $0x74] sm:$0xf] }
 0x348   : > { %v1467_v1 = vsel %vm822_vm0, 0.0, %v1466_v58  ;;  %v1480_v3 = vperm.slane %v1476_v63, %v3216_v40  ;;  %v1485_v4 = vperm.slane %v1481_v0, %v3216_v40  ;;  %v1494_v5 = vrot.slane %v1474_v61, 4  ;;  %v2370_v58 = vld [vmem:[#allocation11 + $0x78] sm:$0xf0]  ;;  %v2360_v60 = vld [vmem:[#allocation11 + $0x60] sm:$0xf] }
 0x349   : > { %v1487_v6 = vsel %vm822_vm0, %v1486_v62, %v1467_v1  ;;  %v2645_v41 = vpop.eup %2644  ;;  %v2369_v57 = vor.u32 %v2489_v55, %v2368_v54  ;;  %v2373_v59 = vor.u32 %v2488_v56, %v2370_v58  ;;  %v2486_v62 = vld [vmem:[#allocation11 + $0x64] sm:$0xf]  ;;  %v2362_v0 = vld [vmem:[#allocation11 + $0x68] sm:$0xf0] }
 0x34a   : > { %v1491_v34 = vperm.slane %v1487_v6, %v3216_v40  ;;  %v1495_v7 = vsel %vm822_vm0, %v1480_v3, %v1494_v5  ;;  %v1506_v8 = vrot.slane %v1485_v4, 4  ;;  %v1492_v9 = vrot.slane %v1480_v3, 4  ;;  %v2352_v3 = vld [vmem:[#allocation11 + $0x50] sm:$0xf]  ;;  %v2484_v5 = vld [vmem:[#allocation11 + $0x54] sm:$0xf] }
 0x34b   : > { %v1503_v10 = vperm.slane %v1495_v7, %v3222_v2  ;;  %v1624_v46 = vmul.f32 128.0, %v2645_v41  ;;  %1775 = vmatpush.bf16.msrb.mxu2 %v2369_v57  ;;  %1788 = vmatpush.bf16.msra.mxu3 %v2373_v59  ;;  %v2365_v1 = vor.u32 %v2486_v62, %v2362_v0  ;;  %v2344_v7 = vld [vmem:[#allocation11 + $0x40] sm:$0xf]  ;;  %v2495_v56 = vld [vmem:[#allocation13 + $0x28] sm:$0xff] }
 0x34c   : > { %v1507_v11 = vsel %vm822_vm0, %v1491_v34, %v1506_v8  ;;  %v1493_v12 = vsel %vm822_vm0, %v1492_v9, %v1474_v61  ;;  %v1504_v13 = vrot.slane %v1491_v34, 4  ;;  %v2487_v61 = vld [vmem:[#allocation11 + $0x64] sm:$0xf0]  ;;  %v2354_v34 = vld [vmem:[#allocation11 + $0x58] sm:$0xf0]  ;;  %v2494_v59 = vld [vmem:[#allocation13 + $0x20] sm:$0xff] }
 0x34d   : > { %v1515_v14 = vperm.slane %v1507_v11, %v3222_v2  ;;  %v1522_v15 = vrot.slane %v1503_v10, 4  ;;  %v1499_v16 = vperm.slane %v1493_v12, %v3222_v2  ;;  %v1625_v47 = vsub.f32 1.0, %v1624_v46  ;;  %v2483_v8 = vld [vmem:[#allocation11 + $0x44] sm:$0xf0]  ;;  %v2346_v11 = vld [vmem:[#allocation11 + $0x48] sm:$0xf0] }
 0x34e   : > { %v1505_v17 = vsel %vm822_vm0, %v1504_v13, %v1485_v4  ;;  %v2361_v63 = vor.u32 %v2487_v61, %v2360_v60  ;;  %v2485_v4 = vld [vmem:[#allocation11 + $0x54] sm:$0xf0]  ;;  %v2357_v9 = vor.u32 %v2484_v5, %v2354_v34  ;;  %v2345_v12 = vor.u32 %v2483_v8, %v2344_v7  ;;  %v2503_v58 = vld [vmem:[#allocation13 + $0x68] sm:$0xff]  ;;  %v2502_v60 = vld [vmem:[#allocation13 + $0x60] sm:$0xff] }
 0x34f   : > { %v1523_v40 = vsel %vm822_vm0, %v1515_v14, %v1522_v15  ;;  %v1520_v18 = vrot.slane %v1515_v14, 4  ;;  %v1511_v19 = vperm.slane %v1505_v17, %v3222_v2  ;;  %v1518_v21 = vrot.slane %v1499_v16, 4  ;;  %v2469_v2 = vld [vmem:[#allocation10 + $0x18] sm:$0xff]  ;;  %1789 = vmatpush.bf16.msra.mxu3 %v2365_v1  ;;  %v2336_v14 = vld [vmem:[#allocation11 + $0x30] sm:$0xf] }
 0x350   : > { %1533 = vrot.lane.b32.xlu0 %v1523_v40, %s2955_s16  ;;  %1610 = vmatpush.bf16.msrb.mxu1 %v2469_v2  ;;  %v1626_v48 = vmul.f32 %v2645_v41, %v1625_v47  ;;  %v2353_v6 = vor.u32 %v2485_v4, %v2352_v3  ;;  %v2481_v15 = vld [vmem:[#allocation11 + $0x34] sm:$0xf0]  ;;  %v2480_v17 = vld [vmem:[#allocation11 + $0x34] sm:$0xf]  ;;  %v2338_v40 = vld [vmem:[#allocation11 + $0x38] sm:$0xf0] }
 0x351   : > { %v1521_v22 = vsel %vm822_vm0, %v1520_v18, %v1503_v10  ;;  %v1516_v23 = vrot.slane %v1511_v19, 4  ;;  %v1519_v24 = vsel %vm822_vm0, %v1511_v19, %v1518_v21  ;;  %1776 = vmatpush.bf16.msrb.mxu2 %v2361_v63  ;;  %v2482_v10 = vld [vmem:[#allocation11 + $0x44] sm:$0xf]  ;;  %v2337_v19 = vor.u32 %v2481_v15, %v2336_v14  ;;  %v2477_v2 = vld [vmem:[#allocation11 + $0x14] sm:$0xf0]  ;;  %v2492_v3 = vld [vmem:[#allocation13 + $0x10] sm:$0xff] }
 0x352   : > { %1529 = vrot.lane.b32.xlu2 %v1521_v22, %s2956_s1  ;;  %1525 = vrot.lane.b32.xlu1 %v1519_v24, %s2954_s4  ;;  %v1627_v49 = vadd.f32 %v2645_v41, %v1626_v48  ;;  %v2349_v13 = vor.u32 %v2482_v10, %v2346_v11  ;;  %v2341_v21 = vor.u32 %v2480_v17, %v2338_v40  ;;  %v2328_v22 = vld [vmem:[#allocation11 + $0x20] sm:$0xf]  ;;  %v2478_v24 = vld [vmem:[#allocation11 + $0x24] sm:$0xf]  ;;  %v2497_v46 = vld [vmem:[#allocation13 + $0x38] sm:$0xff]  ;;  %s3489_s4 = sld [smem:[#allocation25_spill]] }
 0x353   : > { %v1517_v25 = vsel %vm822_vm0, %v1516_v23, %v1499_v16  ;;  %vm1628_vm0 = vweird.f32 %v2645_v41  ;;  %1790 = vmatpush.bf16.msra.mxu3 %v2357_v9  ;;  %v2479_v23 = vld [vmem:[#allocation11 + $0x24] sm:$0xf0]  ;;  %v2505_v47 = vld [vmem:[#allocation13 + $0x78] sm:$0xff]  ;;  %1937 = vmatpush.bf16.msrb.mxu0 %v2497_v46  ;;  %v2500_v5 = vld [vmem:[#allocation13 + $0x50] sm:$0xff]  ;;  %s2884_s16 = scalar_lea.hbm %s3490_s19, 16 }
 0x354   : > { %1611 = vmatpush.bf16.msrb.mxu1 %v2468_v29  ;;  %v3390_v50 = vsel %vm1628_vm0, %v2645_v41, %v1627_v49  ;;  %v2329_v26 = vor.u32 %v2479_v23, %v2328_v22  ;;  %v2476_v29 = vld [vmem:[#allocation11 + $0x14] sm:$0xf]  ;;  %v2493_v61 = vld [vmem:[#allocation13 + $0x18] sm:$0xff]  ;;  %v2491_v17 = vld [vmem:[#allocation13 + $0x8] sm:$0xff]  ;;  %p2886_p7 = scmp.lt.s32.totalorder %s2884_s16, %s2880_s13 }
 0x355   : > { %1777 = vmatpush.bf16.msrb.mxu2 %v2353_v6  ;;  %v2496_v49 = vld [vmem:[#allocation13 + $0x30] sm:$0xff]  ;;  %v2501_v63 = vld [vmem:[#allocation13 + $0x58] sm:$0xff]  ;;  %v2499_v40 = vld [vmem:[#allocation13 + $0x48] sm:$0xff] }
 0x356   : > { %v2623_v6 = vld [vmem:[%s3461_s9] ss:$0 sm:$0xff]  ;;  %p2887_p8 = por %p2886_p7, %p2885_p12 }
 0x357   : > { %1791 = vmatpush.bf16.msra.mxu3 %v2349_v13  ;;  %1938 = vmatpush.bf16.msrb.mxu0 %v2496_v49 }
 0x358   : > { %1612 = vmatpush.bf16.msrb.mxu1 %v2467_v30  ;;  %v2322_v30 = vld [vmem:[#allocation11 + $0x18] sm:$0xf0]  ;;  %p2888_p9 = pnand %p2887_p8, %p2883_p5 }
 0x359   : > { %1778 = vmatpush.bf16.msrb.mxu2 %v2345_v12  ;;  %v2624_v12 = vld [vmem:[%s3462_s10] ss:$0 sm:$0xff] }
 0x35b   : > { %1792 = vmatpush.bf16.msra.mxu3 %v2341_v21  ;;  %1939 = vmatpush.bf16.msrb.mxu0 %v2495_v56 }
 0x35c   : > { %1613 = vmatpush.bf16.msrb.mxu1 %v2466_v31 }
 0x35d   : > { %1779 = vmatpush.bf16.msrb.mxu2 %v2337_v19  ;;  %v2498_v19 = vld [vmem:[#allocation13 + $0x40] sm:$0xff] }
 0x35f   : > { %1940 = vmatpush.bf16.msrb.mxu0 %v2494_v59 }
 0x360   : > { %1950 = vmatpush.bf16.msra.mxu1 %v2505_v47 }
 0x361   : > { %1780 = vmatpush.bf16.msrb.mxu2 %v2329_v26 }
 0x363   : > { %1941 = vmatpush.bf16.msrb.mxu0 %v2493_v61 }
 0x367   : > { %1942 = vmatpush.bf16.msrb.mxu0 %v2492_v3 }
 0x36b   : > { %1943 = vmatpush.bf16.msrb.mxu0 %v2491_v17 }
 0x3ac   : > { %v1530_v33 = vpop.permute.xlu2 %1529 }
 0x3c2   : > { %v1534_v36 = vpop.permute.xlu0 %1533 }
 0x3c4   : > { %v1526_v32 = vpop.permute.xlu1 %1525 }
 0x3c5   : > { %v1536_v35 = vsel %vm1158_vm1, %v1517_v25, %v1526_v32  ;;  %v2330_v25 = vld [vmem:[#allocation11 + $0x28] sm:$0xf0] }
 0x3c6   : > { %v1538_v37 = vsel %vm1537_vm6, %v1536_v35, %v1530_v33  ;;  %v2333_v27 = vor.u32 %v2478_v24, %v2330_v25  ;;  %v2321_v33 = vor.u32 %v2477_v2, %v2320_v28  ;;  %v2325_v35 = vor.u32 %v2476_v29, %v2322_v30 }
 0x3c7   : > { %v1540_v38 = vsel %vm1539_vm7, %v1538_v37, %v1534_v36  ;;  %v2312_v36 = vld [vmem:[#allocation11] sm:$0xf]  ;;  %v2475_v37 = vld [vmem:[#allocation11 + $0x4] sm:$0xf0] }
 0x3c8   : > { %v1541_v39 = vpack.c.bf16 %v1540_v38, %v1540_v38  ;;  %1793 = vmatpush.bf16.msra.mxu3 %v2333_v27  ;;  %1781 = vmatpush.bf16.msrb.mxu2 %v2321_v33 }
 0x3ca   : > { %1614 = vmatmul.bf16.vlgmr.msrb.gmra.mxu1 %v1541_v39  ;;  %v2474_v39 = vld [vmem:[#allocation11 + $0x4] sm:$0xf] }
 0x3cc   : > { %1794 = vmatpush.bf16.msra.mxu3 %v2325_v35 }
 0x447   : > { %v1615_v42 = vpop.f32.mrf.mxu1 }
 0x448   : > { %v1616_v43 = vadd.f32 %v1615_v42, %v3198_v20  ;;  %v2314_v42 = vld [vmem:[#allocation11 + $0x8] sm:$0xf0] }
 0x449   : > { %v2317_v45 = vor.u32 %v2474_v39, %v2314_v42 }
 0x44a   : > { %1621 = vadd.xlane.f32.xlu1 %v1616_v43 }
 0x44b   : > { %1795 = vmatpush.bf16.msra.mxu3 %v2317_v45 }
 0x44f   : > { %v1617_v44 = vpop.f32.mrf.mxu1 }
 0x450   : > { %v2313_v44 = vor.u32 %v2475_v37, %v2312_v36 }
 0x452   : > { %1782 = vmatpush.bf16.msrb.mxu2 %v2313_v44 }
 0x4bd   : > { %v1622_v51 = vpop.xlane.xlu1 %1621 }
 0x4be   : > { %v1630_v52 = vmul.f32 %v3390_v50, %v1622_v51 }
 0x4c0   : > { %v3393_v53 = vsub.f32 %v1616_v43, %v1630_v52  ;;  %v2504_v52 = vld [vmem:[#allocation13 + $0x70] sm:$0xff] }
 0x4c1   : > { %1951 = vmatpush.bf16.msra.mxu1 %v2504_v52 }
 0x4c2   : > { %v1632_v20 = vmul.f32 %v3393_v53, %v3393_v53  ;;  %v1666_v10 = vmul.f32 %v2623_v6, %v3393_v53  ;;  %v1689_v53 = vld [vmem:[%s3458_s6] sm:$0x3] }
 0x4c3   : > { %v1691_v21 = vperm.slane %v1689_v53, 0  ;;  %v1692_v22 = vperm.slane %v1689_v53, 1 }
 0x4c4   : > { %1633 = vadd.xlane.f32.xlu0 %v1632_v20 }
 0x4c5   : > { %1952 = vmatpush.bf16.msra.mxu1 %v2503_v58 }
 0x4c9   : > { %1953 = vmatpush.bf16.msra.mxu1 %v2502_v60 }
 0x4cd   : > { %1954 = vmatpush.bf16.msra.mxu1 %v2501_v63  ;;  %v2626_v63 = vld [vmem:[%s3489_s4] ss:$0 sm:$0xff] }
 0x4d1   : > { %1955 = vmatpush.bf16.msra.mxu1 %v2500_v5 }
 0x4d5   : > { %1956 = vmatpush.bf16.msra.mxu1 %v2499_v40 }
 0x4d9   : > { %1957 = vmatpush.bf16.msra.mxu1 %v2498_v19 }
 0x537   : > { %v1634_v16 = vpop.xlane.xlu0 %1633 }
 0x538   : > { %v1635_v18 = vmul.f32 0.007874016, %v1634_v16 }
 0x53a   : > { %2646 = vrsqrt.f32 %v1635_v18  ;;  %vm1643_vm1 = vcmp.eq.f32.partialorder %v1635_v18, inf  ;;  %v1646_v20 = vand.u32 2147483648, %v1635_v18  ;;  %vm1645_vm8 = vcmp.eq.f32.partialorder %v1635_v18, 0.0 }
 0x540   : > { %v2647_v31 = vpop.eup %2646 }
 0x541   : > { %v1637_v32 = vmul.f32 %v2647_v31, %v1635_v18 }
 0x543   : > { %v1638_v38 = vmul.f32 %v2647_v31, %v1637_v32  ;;  %v2625_v32 = vld [vmem:[%s3460_s8] ss:$0 sm:$0xff] }
 0x545   : > { %v1639_v43 = vmul.f32 0.5, %v1638_v38 }
 0x547   : > { %v1640_v41 = vsub.f32 1.5, %v1639_v43 }
 0x549   : > { %v1641_v48 = vmul.f32 %v2647_v31, %v1640_v41 }
 0x54b   : > { %v1642_v51 = vmul.f32 %v1641_v48, %v1635_v18 }
 0x54d   : > { %v1644_v54 = vsel %vm1643_vm1, %v1635_v18, %v1642_v51  ;;  %v2490_v18 = vld [vmem:[#allocation13] sm:$0xff] }
 0x54e   : > { %v1647_v55 = vsel %vm1645_vm8, %v1646_v20, %v1644_v54  ;;  %1944 = vmatpush.bf16.msrb.mxu0 %v2490_v18 }
 0x54f   : > { %v1648_v57 = vadd.f32 1e-05, %v1647_v55 }
 0x551   : > { %2648 = vrcp.f32 %v1648_v57  ;;  %v1660_v4 = vand.u32 2147483648, %v1648_v57  ;;  %v1658_v7 = vand.u32 2147483647, %v1648_v57  ;;  %vm1654_vm10 = vweird.f32 %v1648_v57 }
 0x553   : > { %v1661_v9 = vor.u32 1.1754944e-38, %v1660_v4  ;;  %vm1659_vm12 = vcmp.eq.f32.partialorder %v1658_v7, 8.507059e+37 }
 0x557   : > { %v2649_v62 = vpop.eup %2648 }
 0x558   : > { %v1650_v0 = vmul.f32 %v2649_v62, %v1648_v57  ;;  %vm1655_vm9 = vweird.f32 %v2649_v62 }
 0x559   : > { %vm1656_vm11 = vmor %vm1654_vm10, %vm1655_vm9 }
 0x55a   : > { %v1651_v1 = vsub.f32 1.0, %v1650_v0 }
 0x55c   : > { %v1652_v34 = vmul.f32 %v2649_v62, %v1651_v1 }
 0x55e   : > { %v1653_v8 = vadd.f32 %v2649_v62, %v1652_v34  ;;  %v2627_v34 = vld [vmem:[%s3491_s30] ss:$0 sm:$0xff] }
 0x560   : > { %v1657_v11 = vsel %vm1656_vm11, %v2649_v62, %v1653_v8 }
 0x561   : > { %v1662_v13 = vsel %vm1659_vm12, %v1661_v9, %v1657_v11 }
 0x562   : > { %v1667_v14 = vmul.f32 %v1666_v10, %v1662_v13 }
 0x564   : > { %v1671_v15 = vadd.f32 %v2624_v12, %v1667_v14 }
 0x566   : > { %v1672_v16 = vpack.c.bf16 %v1671_v15, %v1671_v15 }
 0x568   : > { %1783 = vmatmul.bf16.vlgmr.msrb.gmra.mxu2 %v1672_v16  ;;  %1796 = vmatmul.bf16.vlgmr.msra.gmra.mxu3 %v1672_v16 }
 0x5eb   : > { %v1784_v23 = vpop.f32.mrf.mxu2  ;;  %v1797_v24 = vpop.f32.mrf.mxu3 }
 0x5ec   : > { %v1785_v25 = vadd.f32 %v1784_v23, %v1691_v21  ;;  %v1798_v26 = vadd.f32 %v1797_v24, %v1692_v22 }
 0x5ee   : > { %v1801_v27 = vmax.f32 %v1785_v25, 0.0  ;;  %v1802_v28 = vmax.f32 %v1798_v26, 0.0 }
 0x5f0   : > { %v1803_v2 = vpack.c.bf16 %v1801_v27, %v1801_v27  ;;  %v1804_v29 = vpack.c.bf16 %v1802_v28, %v1802_v28 }
 0x5f2   : > { %1945 = vmatmul.bf16.vlgmr.msrb.gmra.mxu0 %v1803_v2  ;;  %1958 = vmatmul.bf16.vlgmr.msra.gmra.mxu1 %v1804_v29 }
 0x5f3   : > { %v1786_v30 = vpop.f32.mrf.mxu2  ;;  %v1799_v31 = vpop.f32.mrf.mxu3 }
 0x66f   : > { %v1946_v33 = vpop.f32.mrf.mxu0  ;;  %v1959_v35 = vpop.f32.mrf.mxu1 }
 0x670   : > { %v1947_v36 = vadd.f32 %v2625_v32, %v1946_v33 }
 0x672   : > { %v1960_v37 = vadd.f32 %v1959_v35, %v1947_v36 }
 0x674   : > { %v1963_v38 = vadd.f32 %v1960_v37, %v1671_v15 }
 0x676   : > { %1966 = vadd.xlane.f32.xlu2 %v1963_v38 }
 0x677   : > { %v1948_v39 = vpop.f32.mrf.mxu0  ;;  %v1961_v42 = vpop.f32.mrf.mxu1 }
 0x6e9   : > { %v1967_v43 = vpop.xlane.xlu2 %1966 }
 0x6ea   : > { %v1968_v44 = vmul.f32 %v1967_v43, %v3390_v50 }
 0x6ec   : > { %v1969_v45 = vsub.f32 %v1963_v38, %v1968_v44 }
 0x6ee   : > { %v1970_v41 = vmul.f32 %v1969_v45, %v1969_v45  ;;  %v2004_v5 = vmul.f32 %v2626_v63, %v1969_v45 }
 0x6f0   : > { %1971 = vadd.xlane.f32.xlu1 %v1970_v41 }
 0x763   : > { %v1972_v46 = vpop.xlane.xlu1 %1971 }
 0x764   : > { %v1973_v47 = vmul.f32 0.007874016, %v1972_v46 }
 0x766   : > { %2650 = vrsqrt.f32 %v1973_v47  ;;  %vm1981_vm13 = vcmp.eq.f32.partialorder %v1973_v47, inf  ;;  %v1984_v56 = vand.u32 2147483648, %v1973_v47  ;;  %vm1983_vm14 = vcmp.eq.f32.partialorder %v1973_v47, 0.0 }
 0x76c   : > { %v2651_v48 = vpop.eup %2650 }
 0x76d   : > { %v1975_v49 = vmul.f32 %v2651_v48, %v1973_v47 }
 0x76f   : > { %v1976_v51 = vmul.f32 %v2651_v48, %v1975_v49 }
 0x771   : > { %v1977_v52 = vmul.f32 0.5, %v1976_v51 }
 0x773   : > { %v1978_v20 = vsub.f32 1.5, %v1977_v52 }
 0x775   : > { %v1979_v54 = vmul.f32 %v2651_v48, %v1978_v20 }
 0x777   : > { %v1980_v55 = vmul.f32 %v1979_v54, %v1973_v47 }
 0x779   : > { %v1982_v57 = vsel %vm1981_vm13, %v1973_v47, %v1980_v55 }
 0x77a   : > { %v1985_v58 = vsel %vm1983_vm14, %v1984_v56, %v1982_v57 }
 0x77b   : > { %v1986_v50 = vadd.f32 1e-05, %v1985_v58 }
 0x77d   : > { %2652 = vrcp.f32 %v1986_v50  ;;  %v1998_v62 = vand.u32 2147483648, %v1986_v50  ;;  %v1996_v1 = vand.u32 2147483647, %v1986_v50  ;;  %vm1992_vm2 = vweird.f32 %v1986_v50 }
 0x77f   : > { %v1999_v4 = vor.u32 1.1754944e-38, %v1998_v62  ;;  %vm1997_vm4 = vcmp.eq.f32.partialorder %v1996_v1, 8.507059e+37 }
 0x783   : > { %v2653_v59 = vpop.eup %2652 }
 0x784   : > { %v1988_v60 = vmul.f32 %v2653_v59, %v1986_v50  ;;  %vm1993_vm15 = vweird.f32 %v2653_v59 }
 0x785   : > { %vm1994_vm3 = vmor %vm1992_vm2, %vm1993_vm15 }
 0x786   : > { %v1989_v61 = vsub.f32 1.0, %v1988_v60 }
 0x788   : > { %v1990_v0 = vmul.f32 %v2653_v59, %v1989_v61 }
 0x78a   : > { %v1991_v3 = vadd.f32 %v2653_v59, %v1990_v0 }
 0x78c   : > { %v1995_v6 = vsel %vm1994_vm3, %v2653_v59, %v1991_v3 }
 0x78d   : > { %v2000_v7 = vsel %vm1997_vm4, %v1999_v4, %v1995_v6 }
 0x78e   : > { %v2005_v8 = vmul.f32 %v2004_v5, %v2000_v7 }
 0x790   : > { %v2009_v9 = vadd.f32 %v2627_v34, %v2005_v8 }
 0x792   : > { %2010 = vst [vmem:[%s556_s3] sm:$0xff] %v2009_v9 }
 0x793   : > { %2891 = shalt.err (!%p2888_p9)
}
 0x794   : > { %2532 = dma.vmem_to_hbm [thread:$0]  (%p3142_p4), %s2025_s5, 128, %s2027_s29, %s2012_s17  }
 0x795 PF: > { %s2038_s12 = sand.u32 1, %s2930_s25   ;;  %p3492_p10 = scmp.ge.s32.totalorder %s2942_s28, 2 }
 0x796   : > { %s2039_s24 = scalar_lea.sflag [#allocation4], %s2038_s12 }
 0x797   : > { %p2558_p13 = pnand %p3492_p10, %p3146_p6 }
 0x799   : > { %p2559_p11 = pneg %p2558_p13 }
 0x79b   : > { %2925 = dma.done.wait (%p2559_p11), %s2039_s24, 128  }
 0x79c   : > { %2927 = vsyncadd (%p2559_p11), %s2039_s24, 4294967168  ;;  %p29_p0 = scmp.ge.s32.totalorder %s3116_s23, 4   ;;  %s3493_s25 = smov %s2934_s26 }
 0x79d   : > { %s3494_s26 = smov %s2938_s27  ;;  %s3495_s27 = smov %s3127_s14 }
 0x79e   : > { %s3496_s28 = smov %s3116_s23  ;;  %31 = sbr.rel (!%p29_p0) target bundleno = 17 (0x11), region = 141 }
 0x7a3   :  { %2045 = vsyncpa [#allocation3], 1 }
 0x7a4   :  { %2047 = vsyncpa [#allocation3 + $0x1], 1 }
 0x7a5   :  { %2048 = vsyncpa [#allocation6], 1 }
 0x7a6   :  { %2049 = vsyncpa [#allocation9], 1 }
 0x7a7   :  { %2050 = vsyncpa [#allocation12], 1 }
 0x7a8   :  { %2051 = vsyncpa [#allocation4], 1 }
 0x7a9   :  { %2053 = vsyncpa [#allocation4 + $0x1], 1 }

// kernel: tpu_custom_call.1
= control target key start
LH: loop header
LB: loop body
LE: loop exit
PB: predicated region body
PF: predicated region fallthrough
CT: control target
= control target key end

     0   :  { %s3452_s0 = inlined_call_operand.hbm [shape: f32[16,128], index: 0, kind: input, shape index: {}]   ;;  %s3453_s1 = inlined_call_operand.hbm [shape: bf16[128,128], index: 1, kind: input, shape index: {}]   ;;  %s3454_s2 = inlined_call_operand.hbm [shape: bf16[128,128], index: 2, kind: input, shape index: {}]   ;;  %s3455_s3 = inlined_call_operand.hbm [shape: bf16[128,128], index: 3, kind: input, shape index: {}]   ;;  %s3456_s4 = inlined_call_operand.hbm [shape: bf16[128,128], index: 4, kind: input, shape index: {}]   ;;  %s3457_s5 = inlined_call_operand.hbm [shape: bf16[128,256], index: 5, kind: input, shape index: {}]   ;;  %s3458_s6 = inlined_call_operand.vmem [shape: f32[1,256], index: 6, kind: input, shape index: {}]   ;;  %s3459_s7 = inlined_call_operand.hbm [shape: bf16[256,128], index: 7, kind: input, shape index: {}]   ;;  %s3460_s8 = inlined_call_operand.vmem [shape: f32[1,128], index: 8, kind: input, shape index: {}]   ;;  %s3461_s9 = inlined_call_operand.vmem [shape: f32[1,128], index: 9, kind: input, shape index: {}]   ;;  %s3462_s10 = inlined_call_operand.vmem [shape: f32[1,128], index: 10, kind: input, shape index: {}]   ;;  %s3463_s11 = inlined_call_operand.vmem [shape: f32[1,128], index: 11, kind: input, shape index: {}]   ;;  %s3464_s12 = inlined_call_operand.vmem [shape: f32[1,128], index: 12, kind: input, shape index: {}]   ;;  %s3465_s13 = inlined_call_operand.hbm [shape: f32[16,128], index: 13, kind: output, shape index: {}]  }
   0x1   :  { %3467 = sst [smem:[#allocation20_spill]] %s3453_s1 }
   0x2   :  { %3468 = sst [smem:[#allocation21_spill]] %s3454_s2 }
   0x3   :  { %3469 = sst [smem:[#allocation22_spill]] %s3455_s3 }
   0x4   :  { %3470 = sst [smem:[#allocation23_spill]] %s3456_s4 }
   0x5   :  { %3471 = sst [smem:[#allocation24_spill]] %s3457_s5 }
   0x6   :  { %3472 = sst [smem:[#allocation25_spill]] %s3463_s11 }
   0x7   :  { %3473 = sst [smem:[#allocation26_spill]] %s3464_s12 }
   0x8   :  { %3474 = sst [smem:[#allocation27_spill]] %s3465_s13 }
   0x9   :  { %18 = vsyncpa [#allocation3], 0 }
   0xa   :  { %20 = vsyncpa [#allocation3 + $0x1], 0 }
   0xb   :  { %21 = vsyncpa [#allocation6], 0 }
   0xc   :  { %22 = vsyncpa [#allocation9], 0 }
   0xd   :  { %23 = vsyncpa [#allocation12], 0 }
   0xe   :  { %24 = vsyncpa [#allocation4], 0 }
   0xf   :  { %26 = vsyncpa [#allocation4 + $0x1], 0  ;;  %s3030_s25 = smov 0   ;;  %s3032_s26 = smov 0  }
  0x10   :  { %s3034_s27 = smov 0   ;;  %s3036_s28 = smov 0  }
  0x11 LB: > { %s3475_s1 = sld [smem:[#allocation20_spill]]  ;;  %s3054_s15 = sadd.s32 4294967295, %s2942_s28   ;;  %s2942_s28 = sphi %s3036_s28, %s3496_s28   ;;  %s2938_s27 = sphi %s3034_s27, %s3495_s27   ;;  %s2934_s26 = sphi %s3032_s26, %s3494_s26   ;;  %s2930_s25 = sphi %s3030_s25, %s3493_s25  }
  0x12   : > { %p2155_p0 = scmp.ge.s32.totalorder %s2942_s28, 1  ;;  %p53_p1 = scmp.eq.s32.totalorder %s3054_s15, 0 }
  0x13   : > { %p341_p2 = scmp.lt.s32.totalorder %s2942_s28, 3  ;;  %s2944_s17 = smov [#allocation5]  }
  0x14   : > { %s354_s18 = sshll.u32 %s2944_s17, 4  ;;  %s3477_s3 = sld [smem:[#allocation22_spill]]  ;;  %s355_s18 = int_to_ptr.vmem [resolvable:$true] %s354_s18 }
  0x15   : > { %p3059_p3 = pnand %p2155_p0, %p341_p2  ;;  %s3479_s5 = sld [smem:[#allocation24_spill]] }
  0x16   : > { %s2945_s30 = smov [#allocation8]   ;;  %s2947_s12 = smov 4  }
  0x17   : > { %s352_s14 = sshll.u32 %s3475_s1, 4  ;;  %p2534_p4 = pneg %p3059_p3  ;;  %s353_s14 = int_to_ptr.hbm [resolvable:$true] %s352_s14 }
  0x18   : > { %s382_s17 = sshll.u32 %s2945_s30, 4  ;;  %s2946_s1 = smov 64   ;;  %s383_s17 = int_to_ptr.vmem [resolvable:$true] %s382_s17 }
  0x19   : > { %p3071_p6 = pnand %p2534_p4, %p53_p1  ;;  %s2948_s19 = smov [#allocation11]  }
  0x1a   : > { %s380_s21 = sshll.u32 %s3477_s3, 4  ;;  %s410_s20 = sshll.u32 %s2948_s19, 4  ;;  %s381_s21 = int_to_ptr.hbm [resolvable:$true] %s380_s21  ;;  %s411_s20 = int_to_ptr.vmem [resolvable:$true] %s410_s20 }
  0x1b   : > { %s408_s29 = sshll.u32 %s3479_s5, 4  ;;  %s3480_s2 = sld [smem:[#allocation21_spill]]  ;;  %s409_s29 = int_to_ptr.hbm [resolvable:$true] %s408_s29 }
  0x1c   : > { %2537 = dma.hbm_to_vmem [thread:$0]  (!%p3071_p6), %s353_s14, 1024, %s355_s18, [#allocation6], %s2946_s1, %s2946_s1, %s2947_s12  }
  0x1d   : > { %2543 = dma.hbm_to_vmem [thread:$0]  (!%p3071_p6), %s381_s21, 1024, %s383_s17, [#allocation9], %s2946_s1, %s2946_s1, %s2947_s12  }
  0x1e   : > { %s2949_s3 = smov 128   ;;  %s2950_s5 = smov 8  }
  0x1f   : > { %2549 = dma.hbm_to_vmem [thread:$0]  (!%p3071_p6), %s409_s29, 2048, %s411_s20, [#allocation12], %s2949_s3, %s2949_s3, %s2950_s5  }
  0x20   : > { %s2951_s14 = smov [#allocation7]   ;;  %s3481_s4 = sld [smem:[#allocation23_spill]] }
  0x21   : > { %s366_s30 = sshll.u32 %s3480_s2, 4  ;;  %s368_s18 = sshll.u32 %s2951_s14, 4  ;;  %s367_s30 = int_to_ptr.hbm [resolvable:$true] %s366_s30  ;;  %s369_s18 = int_to_ptr.vmem [resolvable:$true] %s368_s18 }
  0x22   : > { %2540 = dma.hbm_to_vmem [thread:$0]  (!%p3071_p6), %s367_s30, 1024, %s369_s18, [#allocation6], %s2946_s1, %s2946_s1, %s2947_s12  }
  0x23   : > { %s425_s29 = sshll.u32 %s3459_s7, 4  ;;  %s2952_s17 = smov [#allocation10]   ;;  %s426_s29 = int_to_ptr.hbm [resolvable:$true] %s425_s29 }
  0x24   : > { %s396_s11 = sshll.u32 %s2952_s17, 4  ;;  %s2953_s13 = smov [#allocation13]   ;;  %s397_s11 = int_to_ptr.vmem [resolvable:$true] %s396_s11 }
  0x25   : > { %s427_s19 = sshll.u32 %s2953_s13, 4  ;;  %s2154_s20 = sadd.s32 4294967294, %s2942_s28   ;;  %s428_s19 = int_to_ptr.vmem [resolvable:$true] %s427_s19 }
  0x26   : > { %s394_s21 = sshll.u32 %s3481_s4, 4  ;;  %s3116_s23 = sadd.s32 1, %s2942_s28   ;;  %s395_s21 = int_to_ptr.hbm [resolvable:$true] %s394_s21 }
  0x27   : > { %2546 = dma.hbm_to_vmem [thread:$0]  (!%p3071_p6), %s395_s21, 1024, %s397_s11, [#allocation9], %s2946_s1, %s2946_s1, %s2947_s12  }
  0x28   : > { %2552 = dma.hbm_to_vmem [thread:$0]  (!%p3071_p6), %s426_s29, 2048, %s428_s19, [#allocation12], %s2946_s1, %s2946_s1, %s2947_s12  }
  0x29   : > { %s36_s24 = ssub.s32 %s2942_s28, %s3116_s23  ;;  %s39_s30 = sadd.s32 1, %s2938_s27 }
  0x2a   : > { %p37_p7 = scmp.eq.s32.totalorder %s36_s24, 0  ;;  %p46_p8 = scmp.ne.s32.totalorder %s2938_s27, %s2934_s26 }
  0x2b   : > { %p47_p9 = scmp.eq.s32.totalorder %s2942_s28, 0  ;;  %p52_p10 = scmp.ne.s32.totalorder %s2934_s26, %s2930_s25 }
  0x2c   : > { %s3127_s14 = scalar_select %p37_p7, %s2938_s27, %s39_s30  }
  0x2d   : > { %p3129_p11 = por %p47_p9, %p46_p8  ;;  %p3135_p12 = por %p53_p1, %p52_p10 }
  0x2e   : > { %p328_p13 = scmp.eq.s32.totalorder %s3054_s15, 1  ;;  %p334_p0 = scmp.eq.s32.totalorder %s2154_s20, 1 }
  0x2f   : > { %p2567_p2 = scmp.lt.s32.totalorder %s2942_s28, 2  ;;  %s456_s12 = sand.u32 1, %s2938_s27  }
  0x30   : > { %p3142_p4 = por %p328_p13, %p46_p8  ;;  %p3146_p6 = por %p334_p0, %p52_p10 }
  0x31   : > { %s2163_s3 = sshll.u32 %s456_s12, 3  ;;  %s2164_s5 = sshll.u32 %s2942_s28, 3 }
  0x32   : > { %s464_s11 = scalar_lea.hbm %s3452_s0, %s2164_s5  ;;  %s460_s13 = scalar_lea.vmem [#allocation2], %s2163_s3 }
  0x33   : > { %s468_s19 = sshll.u32 %s460_s13, 4  ;;  %s466_s24 = sshll.u32 %s464_s11, 4  ;;  %s469_s19 = int_to_ptr.vmem [resolvable:$true] %s468_s19  ;;  %s467_s24 = int_to_ptr.hbm [resolvable:$true] %s466_s24 }
  0x34   : > { %p3156_p7 = pnand %p2567_p2, %p3129_p11  ;;  %s457_s30 = scalar_lea.sflag [#allocation3], %s456_s12 }
  0x35   : > { %s2834_s2 = sshra.s32 %s467_s24, 4  ;;  %s2841_s29 = scalar_lea.hbm %s3452_s0, 16  ;;  %s2835_s2 = int_to_ptr.hbm [resolvable:$true] %s2834_s2 }
  0x36   : > { %s2836_s4 = scalar_lea.hbm %s2835_s2, 8  ;;  %p2838_p9 = pneg %p3156_p7 }
  0x37   : > { %p2837_p8 = scmp.ne.s32.totalorder %s2835_s2, %s2836_s4  ;;  %p2842_p11 = scmp.lt.s32.totalorder %s2835_s2, %s3452_s0 }
  0x38   : > { %p2843_p0 = scmp.lt.s32.totalorder %s2841_s29, %s2836_s4 }
  0x39   : > { %p2839_p10 = pnand %p2838_p9, %p2837_p8 }
  0x3a   : > { %p2844_p2 = por %p2843_p0, %p2842_p11 }
  0x3b   : > { %p2840_p13 = pneg %p2839_p10 }
  0x3d   : > { %p2845_p5 = pnand %p2844_p2, %p2840_p13 }
  0x3f   : > { %2848 = shalt.err (!%p2845_p5)
}
  0x40   : > { %2556 = dma.hbm_to_vmem [thread:$0]  (!%p3156_p7), %s467_s24, 128, %s469_s19, %s457_s30  }
  0x41   : > { %477 = sbr.rel (%p3059_p3) target bundleno = 1941 (0x795), region = 72  ;;  %s3173_s12 = sand.u32 (!%p3059_p3), 1, %s2934_s26  }
  0x42   : > { %s2166_s11 = sshll.u32 (!%p3059_p3), %s3173_s12, 3  ;;  %s480_s13 = scalar_lea.sflag (!%p3059_p3), [#allocation3], %s3173_s12 }
  0x43   : > { %s3179_s2 = scalar_lea.vmem (!%p3059_p3), [#allocation2], %s2166_s11 }
  0x46   : > { %2909 = dma.done.wait (%p3135_p12), %s480_s13, 128  }
  0x47   : > { %2911 = vsyncadd (%p3135_p12), %s480_s13, 4294967168 }
  0x48   : > { %2913 = dma.done.wait (%p53_p1), [#allocation6], 2048  }
  0x49   : > { %2915 = vsyncadd (%p53_p1), [#allocation6], 4294965248 }
  0x4a   : > { %2917 = dma.done.wait (%p53_p1), [#allocation9], 2048  }
  0x4b   : > { %2919 = vsyncadd (%p53_p1), [#allocation9], 4294965248 }
  0x4c   : > { %2921 = dma.done.wait (%p53_p1), [#allocation12], 4096  }
  0x4d   : > { %2923 = vsyncadd (%p53_p1), [#allocation12], 4294963200  ;;  %v2457_v0 = vld [vmem:[#allocation7 + $0x38] sm:$0xff]  ;;  %v2456_v2 = vld [vmem:[#allocation7 + $0x30] sm:$0xff]  ;;  %s2954_s4 = smov 32   ;;  %s2955_s16 = smov 96  }
  0x4e   : > { %v2449_v1 = vld [vmem:[#allocation5 + $0x38] sm:$0xff]  ;;  %701 = vmatpush.bf16.msra.mxu1 %v2457_v0  ;;  %v2448_v3 = vld [vmem:[#allocation5 + $0x30] sm:$0xff]  ;;  %v2455_v5 = vld [vmem:[#allocation7 + $0x28] sm:$0xff]  ;;  %s2956_s1 = smov 64   ;;  %v2957_v35 = vmov 1983009808  }
  0x4f   : > { %624 = vmatpush.bf16.msra.mxu0 %v2449_v1  ;;  %v2465_v4 = vld [vmem:[#allocation8 + $0x38] sm:$0xff]  ;;  %v2447_v6 = vld [vmem:[#allocation5 + $0x28] sm:$0xff]  ;;  %v2464_v7 = vld [vmem:[#allocation8 + $0x30] sm:$0xff]  ;;  %v813_v36 = vunpack.c.l.s4 %v2957_v35  ;;  %v2958_v52 = vmov 1934713408   ;;  %vm822_vm0 = vcmask 1047556  }
  0x50   : > { %778 = vmatpush.bf16.msra.mxu2 %v2465_v4  ;;  %v2454_v8 = vld [vmem:[#allocation7 + $0x20] sm:$0xff]  ;;  %v2463_v10 = vld [vmem:[#allocation8 + $0x28] sm:$0xff]  ;;  %v2453_v11 = vld [vmem:[#allocation7 + $0x18] sm:$0xff]  ;;  %v827_v53 = vunpack.c.l.s4 %v2958_v52  ;;  %vm1158_vm1 = vcmask 261120   ;;  %vm1279_vm2 = vcmask 1043456   ;;  %vm1235_vm3 = vcmask 64512  }
  0x51   : > { %v2446_v9 = vld [vmem:[#allocation5 + $0x20] sm:$0xff]  ;;  %v2445_v12 = vld [vmem:[#allocation5 + $0x18] sm:$0xff]  ;;  %v2452_v14 = vld [vmem:[#allocation7 + $0x10] sm:$0xff]  ;;  %v3216_v40 = vunpack.c.0.s8 %v813_v36  ;;  %s2439_s22 = sshll.u32 %s3054_s15, 3  ;;  %s3490_s19 = sld [smem:[#allocation27_spill]] }
  0x52   : > { %702 = vmatpush.bf16.msra.mxu1 %v2456_v2  ;;  %v2462_v13 = vld [vmem:[#allocation8 + $0x20] sm:$0xff]  ;;  %v2444_v15 = vld [vmem:[#allocation5 + $0x10] sm:$0xff]  ;;  %v2461_v16 = vld [vmem:[#allocation8 + $0x18] sm:$0xff]  ;;  %v3222_v2 = vunpack.c.0.s8 %v827_v53  ;;  %s3491_s30 = sld [smem:[#allocation26_spill]]  ;;  %s556_s3 = scalar_lea.vmem [#allocation14], %s2166_s11 }
  0x53   : > { %625 = vmatpush.bf16.msra.mxu0 %v2448_v3  ;;  %v2451_v17 = vld [vmem:[#allocation7 + $0x8] sm:$0xff]  ;;  %v2450_v19 = vld [vmem:[#allocation7] sm:$0xff]  ;;  %v3198_v20 = vld [vmem:[%s3179_s2] sm:$0xff]  ;;  %s2024_s5 = sshll.u32 %s556_s3, 4  ;;  %s2012_s17 = scalar_lea.sflag [#allocation4], %s3173_s12  ;;  %s2025_s5 = int_to_ptr.vmem [resolvable:$true] %s2024_s5 }
  0x54   : > { %779 = vmatpush.bf16.msra.mxu2 %v2464_v7  ;;  %v2443_v18 = vld [vmem:[#allocation5 + $0x8] sm:$0xff]  ;;  %v2442_v21 = vld [vmem:[#allocation5] sm:$0xff]  ;;  %v559_v22 = vpack.c.bf16 %v3198_v20, %v3198_v20  ;;  %v2460_v23 = vld [vmem:[#allocation8 + $0x10] sm:$0xff] }
  0x55   : > { %v2459_v24 = vld [vmem:[#allocation8 + $0x8] sm:$0xff]  ;;  %v2458_v25 = vld [vmem:[#allocation8] sm:$0xff] }
  0x56   : > { %703 = vmatpush.bf16.msra.mxu1 %v2455_v5 }
  0x57   : > { %626 = vmatpush.bf16.msra.mxu0 %v2447_v6  ;;  %s2022_s24 = scalar_lea.hbm %s3490_s19, %s2439_s22 }
  0x58   : > { %780 = vmatpush.bf16.msra.mxu2 %v2463_v10  ;;  %s2026_s29 = sshll.u32 %s2022_s24, 4  ;;  %s2027_s29 = int_to_ptr.hbm [resolvable:$true] %s2026_s29 }
  0x59   : > { %s2878_s22 = sshra.s32 %s2027_s29, 4  ;;  %s2879_s22 = int_to_ptr.hbm [resolvable:$true] %s2878_s22 }
  0x5a   : > { %704 = vmatpush.bf16.msra.mxu1 %v2454_v8  ;;  %s2880_s13 = scalar_lea.hbm %s2879_s22, 8  ;;  %p2885_p12 = scmp.lt.s32.totalorder %s2879_s22, %s3490_s19 }
  0x5b   : > { %627 = vmatpush.bf16.msra.mxu0 %v2446_v9  ;;  %p2881_p1 = scmp.ne.s32.totalorder %s2879_s22, %s2880_s13 }
  0x5c   : > { %781 = vmatpush.bf16.msra.mxu2 %v2462_v13 }
  0x5d   : > { %p2882_p3 = pnand %p2881_p1, %p3142_p4 }
  0x5e   : > { %705 = vmatpush.bf16.msra.mxu1 %v2453_v11 }
  0x5f   : > { %628 = vmatpush.bf16.msra.mxu0 %v2445_v12  ;;  %p2883_p5 = pneg %p2882_p3 }
  0x60   : > { %782 = vmatpush.bf16.msra.mxu2 %v2461_v16 }
  0x62   : > { %706 = vmatpush.bf16.msra.mxu1 %v2452_v14 }
  0x63   : > { %629 = vmatpush.bf16.msra.mxu0 %v2444_v15 }
  0x64   : > { %783 = vmatpush.bf16.msra.mxu2 %v2460_v23 }
  0x66   : > { %707 = vmatpush.bf16.msra.mxu1 %v2451_v17 }
  0x67   : > { %630 = vmatpush.bf16.msra.mxu0 %v2443_v18 }
  0x68   : > { %784 = vmatpush.bf16.msra.mxu2 %v2459_v24 }
  0x6a   : > { %708 = vmatpush.bf16.msra.mxu1 %v2450_v19 }
  0x6b   : > { %631 = vmatpush.bf16.msra.mxu0 %v2442_v21 }
  0x6c   : > { %785 = vmatpush.bf16.msra.mxu2 %v2458_v25 }
  0x6d   : > { %709 = vmatmul.bf16.vlgmr.msra.gmra.mxu1 %v559_v22 }
  0x6e   : > { %632 = vmatmul.bf16.vlgmr.msra.gmra.mxu0 %v559_v22 }
  0x6f   : > { %786 = vmatmul.bf16.vlgmr.msra.gmra.mxu2 %v559_v22 }
  0xea   : > { %v710_v26 = vpop.f32.mrf.mxu1 }
  0xeb   : > { %v633_v27 = vpop.f32.mrf.mxu0  ;;  %v914_v28 = vpack.c.bf16 %v710_v26, %v710_v26 }
  0xec   : > { %v791_v29 = vpack.c.bf16 %v633_v27, %v633_v27 }
  0xed   : > { %920 = vrot.lane.b32.xlu1 %v914_v28, %s2954_s4  ;;  %916 = vrot.lane.b32.xlu0 %v914_v28, %s2955_s16  ;;  %v925_v41 = vshrl.u32 %v914_v28, 16 }
  0xee   : > { %795 = vrot.lane.b32.xlu2 %v791_v29, %s2956_s1  ;;  %v802_v58 = vshrl.u32 %v791_v29, 16 }
  0xf2   : > { %v712_v30 = vpop.f32.mrf.mxu1  ;;  %v787_v33 = vpop.f32.mrf.mxu2 }
  0xf3   : > { %v635_v31 = vpop.f32.mrf.mxu0  ;;  %v3208_v34 = vpack.c.bf16 %v787_v33, %v787_v33 }
  0xf5   : > { %918 = vrot.lane.b32.xlu0 %v914_v28, %s2956_s1  ;;  %793 = vrot.lane.b32.xlu1 %v791_v29, %s2955_s16 }
  0xf6   : > { %797 = vrot.lane.b32.xlu2 %v791_v29, %s2954_s4 }
  0xfa   : > { %v789_v47 = vpop.f32.mrf.mxu2 }
  0xfd   : > { %1038 = vrot.lane.b32.xlu0 %v3208_v34, %s2955_s16  ;;  %1040 = vrot.lane.b32.xlu1 %v3208_v34, %s2956_s1 }
  0xfe   : > { %1042 = vrot.lane.b32.xlu2 %v3208_v34, %s2954_s4 }
 0x148   : > { %v796_v32 = vpop.permute.xlu2 %795 }
 0x149   : > { %v808_v43 = vshrl.u32 %v796_v32, 16 }
 0x150   : > { %v798_v37 = vpop.permute.xlu2 %797 }
 0x151   : > { %v807_v44 = vpack.i.b16 %v798_v37, %v796_v32  ;;  %v809_v45 = vshrl.u32 %v798_v37, 16 }
 0x153   : > { %v810_v49 = vpack.i.b16 %v809_v45, %v808_v43  ;;  %v820_v50 = vperm.slane %v807_v44, %v3216_v40 }
 0x155   : > { %v821_v63 = vrot.slane %v820_v50, 4  ;;  %v847_v0 = vperm.slane %v810_v49, %v3216_v40 }
 0x157   : > { %v848_v12 = vrot.slane %v847_v0, 4 }
 0x15f   : > { %v921_v38 = vpop.permute.xlu1 %920  ;;  %v917_v39 = vpop.permute.xlu0 %916 }
 0x160   : > { %v926_v42 = vshrl.u32 %v917_v39, 16  ;;  %v924_v46 = vpack.i.b16 %v917_v39, %v914_v28  ;;  %v932_v54 = vshrl.u32 %v921_v38, 16 }
 0x162   : > { %v927_v48 = vpack.i.b16 %v926_v42, %v925_v41  ;;  %v938_v51 = vperm.slane %v924_v46, %v3216_v40 }
 0x164   : > { %v964_v55 = vperm.slane %v927_v48, %v3216_v40  ;;  %v946_v1 = vrot.slane %v938_v51, 4 }
 0x166   : > { %v972_v7 = vrot.slane %v964_v55, 4 }
 0x167   : > { %v919_v56 = vpop.permute.xlu0 %918  ;;  %v794_v57 = vpop.permute.xlu1 %793 }
 0x168   : > { %v930_v59 = vpack.i.b16 %v921_v38, %v919_v56  ;;  %v931_v60 = vshrl.u32 %v919_v56, 16  ;;  %v801_v61 = vpack.i.b16 %v794_v57, %v791_v29  ;;  %v803_v62 = vshrl.u32 %v794_v57, 16 }
 0x16a   : > { %v933_v3 = vpack.i.b16 %v932_v54, %v931_v60  ;;  %v943_v4 = vperm.slane %v930_v59, %v3216_v40  ;;  %v804_v5 = vpack.i.b16 %v803_v62, %v802_v58  ;;  %v815_v6 = vperm.slane %v801_v61, %v3216_v40 }
 0x16c   : > { %v944_v8 = vrot.slane %v943_v4, 4  ;;  %v947_v9 = vsel %vm822_vm0, %v943_v4, %v946_v1  ;;  %v969_v10 = vperm.slane %v933_v3, %v3216_v40  ;;  %v823_v11 = vsel %vm822_vm0, %v821_v63, %v815_v6 }
 0x16d   : > { %v955_v13 = vperm.slane %v947_v9, %v3222_v2  ;;  %v824_v14 = vrot.slane %v815_v6, 4  ;;  %v842_v15 = vperm.slane %v804_v5, %v3216_v40  ;;  %v829_v19 = vperm.slane %v823_v11, %v3222_v2 }
 0x16e   : > { %v945_v16 = vsel %vm822_vm0, %v944_v8, %v938_v51  ;;  %v970_v17 = vrot.slane %v969_v10, 4  ;;  %v973_v18 = vsel %vm822_vm0, %v969_v10, %v972_v7 }
 0x16f   : > { %v951_v21 = vperm.slane %v945_v16, %v3222_v2  ;;  %v958_v22 = vrot.slane %v955_v13, 4  ;;  %v981_v23 = vperm.slane %v973_v18, %v3222_v2  ;;  %v825_v24 = vsel %vm822_vm0, %v820_v50, %v824_v14 }
 0x170   : > { %v971_v25 = vsel %vm822_vm0, %v970_v17, %v964_v55  ;;  %v833_v26 = vperm.slane %v825_v24, %v3222_v2  ;;  %v849_v27 = vsel %vm822_vm0, %v848_v12, %v842_v15  ;;  %v834_v33 = vrot.slane %v829_v19, 4 }
 0x171   : > { %v956_v28 = vrot.slane %v951_v21, 4  ;;  %v959_v29 = vsel %vm822_vm0, 0, %v958_v22  ;;  %v977_v30 = vperm.slane %v971_v25, %v3222_v2  ;;  %v984_v31 = vrot.slane %v981_v23, 4 }
 0x172   : > { %v991_v32 = vrot.slane %v959_v29, 4  ;;  %v836_v35 = vrot.slane %v833_v26, 4  ;;  %v850_v36 = vrot.slane %v842_v15, 4  ;;  %v855_v41 = vperm.slane %v849_v27, %v3222_v2 }
 0x173   : > { %v957_v37 = vsel %vm822_vm0, 0, %v956_v28  ;;  %v982_v38 = vrot.slane %v977_v30, 4  ;;  %v985_v39 = vsel %vm822_vm0, 0, %v984_v31  ;;  %v835_v48 = vsel %vm822_vm0, 0, %v834_v33 }
 0x174   : > { %v1010_v42 = vrot.slane %v985_v39, 4  ;;  %v837_v43 = vsel %vm822_vm0, 0, %v836_v35  ;;  %v851_v44 = vsel %vm822_vm0, %v847_v0, %v850_v36  ;;  %v986_v49 = vsel %vm822_vm0, %v958_v22, %v951_v21 }
 0x175   : > { %v859_v45 = vperm.slane %v851_v44, %v3222_v2  ;;  %v869_v46 = vrot.slane %v837_v43, 4  ;;  %v983_v47 = vsel %vm822_vm0, 0, %v982_v38  ;;  %v992_v50 = vsel %vm822_vm0, %v991_v32, %v957_v37 }
 0x176   : > { %v1011_v51 = vsel %vm822_vm0, %v1010_v42, %v983_v47  ;;  %v860_v52 = vrot.slane %v855_v41, 4  ;;  %v996_v54 = vperm.slane %v992_v50, %v3216_v40  ;;  %v1005_v55 = vsel %vm822_vm0, %v984_v31, %v977_v30  ;;  %v1043_v50 = vpop.permute.xlu2 %1042 }
 0x177   : > { %v862_v53 = vrot.slane %v859_v45, 4  ;;  %v864_v56 = vsel %vm822_vm0, %v836_v35, %v829_v19  ;;  %v1015_v57 = vperm.slane %v1011_v51, %v3216_v40  ;;  %v870_v58 = vsel %vm822_vm0, %v869_v46, %v835_v48 }
 0x178   : > { %v990_v60 = vperm.slane %v986_v49, %v3216_v40  ;;  %v997_v61 = vrot.slane %v996_v54, 4  ;;  %v874_v62 = vperm.slane %v870_v58, %v3216_v40  ;;  %v1009_v0 = vperm.slane %v1005_v55, %v3216_v40  ;;  %v1041_v54 = vpop.permute.xlu1 %1040 }
 0x179   : > { %v863_v59 = vsel %vm822_vm0, 0, %v862_v53  ;;  %v1016_v1 = vrot.slane %v1015_v57, 4  ;;  %v861_v3 = vsel %vm822_vm0, 0, %v860_v52  ;;  %v868_v5 = vperm.slane %v864_v56, %v3216_v40 }
 0x17a   : > { %v888_v63 = vrot.slane %v863_v59, 4  ;;  %v998_v4 = vsel %vm822_vm0, %v997_v61, %v990_v60  ;;  %v875_v6 = vrot.slane %v874_v62, 4  ;;  %v883_v12 = vsel %vm822_vm0, %v862_v53, %v855_v41  ;;  %v1039_v53 = vpop.permute.xlu0 %1038 }
 0x17b   : > { %v1002_v7 = vperm.slane %v998_v4, %v3222_v2  ;;  %v1017_v8 = vsel %vm822_vm0, %v1016_v1, %v1009_v0  ;;  %v887_v23 = vperm.slane %v883_v12, %v3216_v40  ;;  %v1047_v51 = vshrl.u32 %v3208_v34, 16 }
 0x17c   : > { %v889_v9 = vsel %vm822_vm0, %v888_v63, %v861_v3  ;;  %v1021_v10 = vperm.slane %v1017_v8, %v3222_v2  ;;  %v876_v11 = vsel %vm822_vm0, %v875_v6, %v868_v5  ;;  %v1054_v52 = vshrl.u32 %v1043_v50, 16 }
 0x17d   : > { %v893_v13 = vperm.slane %v889_v9, %v3216_v40  ;;  %v1027_v14 = vshrl.u32 %v1002_v7, 16  ;;  %v1003_v15 = vrot.slane %v1002_v7, 4  ;;  %v880_v16 = vperm.slane %v876_v11, %v3222_v2 }
 0x17e   : > { %v1026_v17 = vpack.i.b16 %v1021_v10, %v1002_v7  ;;  %v1028_v18 = vshrl.u32 %v1021_v10, 16  ;;  %v1022_v19 = vrot.slane %v1021_v10, 4  ;;  %v1046_v55 = vpack.i.b16 %v1039_v53, %v3208_v34 }
 0x17f   : > { %v894_v21 = vrot.slane %v893_v13, 4  ;;  %v1004_v22 = vsel %vm822_vm0, 0, %v1003_v15  ;;  %v881_v32 = vrot.slane %v880_v16, 4  ;;  %v905_v47 = vshrl.u32 %v880_v16, 16 }
 0x180   : > { %v1163_v24 = vsel %vm1158_vm1, %v1026_v17, 0  ;;  %v1029_v25 = vpack.i.b16 %v1028_v18, %v1027_v14  ;;  %v1023_v26 = vsel %vm822_vm0, 0, %v1022_v19  ;;  %v1033_v27 = vshrl.u32 %v1004_v22, 16 }
 0x181   : > { %1172 = vmatpush.bf16.xpose.msra.mxu3 %v1163_v24  ;;  %v1034_v28 = vshrl.u32 %v1023_v26, 16  ;;  %v895_v29 = vsel %vm822_vm0, %v894_v21, %v887_v23  ;;  %v1032_v35 = vpack.i.b16 %v1023_v26, %v1004_v22  ;;  %v882_v39 = vsel %vm822_vm0, 0, %v881_v32 }
 0x182   : > { %v1182_v30 = vsel %vm1158_vm1, %v1029_v25, 0  ;;  %v899_v31 = vperm.slane %v895_v29, %v3222_v2  ;;  %v911_v44 = vshrl.u32 %v882_v39, 16  ;;  %v1048_v56 = vshrl.u32 %v1039_v53, 16 }
 0x183   : > { %v1035_v33 = vpack.i.b16 %v1034_v28, %v1033_v27  ;;  %v1201_v43 = vsel %vm1158_vm1, %v1032_v35, 0  ;;  %v1052_v57 = vpack.i.b16 %v1043_v50, %v1041_v54  ;;  %v1053_v58 = vshrl.u32 %v1041_v54, 16 }
 0x184   : > { %v900_v36 = vrot.slane %v899_v31, 4  ;;  %v904_v38 = vpack.i.b16 %v899_v31, %v880_v16  ;;  %v906_v46 = vshrl.u32 %v899_v31, 16  ;;  %v1049_v59 = vpack.i.b16 %v1048_v56, %v1047_v51 }
 0x185   : > { %v1220_v37 = vsel %vm1158_vm1, %v1035_v33, 0  ;;  %v1060_v60 = vperm.slane %v1046_v55, %v3216_v40  ;;  %v1055_v61 = vpack.i.b16 %v1054_v52, %v1053_v58  ;;  %v1065_v62 = vperm.slane %v1052_v57, %v3216_v40 }
 0x186   : > { %1229 = vmatpush.bf16.xpose.msrb.mxu0 %v1220_v37  ;;  %v901_v41 = vsel %vm822_vm0, 0, %v900_v36  ;;  %v907_v48 = vpack.i.b16 %v906_v46, %v905_v47  ;;  %v1086_v0 = vperm.slane %v1049_v59, %v3216_v40 }
 0x187   : > { %v912_v42 = vshrl.u32 %v901_v41, 16  ;;  %v910_v49 = vpack.i.b16 %v901_v41, %v882_v39  ;;  %v1068_v63 = vrot.slane %v1060_v60, 4  ;;  %v1066_v1 = vrot.slane %v1065_v62, 4 }
 0x188   : > { %2270 = vmatmul.msk.bf16.vlgmr.msra.gmra.mxu3 %vm1158_vm1, %v904_v38  ;;  %v1091_v3 = vperm.slane %v1055_v61, %v3216_v40  ;;  %v1094_v4 = vrot.slane %v1086_v0, 4 }
 0x189   : > { %1191 = vmatpush.bf16.xpose.msrb.mxu3 %v1182_v30  ;;  %v913_v45 = vpack.i.b16 %v912_v42, %v911_v44  ;;  %v1069_v5 = vsel %vm822_vm0, %v1065_v62, %v1068_v63  ;;  %v1067_v34 = vsel %vm822_vm0, %v1066_v1, %v1060_v60 }
 0x18a   : > { %v1092_v6 = vrot.slane %v1091_v3, 4  ;;  %v1077_v7 = vperm.slane %v1069_v5, %v3222_v2  ;;  %v1095_v8 = vsel %vm822_vm0, %v1091_v3, %v1094_v4  ;;  %v1073_v11 = vperm.slane %v1067_v34, %v3222_v2 }
 0x18b   : > { %v1103_v10 = vperm.slane %v1095_v8, %v3222_v2 }
 0x18c   : > { %v1093_v9 = vsel %vm822_vm0, %v1092_v6, %v1086_v0  ;;  %v1080_v12 = vrot.slane %v1077_v7, 4  ;;  %v1078_v15 = vrot.slane %v1073_v11, 4 }
 0x18d   : > { %2273 = vmatmul.msk.bf16.vlgmr.msrb.gmra.mxu0 %vm1158_vm1, %v913_v45  ;;  %v1106_v13 = vrot.slane %v1103_v10, 4  ;;  %v1099_v14 = vperm.slane %v1093_v9, %v3222_v2 }
 0x18e   : > { %v1081_v16 = vsel %vm822_vm0, 0, %v1080_v12  ;;  %v1079_v22 = vsel %vm822_vm0, 0, %v1078_v15  ;;  %v1108_v28 = vsel %vm822_vm0, %v1080_v12, %v1073_v11 }
 0x18f   : > { %v1107_v17 = vsel %vm822_vm0, 0, %v1106_v13  ;;  %v1104_v18 = vrot.slane %v1099_v14, 4  ;;  %v1113_v19 = vrot.slane %v1081_v16, 4  ;;  %v1127_v29 = vsel %vm822_vm0, %v1106_v13, %v1099_v14 }
 0x190   : > { %v1132_v21 = vrot.slane %v1107_v17, 4  ;;  %v1112_v30 = vperm.slane %v1108_v28, %v3216_v40  ;;  %v1131_v32 = vperm.slane %v1127_v29, %v3216_v40 }
 0x191   : > { %1210 = vmatpush.bf16.xpose.msra.mxu3 %v1201_v43  ;;  %v1105_v23 = vsel %vm822_vm0, 0, %v1104_v18  ;;  %v1114_v24 = vsel %vm822_vm0, %v1113_v19, %v1079_v22 }
 0x192   : > { %v1133_v25 = vsel %vm822_vm0, %v1132_v21, %v1105_v23  ;;  %v1118_v26 = vperm.slane %v1114_v24, %v3216_v40 }
 0x193   : > { %v1137_v27 = vperm.slane %v1133_v25, %v3216_v40 }
 0x194   : > { %v1119_v31 = vrot.slane %v1118_v26, 4 }
 0x195   : > { %v1138_v33 = vrot.slane %v1137_v27, 4 }
 0x196   : > { %v1120_v35 = vsel %vm822_vm0, %v1119_v31, %v1112_v30 }
 0x197   : > { %v1139_v36 = vsel %vm822_vm0, %v1138_v33, %v1131_v32  ;;  %v1124_v37 = vperm.slane %v1120_v35, %v3222_v2 }
 0x198   : > { %2271 = vmatmul.msk.bf16.vlgmr.msrb.gmra.mxu3 %vm1158_vm1, %v907_v48  ;;  %v1143_v38 = vperm.slane %v1139_v36, %v3222_v2 }
 0x199   : > { %v1149_v41 = vshrl.u32 %v1124_v37, 16  ;;  %v1125_v43 = vrot.slane %v1124_v37, 4 }
 0x19a   : > { %v1148_v39 = vpack.i.b16 %v1143_v38, %v1124_v37  ;;  %v1150_v42 = vshrl.u32 %v1143_v38, 16  ;;  %v1144_v44 = vrot.slane %v1143_v38, 4 }
 0x19b   : > { %v1126_v47 = vsel %vm822_vm0, 0, %v1125_v43 }
 0x19c   : > { %v1281_v45 = vsel %vm1279_vm2, %v1148_v39, 0  ;;  %v1151_v46 = vpack.i.b16 %v1150_v42, %v1149_v41  ;;  %v1145_v48 = vsel %vm822_vm0, 0, %v1144_v44 }
 0x19d   : > { %1290 = vmatpush.bf16.msrb.mxu2 %v1281_v45  ;;  %v1154_v51 = vpack.i.b16 %v1145_v48, %v1126_v47  ;;  %v1156_v52 = vshrl.u32 %v1145_v48, 16 }
 0x19e   : > { %v1300_v50 = vsel %vm1279_vm2, %v1151_v46, 0 }
 0x19f   : > { %v1319_v53 = vsel %vm1279_vm2, %v1154_v51, 0 }
 0x1a0   : > { %1328 = vmatpush.bf16.msrb.mxu3 %v1319_v53 }
 0x1a1   : > { %1309 = vmatpush.bf16.msra.mxu2 %v1300_v50 }
 0x1a8   : > { %2272 = vmatmul.msk.bf16.vlgmr.msra.gmra.mxu3 %vm1158_vm1, %v910_v49  ;;  %v1155_v49 = vshrl.u32 %v1126_v47, 16 }
 0x1aa   : > { %v1157_v54 = vpack.i.b16 %v1156_v52, %v1155_v49 }
 0x1ac   : > { %v1338_v55 = vsel %vm1279_vm2, %v1157_v54, 0 }
 0x1ad   : > { %1347 = vmatpush.bf16.msra.mxu0 %v1338_v55 }
 0x20a   : > { %v1231_v56 = vpop.f32.mrf.mxu0 }
 0x20b   : > { %v1174_v57 = vpop.f32.mrf.mxu3  ;;  %v1245_v0 = vsel %vm1235_vm3, %v1231_v56, -inf }
 0x20c   : > { %v1236_v58 = vsel %vm1235_vm3, %v1174_v57, -inf }
 0x20d   : > { %1237 = vmax.xlane.f32.xlu0 %v1236_v58 }
 0x212   : > { %v1233_v59 = vpop.f32.mrf.mxu0 }
 0x213   : > { %v1176_v60 = vpop.f32.mrf.mxu3 }
 0x21b   : > { %v1193_v61 = vpop.f32.mrf.mxu3 }
 0x21c   : > { %v1239_v62 = vsel %vm1235_vm3, %v1193_v61, -inf }
 0x21d   : > { %1240 = vmax.xlane.f32.xlu2 %v1239_v62 }
 0x223   : > { %v1195_v63 = vpop.f32.mrf.mxu3 }
 0x225   : > { %1246 = vmax.xlane.f32.xlu2 %v1245_v0 }
 0x22b   : > { %v1212_v1 = vpop.f32.mrf.mxu3 }
 0x22c   : > { %v1242_v3 = vsel %vm1235_vm3, %v1212_v1, -inf }
 0x22d   : > { %1243 = vmax.xlane.f32.xlu1 %v1242_v3 }
 0x233   : > { %v1214_v4 = vpop.f32.mrf.mxu3 }
 0x280   : > { %v1238_v5 = vpop.xlane.xlu0 %1237 }
 0x281   : > { %v1248_v6 = vsub.f32 %v1174_v57, %v1238_v5 }
 0x283   : > { %v1252_v34 = vmul.f32 1.442695, %v1248_v6 }
 0x285   : > { %2628 = vpow2.f32 %v1252_v34 }
 0x28b   : > { %v2629_v7 = vpop.eup %2628 }
 0x28c   : > { %v1260_v8 = vsel %vm1235_vm3, %v2629_v7, 0.0  ;;  %v1272_v9 = vpack.c.bf16 %v2629_v7, %v2629_v7 }
 0x28d   : > { %1261 = vadd.xlane.f32.xlu1 %v1260_v8 }
 0x28e   : > { %2274 = vmatmul.msk.bf16.vlgmr.msrb.gmra.mxu2 %vm1235_vm3, %v1272_v9 }
 0x290   : > { %v1241_v10 = vpop.xlane.xlu2 %1240 }
 0x291   : > { %v1249_v11 = vsub.f32 %v1193_v61, %v1241_v10 }
 0x293   : > { %v1254_v12 = vmul.f32 1.442695, %v1249_v11 }
 0x295   : > { %2630 = vpow2.f32 %v1254_v12 }
 0x298   : > { %v1247_v13 = vpop.xlane.xlu2 %1246 }
 0x299   : > { %v1251_v14 = vsub.f32 %v1231_v56, %v1247_v13  ;;  %v2473_v13 = vld [vmem:[#allocation10 + $0x38] sm:$0xff] }
 0x29a   : > { %1606 = vmatpush.bf16.msrb.mxu1 %v2473_v13 }
 0x29b   : > { %v2631_v15 = vpop.eup %2630  ;;  %v1258_v16 = vmul.f32 1.442695, %v1251_v14 }
 0x29c   : > { %v1273_v17 = vpack.c.bf16 %v2631_v15, %v2631_v15  ;;  %v1263_v28 = vsel %vm1235_vm3, %v2631_v15, 0.0 }
 0x29d   : > { %2632 = vpow2.f32 %v1258_v16 }
 0x29e   : > { %2275 = vmatmul.msk.bf16.vlgmr.msra.gmra.mxu2 %vm1235_vm3, %v1273_v17 }
 0x2a0   : > { %v1244_v18 = vpop.xlane.xlu1 %1243 }
 0x2a1   : > { %v1250_v19 = vsub.f32 %v1212_v1, %v1244_v18 }
 0x2a3   : > { %v2633_v21 = vpop.eup %2632  ;;  %v1256_v22 = vmul.f32 1.442695, %v1250_v19 }
 0x2a4   : > { %v1275_v23 = vpack.c.bf16 %v2633_v21, %v2633_v21  ;;  %v1269_v24 = vsel %vm1235_vm3, %v2633_v21, 0.0 }
 0x2a5   : > { %2634 = vpow2.f32 %v1256_v22  ;;  %1270 = vadd.xlane.f32.xlu2 %v1269_v24 }
 0x2a6   : > { %2277 = vmatmul.msk.bf16.vlgmr.msra.gmra.mxu0 %vm1235_vm3, %v1275_v23 }
 0x2ab   : > { %v2635_v25 = vpop.eup %2634 }
 0x2ac   : > { %v1274_v26 = vpack.c.bf16 %v2635_v25, %v2635_v25  ;;  %v1266_v27 = vsel %vm1235_vm3, %v2635_v25, 0.0 }
 0x2ad   : > { %1267 = vadd.xlane.f32.xlu0 %v1266_v27 }
 0x2ae   : > { %2276 = vmatmul.msk.bf16.vlgmr.msrb.gmra.mxu3 %vm1235_vm3, %v1274_v26 }
 0x2b5   : > { %1264 = vadd.xlane.f32.xlu0 %v1263_v28 }
 0x300   : > { %v1262_v29 = vpop.xlane.xlu1 %1261 }
 0x301   : > { %2636 = vrcp.f32 %v1262_v29  ;;  %v1364_v47 = vand.u32 2147483648, %v1262_v29  ;;  %vm1358_vm5 = vweird.f32 %v1262_v29  ;;  %v1362_v51 = vand.u32 2147483647, %v1262_v29 }
 0x303   : > { %v1365_v55 = vor.u32 1.1754944e-38, %v1364_v47  ;;  %vm1363_vm9 = vcmp.eq.f32.partialorder %v1362_v51, 8.507059e+37 }
 0x307   : > { %v2637_v31 = vpop.eup %2636 }
 0x308   : > { %v1354_v35 = vmul.f32 %v2637_v31, %v1262_v29  ;;  %vm1359_vm4 = vweird.f32 %v2637_v31 }
 0x309   : > { %vm1360_vm6 = vmor %vm1358_vm5, %vm1359_vm4 }
 0x30a   : > { %v1355_v37 = vsub.f32 1.0, %v1354_v35 }
 0x30c   : > { %v1356_v42 = vmul.f32 %v2637_v31, %v1355_v37 }
 0x30e   : > { %v1357_v46 = vadd.f32 %v2637_v31, %v1356_v42 }
 0x310   : > { %v1361_v54 = vsel %vm1360_vm6, %v2637_v31, %v1357_v46  ;;  %vm1537_vm6 = vcmask 523264  }
 0x311   : > { %v1292_v30 = vpop.f32.mrf.mxu2  ;;  %v1366_v62 = vsel %vm1363_vm9, %v1365_v55, %v1361_v54 }
 0x312   : > { %v1409_v7 = vmul.f32 %v1366_v62, %v1292_v30 }
 0x314   : > { %v1416_v19 = vrot.slane %v1409_v7, 4 }
 0x318   : > { %v1271_v32 = vpop.xlane.xlu2 %1270 }
 0x319   : > { %2638 = vrcp.f32 %v1271_v32  ;;  %v1294_v33 = vpop.f32.mrf.mxu2  ;;  %vm1400_vm10 = vweird.f32 %v1271_v32  ;;  %v1406_v61 = vand.u32 2147483648, %v1271_v32  ;;  %v1404_v0 = vand.u32 2147483647, %v1271_v32 }
 0x31b   : > { %v1407_v8 = vor.u32 1.1754944e-38, %v1406_v61  ;;  %vm1405_vm15 = vcmp.eq.f32.partialorder %v1404_v0, 8.507059e+37 }
 0x31f   : > { %v2639_v36 = vpop.eup %2638 }
 0x320   : > { %v1396_v38 = vmul.f32 %v2639_v36, %v1271_v32  ;;  %v1268_v39 = vpop.xlane.xlu0 %1267  ;;  %vm1401_vm7 = vweird.f32 %v2639_v36 }
 0x321   : > { %2640 = vrcp.f32 %v1268_v39  ;;  %v3336_v41 = vpop.f32.mrf.mxu2  ;;  %v1392_v57 = vand.u32 2147483648, %v1268_v39  ;;  %v1390_v60 = vand.u32 2147483647, %v1268_v39  ;;  %vm3338_vm11 = vmor %vm1400_vm10, %vm1401_vm7  ;;  %vm1386_vm12 = vweird.f32 %v1268_v39 }
 0x322   : > { %v1397_v44 = vsub.f32 1.0, %v1396_v38  ;;  %vm1539_vm7 = vcmask 785408  }
 0x323   : > { %v1349_v43 = vpop.f32.mrf.mxu0  ;;  %v1393_v4 = vor.u32 1.1754944e-38, %v1392_v57  ;;  %vm1391_vm14 = vcmp.eq.f32.partialorder %v1390_v60, 8.507059e+37 }
 0x324   : > { %v1398_v49 = vmul.f32 %v2639_v36, %v1397_v44 }
 0x326   : > { %v1399_v58 = vadd.f32 %v2639_v36, %v1398_v49 }
 0x327   : > { %v2641_v45 = vpop.eup %2640 }
 0x328   : > { %v1382_v48 = vmul.f32 %v2641_v45, %v1268_v39  ;;  %v1265_v50 = vpop.xlane.xlu0 %1264  ;;  %vm1387_vm8 = vweird.f32 %v2641_v45  ;;  %v1403_v5 = vsel %vm3338_vm11, %v2639_v36, %v1399_v58 }
 0x329   : > { %2642 = vrcp.f32 %v1265_v50  ;;  %v1313_v52 = vpop.f32.mrf.mxu2  ;;  %vm1388_vm13 = vmor %vm1386_vm12, %vm1387_vm8  ;;  %v1408_v14 = vsel %vm1405_vm15, %v1407_v8, %v1403_v5  ;;  %v1378_v15 = vand.u32 2147483648, %v1265_v50  ;;  %v1376_v17 = vand.u32 2147483647, %v1265_v50 }
 0x32a   : > { %v1383_v53 = vsub.f32 1.0, %v1382_v48  ;;  %v1412_v21 = vmul.f32 %v1408_v14, %v1349_v43  ;;  %vm1372_vm3 = vweird.f32 %v1265_v50 }
 0x32b   : > { %v1351_v56 = vpop.f32.mrf.mxu0  ;;  %v1379_v24 = vor.u32 1.1754944e-38, %v1378_v15  ;;  %vm1377_vm5 = vcmp.eq.f32.partialorder %v1376_v17, 8.507059e+37 }
 0x32c   : > { %v1384_v59 = vmul.f32 %v2641_v45, %v1383_v53  ;;  %v1426_v30 = vrot.slane %v1412_v21, 4 }
 0x32e   : > { %v1385_v1 = vadd.f32 %v2641_v45, %v1384_v59 }
 0x32f   : > { %v2643_v3 = vpop.eup %2642 }
 0x330   : > { %v1368_v6 = vmul.f32 %v2643_v3, %v1265_v50  ;;  %v1389_v34 = vsel %vm1388_vm13, %v2641_v45, %v1385_v1  ;;  %vm1373_vm2 = vweird.f32 %v2643_v3 }
 0x331   : > { %v1330_v9 = vpop.f32.mrf.mxu3  ;;  %v1394_v10 = vsel %vm1391_vm14, %v1393_v4, %v1389_v34  ;;  %vm1374_vm4 = vmor %vm1372_vm3, %vm1373_vm2 }
 0x332   : > { %v1369_v11 = vsub.f32 1.0, %v1368_v6  ;;  %v1411_v12 = vmul.f32 %v1394_v10, %v1330_v9 }
 0x334   : > { %v1370_v16 = vmul.f32 %v2643_v3, %v1369_v11  ;;  %v1413_v18 = vrot.slane %v1411_v12, 4  ;;  %v1417_v26 = vsel %vm822_vm0, %v1411_v12, %v1416_v19 }
 0x335   : > { %v1425_v32 = vperm.slane %v1417_v26, %v3216_v40  ;;  %v2472_v26 = vld [vmem:[#allocation10 + $0x30] sm:$0xff] }
 0x336   : > { %v1371_v22 = vadd.f32 %v2643_v3, %v1370_v16  ;;  %v1415_v23 = vsel %vm822_vm0, %v1413_v18, %v1409_v7  ;;  %1607 = vmatpush.bf16.msrb.mxu1 %v2472_v26 }
 0x337   : > { %v1421_v28 = vperm.slane %v1415_v23, %v3216_v40  ;;  %v1452_v44 = vrot.slane %v1425_v32, 4 }
 0x338   : > { %v1375_v25 = vsel %vm1374_vm4, %v2643_v3, %v1371_v22 }
 0x339   : > { %v1380_v27 = vsel %vm1377_vm5, %v1379_v24, %v1375_v25  ;;  %v1332_v29 = vpop.f32.mrf.mxu3  ;;  %v1440_v37 = vrot.slane %v1421_v28, 4 }
 0x33a   : > { %v1410_v31 = vmul.f32 %v1380_v27, %v3336_v41  ;;  %v2471_v27 = vld [vmem:[#allocation10 + $0x28] sm:$0xff]  ;;  %v2468_v29 = vld [vmem:[#allocation10 + $0x10] sm:$0xff] }
 0x33b   : > { %1608 = vmatpush.bf16.msrb.mxu1 %v2471_v27 }
 0x33c   : > { %v1427_v33 = vsel %vm822_vm0, %v1426_v30, %v1410_v31  ;;  %v1428_v35 = vrot.slane %v1410_v31, 4  ;;  %v2467_v30 = vld [vmem:[#allocation10 + $0x8] sm:$0xff]  ;;  %v2466_v31 = vld [vmem:[#allocation10] sm:$0xff] }
 0x33d   : > { %v1433_v36 = vperm.slane %v1427_v33, %v3216_v40 }
 0x33e   : > { %v1429_v38 = vsel %vm822_vm0, %v1412_v21, %v1428_v35 }
 0x33f   : > { %v1437_v39 = vperm.slane %v1429_v38, %v3216_v40  ;;  %v1438_v42 = vrot.slane %v1433_v36, 4  ;;  %v1441_v43 = vsel %vm822_vm0, %v1433_v36, %v1440_v37 }
 0x340   : > { %v1449_v45 = vperm.slane %v1441_v43, %v3222_v2 }
 0x341   : > { %v1439_v41 = vsel %vm822_vm0, %v1438_v42, %v1421_v28  ;;  %v1450_v46 = vrot.slane %v1437_v39, 4  ;;  %v1453_v47 = vsel %vm822_vm0, %v1437_v39, %v1452_v44  ;;  %v2470_v28 = vld [vmem:[#allocation10 + $0x20] sm:$0xff] }
 0x342   : > { %v1445_v48 = vperm.slane %v1439_v41, %v3222_v2  ;;  %v1461_v49 = vperm.slane %v1453_v47, %v3222_v2  ;;  %v1464_v50 = vrot.slane %v1449_v45, 4  ;;  %1609 = vmatpush.bf16.msrb.mxu1 %v2470_v28  ;;  %v2959_v45 = vmov 128.0   ;;  %v2320_v28 = vld [vmem:[#allocation11 + $0x10] sm:$0xf] }
 0x343   : > { %v1451_v51 = vsel %vm822_vm0, %v1450_v46, %v1425_v32  ;;  %2644 = vrcp.f32 %v2959_v45 }
 0x344   : > { %v1457_v52 = vperm.slane %v1451_v51, %v3222_v2  ;;  %v1462_v53 = vrot.slane %v1445_v48, 4  ;;  %v1465_v54 = vsel %vm822_vm0, 0.0, %v1464_v50  ;;  %v1468_v55 = vrot.slane %v1461_v49, 4 }
 0x345   : > { %v1475_v56 = vrot.slane %v1465_v54, 4  ;;  %v1470_v57 = vsel %vm822_vm0, %v1464_v50, %v1445_v48  ;;  %v2368_v54 = vld [vmem:[#allocation11 + $0x70] sm:$0xf] }
 0x346   : > { %v1466_v58 = vrot.slane %v1457_v52, 4  ;;  %v1469_v59 = vsel %vm822_vm0, 0.0, %v1468_v55  ;;  %v1463_v60 = vsel %vm822_vm0, 0.0, %v1462_v53  ;;  %v1474_v61 = vperm.slane %v1470_v57, %v3216_v40 }
 0x347   : > { %v1486_v62 = vrot.slane %v1469_v59, 4  ;;  %v1476_v63 = vsel %vm822_vm0, %v1475_v56, %v1463_v60  ;;  %v1481_v0 = vsel %vm822_vm0, %v1468_v55, %v1457_v52  ;;  %v2489_v55 = vld [vmem:[#allocation11 + $0x74] sm:$0xf0]  ;;  %v2488_v56 = vld [vmem:[#allocation11 + $0x74] sm:$0xf] }
 0x348   : > { %v1467_v1 = vsel %vm822_vm0, 0.0, %v1466_v58  ;;  %v1480_v3 = vperm.slane %v1476_v63, %v3216_v40  ;;  %v1485_v4 = vperm.slane %v1481_v0, %v3216_v40  ;;  %v1494_v5 = vrot.slane %v1474_v61, 4  ;;  %v2370_v58 = vld [vmem:[#allocation11 + $0x78] sm:$0xf0]  ;;  %v2360_v60 = vld [vmem:[#allocation11 + $0x60] sm:$0xf] }
 0x349   : > { %v1487_v6 = vsel %vm822_vm0, %v1486_v62, %v1467_v1  ;;  %v2645_v41 = vpop.eup %2644  ;;  %v2369_v57 = vor.u32 %v2489_v55, %v2368_v54  ;;  %v2373_v59 = vor.u32 %v2488_v56, %v2370_v58  ;;  %v2486_v62 = vld [vmem:[#allocation11 + $0x64] sm:$0xf]  ;;  %v2362_v0 = vld [vmem:[#allocation11 + $0x68] sm:$0xf0] }
 0x34a   : > { %v1491_v34 = vperm.slane %v1487_v6, %v3216_v40  ;;  %v1495_v7 = vsel %vm822_vm0, %v1480_v3, %v1494_v5  ;;  %v1506_v8 = vrot.slane %v1485_v4, 4  ;;  %v1492_v9 = vrot.slane %v1480_v3, 4  ;;  %v2352_v3 = vld [vmem:[#allocation11 + $0x50] sm:$0xf]  ;;  %v2484_v5 = vld [vmem:[#allocation11 + $0x54] sm:$0xf] }
 0x34b   : > { %v1503_v10 = vperm.slane %v1495_v7, %v3222_v2  ;;  %v1624_v46 = vmul.f32 128.0, %v2645_v41  ;;  %1775 = vmatpush.bf16.msrb.mxu2 %v2369_v57  ;;  %1788 = vmatpush.bf16.msra.mxu3 %v2373_v59  ;;  %v2365_v1 = vor.u32 %v2486_v62, %v2362_v0  ;;  %v2344_v7 = vld [vmem:[#allocation11 + $0x40] sm:$0xf]  ;;  %v2495_v56 = vld [vmem:[#allocation13 + $0x28] sm:$0xff] }
 0x34c   : > { %v1507_v11 = vsel %vm822_vm0, %v1491_v34, %v1506_v8  ;;  %v1493_v12 = vsel %vm822_vm0, %v1492_v9, %v1474_v61  ;;  %v1504_v13 = vrot.slane %v1491_v34, 4  ;;  %v2487_v61 = vld [vmem:[#allocation11 + $0x64] sm:$0xf0]  ;;  %v2354_v34 = vld [vmem:[#allocation11 + $0x58] sm:$0xf0]  ;;  %v2494_v59 = vld [vmem:[#allocation13 + $0x20] sm:$0xff] }
 0x34d   : > { %v1515_v14 = vperm.slane %v1507_v11, %v3222_v2  ;;  %v1522_v15 = vrot.slane %v1503_v10, 4  ;;  %v1499_v16 = vperm.slane %v1493_v12, %v3222_v2  ;;  %v1625_v47 = vsub.f32 1.0, %v1624_v46  ;;  %v2483_v8 = vld [vmem:[#allocation11 + $0x44] sm:$0xf0]  ;;  %v2346_v11 = vld [vmem:[#allocation11 + $0x48] sm:$0xf0] }
 0x34e   : > { %v1505_v17 = vsel %vm822_vm0, %v1504_v13, %v1485_v4  ;;  %v2361_v63 = vor.u32 %v2487_v61, %v2360_v60  ;;  %v2485_v4 = vld [vmem:[#allocation11 + $0x54] sm:$0xf0]  ;;  %v2357_v9 = vor.u32 %v2484_v5, %v2354_v34  ;;  %v2345_v12 = vor.u32 %v2483_v8, %v2344_v7  ;;  %v2503_v58 = vld [vmem:[#allocation13 + $0x68] sm:$0xff]  ;;  %v2502_v60 = vld [vmem:[#allocation13 + $0x60] sm:$0xff] }
 0x34f   : > { %v1523_v40 = vsel %vm822_vm0, %v1515_v14, %v1522_v15  ;;  %v1520_v18 = vrot.slane %v1515_v14, 4  ;;  %v1511_v19 = vperm.slane %v1505_v17, %v3222_v2  ;;  %v1518_v21 = vrot.slane %v1499_v16, 4  ;;  %v2469_v2 = vld [vmem:[#allocation10 + $0x18] sm:$0xff]  ;;  %1789 = vmatpush.bf16.msra.mxu3 %v2365_v1  ;;  %v2336_v14 = vld [vmem:[#allocation11 + $0x30] sm:$0xf] }
 0x350   : > { %1533 = vrot.lane.b32.xlu0 %v1523_v40, %s2955_s16  ;;  %1610 = vmatpush.bf16.msrb.mxu1 %v2469_v2  ;;  %v1626_v48 = vmul.f32 %v2645_v41, %v1625_v47  ;;  %v2353_v6 = vor.u32 %v2485_v4, %v2352_v3  ;;  %v2481_v15 = vld [vmem:[#allocation11 + $0x34] sm:$0xf0]  ;;  %v2480_v17 = vld [vmem:[#allocation11 + $0x34] sm:$0xf]  ;;  %v2338_v40 = vld [vmem:[#allocation11 + $0x38] sm:$0xf0] }
 0x351   : > { %v1521_v22 = vsel %vm822_vm0, %v1520_v18, %v1503_v10  ;;  %v1516_v23 = vrot.slane %v1511_v19, 4  ;;  %v1519_v24 = vsel %vm822_vm0, %v1511_v19, %v1518_v21  ;;  %1776 = vmatpush.bf16.msrb.mxu2 %v2361_v63  ;;  %v2482_v10 = vld [vmem:[#allocation11 + $0x44] sm:$0xf]  ;;  %v2337_v19 = vor.u32 %v2481_v15, %v2336_v14  ;;  %v2477_v2 = vld [vmem:[#allocation11 + $0x14] sm:$0xf0]  ;;  %v2492_v3 = vld [vmem:[#allocation13 + $0x10] sm:$0xff] }
 0x352   : > { %1529 = vrot.lane.b32.xlu2 %v1521_v22, %s2956_s1  ;;  %1525 = vrot.lane.b32.xlu1 %v1519_v24, %s2954_s4  ;;  %v1627_v49 = vadd.f32 %v2645_v41, %v1626_v48  ;;  %v2349_v13 = vor.u32 %v2482_v10, %v2346_v11  ;;  %v2341_v21 = vor.u32 %v2480_v17, %v2338_v40  ;;  %v2328_v22 = vld [vmem:[#allocation11 + $0x20] sm:$0xf]  ;;  %v2478_v24 = vld [vmem:[#allocation11 + $0x24] sm:$0xf]  ;;  %v2497_v46 = vld [vmem:[#allocation13 + $0x38] sm:$0xff]  ;;  %s3489_s4 = sld [smem:[#allocation25_spill]] }
 0x353   : > { %v1517_v25 = vsel %vm822_vm0, %v1516_v23, %v1499_v16  ;;  %vm1628_vm0 = vweird.f32 %v2645_v41  ;;  %1790 = vmatpush.bf16.msra.mxu3 %v2357_v9  ;;  %v2479_v23 = vld [vmem:[#allocation11 + $0x24] sm:$0xf0]  ;;  %v2505_v47 = vld [vmem:[#allocation13 + $0x78] sm:$0xff]  ;;  %1937 = vmatpush.bf16.msrb.mxu0 %v2497_v46  ;;  %v2500_v5 = vld [vmem:[#allocation13 + $0x50] sm:$0xff]  ;;  %s2884_s16 = scalar_lea.hbm %s3490_s19, 16 }
 0x354   : > { %1611 = vmatpush.bf16.msrb.mxu1 %v2468_v29  ;;  %v3390_v50 = vsel %vm1628_vm0, %v2645_v41, %v1627_v49  ;;  %v2329_v26 = vor.u32 %v2479_v23, %v2328_v22  ;;  %v2476_v29 = vld [vmem:[#allocation11 + $0x14] sm:$0xf]  ;;  %v2493_v61 = vld [vmem:[#allocation13 + $0x18] sm:$0xff]  ;;  %v2491_v17 = vld [vmem:[#allocation13 + $0x8] sm:$0xff]  ;;  %p2886_p7 = scmp.lt.s32.totalorder %s2884_s16, %s2880_s13 }
 0x355   : > { %1777 = vmatpush.bf16.msrb.mxu2 %v2353_v6  ;;  %v2496_v49 = vld [vmem:[#allocation13 + $0x30] sm:$0xff]  ;;  %v2501_v63 = vld [vmem:[#allocation13 + $0x58] sm:$0xff]  ;;  %v2499_v40 = vld [vmem:[#allocation13 + $0x48] sm:$0xff] }
 0x356   : > { %v2623_v6 = vld [vmem:[%s3461_s9] ss:$0 sm:$0xff]  ;;  %p2887_p8 = por %p2886_p7, %p2885_p12 }
 0x357   : > { %1791 = vmatpush.bf16.msra.mxu3 %v2349_v13  ;;  %1938 = vmatpush.bf16.msrb.mxu0 %v2496_v49 }
 0x358   : > { %1612 = vmatpush.bf16.msrb.mxu1 %v2467_v30  ;;  %v2322_v30 = vld [vmem:[#allocation11 + $0x18] sm:$0xf0]  ;;  %p2888_p9 = pnand %p2887_p8, %p2883_p5 }
 0x359   : > { %1778 = vmatpush.bf16.msrb.mxu2 %v2345_v12  ;;  %v2624_v12 = vld [vmem:[%s3462_s10] ss:$0 sm:$0xff] }
 0x35b   : > { %1792 = vmatpush.bf16.msra.mxu3 %v2341_v21  ;;  %1939 = vmatpush.bf16.msrb.mxu0 %v2495_v56 }
 0x35c   : > { %1613 = vmatpush.bf16.msrb.mxu1 %v2466_v31 }
 0x35d   : > { %1779 = vmatpush.bf16.msrb.mxu2 %v2337_v19  ;;  %v2498_v19 = vld [vmem:[#allocation13 + $0x40] sm:$0xff] }
 0x35f   : > { %1940 = vmatpush.bf16.msrb.mxu0 %v2494_v59 }
 0x360   : > { %1950 = vmatpush.bf16.msra.mxu1 %v2505_v47 }
 0x361   : > { %1780 = vmatpush.bf16.msrb.mxu2 %v2329_v26 }
 0x363   : > { %1941 = vmatpush.bf16.msrb.mxu0 %v2493_v61 }
 0x367   : > { %1942 = vmatpush.bf16.msrb.mxu0 %v2492_v3 }
 0x36b   : > { %1943 = vmatpush.bf16.msrb.mxu0 %v2491_v17 }
 0x3ac   : > { %v1530_v33 = vpop.permute.xlu2 %1529 }
 0x3c2   : > { %v1534_v36 = vpop.permute.xlu0 %1533 }
 0x3c4   : > { %v1526_v32 = vpop.permute.xlu1 %1525 }
 0x3c5   : > { %v1536_v35 = vsel %vm1158_vm1, %v1517_v25, %v1526_v32  ;;  %v2330_v25 = vld [vmem:[#allocation11 + $0x28] sm:$0xf0] }
 0x3c6   : > { %v1538_v37 = vsel %vm1537_vm6, %v1536_v35, %v1530_v33  ;;  %v2333_v27 = vor.u32 %v2478_v24, %v2330_v25  ;;  %v2321_v33 = vor.u32 %v2477_v2, %v2320_v28  ;;  %v2325_v35 = vor.u32 %v2476_v29, %v2322_v30 }
 0x3c7   : > { %v1540_v38 = vsel %vm1539_vm7, %v1538_v37, %v1534_v36  ;;  %v2312_v36 = vld [vmem:[#allocation11] sm:$0xf]  ;;  %v2475_v37 = vld [vmem:[#allocation11 + $0x4] sm:$0xf0] }
 0x3c8   : > { %v1541_v39 = vpack.c.bf16 %v1540_v38, %v1540_v38  ;;  %1793 = vmatpush.bf16.msra.mxu3 %v2333_v27  ;;  %1781 = vmatpush.bf16.msrb.mxu2 %v2321_v33 }
 0x3ca   : > { %1614 = vmatmul.bf16.vlgmr.msrb.gmra.mxu1 %v1541_v39  ;;  %v2474_v39 = vld [vmem:[#allocation11 + $0x4] sm:$0xf] }
 0x3cc   : > { %1794 = vmatpush.bf16.msra.mxu3 %v2325_v35 }
 0x447   : > { %v1615_v42 = vpop.f32.mrf.mxu1 }
 0x448   : > { %v1616_v43 = vadd.f32 %v1615_v42, %v3198_v20  ;;  %v2314_v42 = vld [vmem:[#allocation11 + $0x8] sm:$0xf0] }
 0x449   : > { %v2317_v45 = vor.u32 %v2474_v39, %v2314_v42 }
 0x44a   : > { %1621 = vadd.xlane.f32.xlu1 %v1616_v43 }
 0x44b   : > { %1795 = vmatpush.bf16.msra.mxu3 %v2317_v45 }
 0x44f   : > { %v1617_v44 = vpop.f32.mrf.mxu1 }
 0x450   : > { %v2313_v44 = vor.u32 %v2475_v37, %v2312_v36 }
 0x452   : > { %1782 = vmatpush.bf16.msrb.mxu2 %v2313_v44 }
 0x4bd   : > { %v1622_v51 = vpop.xlane.xlu1 %1621 }
 0x4be   : > { %v1630_v52 = vmul.f32 %v3390_v50, %v1622_v51 }
 0x4c0   : > { %v3393_v53 = vsub.f32 %v1616_v43, %v1630_v52  ;;  %v2504_v52 = vld [vmem:[#allocation13 + $0x70] sm:$0xff] }
 0x4c1   : > { %1951 = vmatpush.bf16.msra.mxu1 %v2504_v52 }
 0x4c2   : > { %v1632_v20 = vmul.f32 %v3393_v53, %v3393_v53  ;;  %v1666_v10 = vmul.f32 %v2623_v6, %v3393_v53  ;;  %v1689_v53 = vld [vmem:[%s3458_s6] sm:$0x3] }
 0x4c3   : > { %v1691_v21 = vperm.slane %v1689_v53, 0  ;;  %v1692_v22 = vperm.slane %v1689_v53, 1 }
 0x4c4   : > { %1633 = vadd.xlane.f32.xlu0 %v1632_v20 }
 0x4c5   : > { %1952 = vmatpush.bf16.msra.mxu1 %v2503_v58 }
 0x4c9   : > { %1953 = vmatpush.bf16.msra.mxu1 %v2502_v60 }
 0x4cd   : > { %1954 = vmatpush.bf16.msra.mxu1 %v2501_v63  ;;  %v2626_v63 = vld [vmem:[%s3489_s4] ss:$0 sm:$0xff] }
 0x4d1   : > { %1955 = vmatpush.bf16.msra.mxu1 %v2500_v5 }
 0x4d5   : > { %1956 = vmatpush.bf16.msra.mxu1 %v2499_v40 }
 0x4d9   : > { %1957 = vmatpush.bf16.msra.mxu1 %v2498_v19 }
 0x537   : > { %v1634_v16 = vpop.xlane.xlu0 %1633 }
 0x538   : > { %v1635_v18 = vmul.f32 0.007874016, %v1634_v16 }
 0x53a   : > { %2646 = vrsqrt.f32 %v1635_v18  ;;  %vm1643_vm1 = vcmp.eq.f32.partialorder %v1635_v18, inf  ;;  %v1646_v20 = vand.u32 2147483648, %v1635_v18  ;;  %vm1645_vm8 = vcmp.eq.f32.partialorder %v1635_v18, 0.0 }
 0x540   : > { %v2647_v31 = vpop.eup %2646 }
 0x541   : > { %v1637_v32 = vmul.f32 %v2647_v31, %v1635_v18 }
 0x543   : > { %v1638_v38 = vmul.f32 %v2647_v31, %v1637_v32  ;;  %v2625_v32 = vld [vmem:[%s3460_s8] ss:$0 sm:$0xff] }
 0x545   : > { %v1639_v43 = vmul.f32 0.5, %v1638_v38 }
 0x547   : > { %v1640_v41 = vsub.f32 1.5, %v1639_v43 }
 0x549   : > { %v1641_v48 = vmul.f32 %v2647_v31, %v1640_v41 }
 0x54b   : > { %v1642_v51 = vmul.f32 %v1641_v48, %v1635_v18 }
 0x54d   : > { %v1644_v54 = vsel %vm1643_vm1, %v1635_v18, %v1642_v51  ;;  %v2490_v18 = vld [vmem:[#allocation13] sm:$0xff] }
 0x54e   : > { %v1647_v55 = vsel %vm1645_vm8, %v1646_v20, %v1644_v54  ;;  %1944 = vmatpush.bf16.msrb.mxu0 %v2490_v18 }
 0x54f   : > { %v1648_v57 = vadd.f32 1e-05, %v1647_v55 }
 0x551   : > { %2648 = vrcp.f32 %v1648_v57  ;;  %v1660_v4 = vand.u32 2147483648, %v1648_v57  ;;  %v1658_v7 = vand.u32 2147483647, %v1648_v57  ;;  %vm1654_vm10 = vweird.f32 %v1648_v57 }
 0x553   : > { %v1661_v9 = vor.u32 1.1754944e-38, %v1660_v4  ;;  %vm1659_vm12 = vcmp.eq.f32.partialorder %v1658_v7, 8.507059e+37 }
 0x557   : > { %v2649_v62 = vpop.eup %2648 }
 0x558   : > { %v1650_v0 = vmul.f32 %v2649_v62, %v1648_v57  ;;  %vm1655_vm9 = vweird.f32 %v2649_v62 }
 0x559   : > { %vm1656_vm11 = vmor %vm1654_vm10, %vm1655_vm9 }
 0x55a   : > { %v1651_v1 = vsub.f32 1.0, %v1650_v0 }
 0x55c   : > { %v1652_v34 = vmul.f32 %v2649_v62, %v1651_v1 }
 0x55e   : > { %v1653_v8 = vadd.f32 %v2649_v62, %v1652_v34  ;;  %v2627_v34 = vld [vmem:[%s3491_s30] ss:$0 sm:$0xff] }
 0x560   : > { %v1657_v11 = vsel %vm1656_vm11, %v2649_v62, %v1653_v8 }
 0x561   : > { %v1662_v13 = vsel %vm1659_vm12, %v1661_v9, %v1657_v11 }
 0x562   : > { %v1667_v14 = vmul.f32 %v1666_v10, %v1662_v13 }
 0x564   : > { %v1671_v15 = vadd.f32 %v2624_v12, %v1667_v14 }
 0x566   : > { %v1672_v16 = vpack.c.bf16 %v1671_v15, %v1671_v15 }
 0x568   : > { %1783 = vmatmul.bf16.vlgmr.msrb.gmra.mxu2 %v1672_v16  ;;  %1796 = vmatmul.bf16.vlgmr.msra.gmra.mxu3 %v1672_v16 }
 0x5eb   : > { %v1784_v23 = vpop.f32.mrf.mxu2  ;;  %v1797_v24 = vpop.f32.mrf.mxu3 }
 0x5ec   : > { %v1785_v25 = vadd.f32 %v1784_v23, %v1691_v21  ;;  %v1798_v26 = vadd.f32 %v1797_v24, %v1692_v22 }
 0x5ee   : > { %v1801_v27 = vmax.f32 %v1785_v25, 0.0  ;;  %v1802_v28 = vmax.f32 %v1798_v26, 0.0 }
 0x5f0   : > { %v1803_v2 = vpack.c.bf16 %v1801_v27, %v1801_v27  ;;  %v1804_v29 = vpack.c.bf16 %v1802_v28, %v1802_v28 }
 0x5f2   : > { %1945 = vmatmul.bf16.vlgmr.msrb.gmra.mxu0 %v1803_v2  ;;  %1958 = vmatmul.bf16.vlgmr.msra.gmra.mxu1 %v1804_v29 }
 0x5f3   : > { %v1786_v30 = vpop.f32.mrf.mxu2  ;;  %v1799_v31 = vpop.f32.mrf.mxu3 }
 0x66f   : > { %v1946_v33 = vpop.f32.mrf.mxu0  ;;  %v1959_v35 = vpop.f32.mrf.mxu1 }
 0x670   : > { %v1947_v36 = vadd.f32 %v2625_v32, %v1946_v33 }
 0x672   : > { %v1960_v37 = vadd.f32 %v1959_v35, %v1947_v36 }
 0x674   : > { %v1963_v38 = vadd.f32 %v1960_v37, %v1671_v15 }
 0x676   : > { %1966 = vadd.xlane.f32.xlu2 %v1963_v38 }
 0x677   : > { %v1948_v39 = vpop.f32.mrf.mxu0  ;;  %v1961_v42 = vpop.f32.mrf.mxu1 }
 0x6e9   : > { %v1967_v43 = vpop.xlane.xlu2 %1966 }
 0x6ea   : > { %v1968_v44 = vmul.f32 %v1967_v43, %v3390_v50 }
 0x6ec   : > { %v1969_v45 = vsub.f32 %v1963_v38, %v1968_v44 }
 0x6ee   : > { %v1970_v41 = vmul.f32 %v1969_v45, %v1969_v45  ;;  %v2004_v5 = vmul.f32 %v2626_v63, %v1969_v45 }
 0x6f0   : > { %1971 = vadd.xlane.f32.xlu1 %v1970_v41 }
 0x763   : > { %v1972_v46 = vpop.xlane.xlu1 %1971 }
 0x764   : > { %v1973_v47 = vmul.f32 0.007874016, %v1972_v46 }
 0x766   : > { %2650 = vrsqrt.f32 %v1973_v47  ;;  %vm1981_vm13 = vcmp.eq.f32.partialorder %v1973_v47, inf  ;;  %v1984_v56 = vand.u32 2147483648, %v1973_v47  ;;  %vm1983_vm14 = vcmp.eq.f32.partialorder %v1973_v47, 0.0 }
 0x76c   : > { %v2651_v48 = vpop.eup %2650 }
 0x76d   : > { %v1975_v49 = vmul.f32 %v2651_v48, %v1973_v47 }
 0x76f   : > { %v1976_v51 = vmul.f32 %v2651_v48, %v1975_v49 }
 0x771   : > { %v1977_v52 = vmul.f32 0.5, %v1976_v51 }
 0x773   : > { %v1978_v20 = vsub.f32 1.5, %v1977_v52 }
 0x775   : > { %v1979_v54 = vmul.f32 %v2651_v48, %v1978_v20 }
 0x777   : > { %v1980_v55 = vmul.f32 %v1979_v54, %v1973_v47 }
 0x779   : > { %v1982_v57 = vsel %vm1981_vm13, %v1973_v47, %v1980_v55 }
 0x77a   : > { %v1985_v58 = vsel %vm1983_vm14, %v1984_v56, %v1982_v57 }
 0x77b   : > { %v1986_v50 = vadd.f32 1e-05, %v1985_v58 }
 0x77d   : > { %2652 = vrcp.f32 %v1986_v50  ;;  %v1998_v62 = vand.u32 2147483648, %v1986_v50  ;;  %v1996_v1 = vand.u32 2147483647, %v1986_v50  ;;  %vm1992_vm2 = vweird.f32 %v1986_v50 }
 0x77f   : > { %v1999_v4 = vor.u32 1.1754944e-38, %v1998_v62  ;;  %vm1997_vm4 = vcmp.eq.f32.partialorder %v1996_v1, 8.507059e+37 }
 0x783   : > { %v2653_v59 = vpop.eup %2652 }
 0x784   : > { %v1988_v60 = vmul.f32 %v2653_v59, %v1986_v50  ;;  %vm1993_vm15 = vweird.f32 %v2653_v59 }
 0x785   : > { %vm1994_vm3 = vmor %vm1992_vm2, %vm1993_vm15 }
 0x786   : > { %v1989_v61 = vsub.f32 1.0, %v1988_v60 }
 0x788   : > { %v1990_v0 = vmul.f32 %v2653_v59, %v1989_v61 }
 0x78a   : > { %v1991_v3 = vadd.f32 %v2653_v59, %v1990_v0 }
 0x78c   : > { %v1995_v6 = vsel %vm1994_vm3, %v2653_v59, %v1991_v3 }
 0x78d   : > { %v2000_v7 = vsel %vm1997_vm4, %v1999_v4, %v1995_v6 }
 0x78e   : > { %v2005_v8 = vmul.f32 %v2004_v5, %v2000_v7 }
 0x790   : > { %v2009_v9 = vadd.f32 %v2627_v34, %v2005_v8 }
 0x792   : > { %2010 = vst [vmem:[%s556_s3] sm:$0xff] %v2009_v9 }
 0x793   : > { %2891 = shalt.err (!%p2888_p9)
}
 0x794   : > { %2532 = dma.vmem_to_hbm [thread:$0]  (%p3142_p4), %s2025_s5, 128, %s2027_s29, %s2012_s17  }
 0x795 PF: > { %s2038_s12 = sand.u32 1, %s2930_s25   ;;  %p3492_p10 = scmp.ge.s32.totalorder %s2942_s28, 2 }
 0x796   : > { %s2039_s24 = scalar_lea.sflag [#allocation4], %s2038_s12 }
 0x797   : > { %p2558_p13 = pnand %p3492_p10, %p3146_p6 }
 0x799   : > { %p2559_p11 = pneg %p2558_p13 }
 0x79b   : > { %2925 = dma.done.wait (%p2559_p11), %s2039_s24, 128  }
 0x79c   : > { %2927 = vsyncadd (%p2559_p11), %s2039_s24, 4294967168  ;;  %p29_p0 = scmp.ge.s32.totalorder %s3116_s23, 4   ;;  %s3493_s25 = smov %s2934_s26 }
 0x79d   : > { %s3494_s26 = smov %s2938_s27  ;;  %s3495_s27 = smov %s3127_s14 }
 0x79e   : > { %s3496_s28 = smov %s3116_s23  ;;  %31 = sbr.rel (!%p29_p0) target bundleno = 17 (0x11), region = 141 }
 0x7a3   :  { %2045 = vsyncpa [#allocation3], 1 }
 0x7a4   :  { %2047 = vsyncpa [#allocation3 + $0x1], 1 }
 0x7a5   :  { %2048 = vsyncpa [#allocation6], 1 }
 0x7a6   :  { %2049 = vsyncpa [#allocation9], 1 }
 0x7a7   :  { %2050 = vsyncpa [#allocation12], 1 }
 0x7a8   :  { %2051 = vsyncpa [#allocation4], 1 }
 0x7a9   :  { %2053 = vsyncpa [#allocation4 + $0x1], 1 }

</bundles_post_ra>
